<compile_context>
chip_gen: v5e
topology: v5e:2x2
jax: 0.10.0
libtpu: 0.0.40
codegen_flags: <defaults>
</compile_context>

<pallas_src>
import functools

import jax
import jax.numpy as jnp
from jax import lax
from jax.experimental import pallas as pl
from jax.experimental.pallas import tpu as pltpu


def _round_up(x: int, m: int) -> int:
    return (x + m - 1) // m * m


def _rough_scorer_kernel(m_i_ref, m_j_ref, w_t_ref, bias_ref,
                         out_s_ref, out_i_ref,
                         proj_ref, ts_ref, ti_ref,
                         *, tm, tn, k, kpad):
    """One (row-block i, col-block j) step of the fused score + top-k."""
    i_blk = pl.program_id(0)
    j_blk = pl.program_id(1)
    row0 = i_blk * tm
    col0 = j_blk * tn

    # ---- per-row-block init (j == 0): project row tile, reset running top-k.
    @pl.when(j_blk == 0)
    def _():
        proj = (jnp.dot(m_i_ref[...], w_t_ref[...],
                        preferred_element_type=jnp.float32)
                + bias_ref[...])
        proj_ref[...] = proj.astype(proj_ref.dtype)
        ts_ref[...] = jnp.full((tm, kpad), -jnp.inf, dtype=ts_ref.dtype)
        # Fallback antecedent index = the mention's own row (a masked pair);
        # used for rows with fewer than k valid antecedents.
        ti_ref[...] = row0 + lax.broadcasted_iota(jnp.int32, (tm, kpad), 0)

    def block_scores():
        # scores[p, q] = sum_f proj[p, f] * m_j[q, f]  (bf16 x bf16 -> f32,
        # contraction on the last dims: no transpose of the mentions tile).
        return lax.dot_general(
            proj_ref[...], m_j_ref[...],
            dimension_numbers=(((1,), (1,)), ((), ())),
            preferred_element_type=jnp.float32)

    def merge_topk(scores):
        # Merge (running top-k, new score tile) -> running top-k.
        # k is small and static, so the selection loop is unrolled.
        new_idx = col0 + lax.broadcasted_iota(jnp.int32, (tm, tn), 1)
        cand_s = jnp.concatenate([ts_ref[...], scores], axis=1)
        cand_i = jnp.concatenate([ti_ref[...], new_idx], axis=1)
        width = kpad + tn
        pos = lax.broadcasted_iota(jnp.int32, (tm, width), 1)
        taken = jnp.zeros((tm, width), dtype=jnp.bool_)
        for t in range(k):
            s_avail = jnp.where(taken, -jnp.inf, cand_s)
            m = jnp.max(s_avail, axis=1, keepdims=True)
            hit = jnp.logical_and(s_avail == m, jnp.logical_not(taken))
            first = jnp.min(jnp.where(hit, pos, width), axis=1, keepdims=True)
            sel = pos == first                                   # one-hot
            idx = jnp.sum(jnp.where(sel, cand_i, 0), axis=1, keepdims=True)
            ts_ref[:, t:t + 1] = m
            ti_ref[:, t:t + 1] = idx
            taken = jnp.logical_or(taken, sel)

    # ---- strictly-below-diagonal block: every pair is valid, no masking.
    @pl.when(j_blk < i_blk)
    def _():
        merge_topk(block_scores())

    # ---- diagonal block: mask j >= i pairs, merge, then finalize the row
    # block (this is its last contributing block; blocks with j > i are fully
    # masked and skipped, and their DMAs are suppressed by the clamped m_j
    # index_map).
    @pl.when(j_blk == i_blk)
    def _():
        scores = block_scores()
        row_ids = row0 + lax.broadcasted_iota(jnp.int32, (tm, tn), 0)
        col_ids = col0 + lax.broadcasted_iota(jnp.int32, (tm, tn), 1)
        merge_topk(jnp.where(row_ids > col_ids, scores, -jnp.inf))
        out_s_ref[...] = ts_ref[:, :k]
        out_i_ref[...] = ti_ref[:, :k]


@functools.partial(jax.jit, static_argnames=("rough_k",))
def rough_scorer_forward(mentions, weight, bias, *, rough_k):
    """JAX/Pallas equivalent of RoughScorer.forward (eval mode).

    Args:
      mentions: [N, F] float32.
      weight:   [F, F] float32 (torch Linear weight, applied as x @ W.T + b).
      bias:     [F]    float32.
      rough_k:  static int, number of antecedents to keep per mention.

    Returns:
      (top_scores [N, k] float32, top_indices [N, k] int32)
    """
    n, f = mentions.shape
    k = min(rough_k, n)

    f_pad = _round_up(max(f, 128), 128)          # lane/MXU-friendly features
    tile = min(512, _round_up(n, 128))           # square row/col tile
    n_pad = _round_up(n, tile)
    kpad = _round_up(max(k, 128), 128)           # running top-k scratch width

    # bf16 operands (f32 accumulation in-kernel); zero-pad N and F.
    m_pad = jnp.zeros((n_pad, f_pad), jnp.bfloat16)
    m_pad = m_pad.at[:n, :f].set(mentions.astype(jnp.bfloat16))
    w_t = jnp.zeros((f_pad, f_pad), jnp.bfloat16)
    w_t = w_t.at[:f, :f].set(weight.T.astype(jnp.bfloat16))
    bias2d = jnp.zeros((1, f_pad), jnp.float32).at[0, :f].set(bias)

    grid = (n_pad // tile, n_pad // tile)

    # Explicit VMEM budget: double-buffered inputs/outputs + resident W.T +
    # scratches + merge temporaries, with 2x headroom, capped for v7x (64 MiB).
    est = (
        2 * tile * f_pad * 2            # m_i (2 buffers, bf16)
        + 2 * tile * f_pad * 2          # m_j
        + 2 * f_pad * f_pad * 2         # W.T (conservatively double-buffered)
        + 2 * f_pad * 4                 # bias
        + 2 * tile * k * 8              # out scores + indices
        + tile * f_pad * 2              # proj scratch (bf16)
        + tile * kpad * 8               # running top-k scratch
        + tile * tile * 4               # per-block score tile
        + 2 * tile * (kpad + tile) * 8  # merge temporaries
    )
    vmem_limit = int(min(max(2 * est, 16 * 2**20), 64 * 2**20))

    out_s, out_i = pl.pallas_call(
        functools.partial(_rough_scorer_kernel,
                          tm=tile, tn=tile, k=k, kpad=kpad),
        out_shape=(jax.ShapeDtypeStruct((n_pad, k), jnp.float32),
                   jax.ShapeDtypeStruct((n_pad, k), jnp.int32)),
        grid_spec=pltpu.PrefetchScalarGridSpec(
            num_scalar_prefetch=0,
            grid=grid,
            in_specs=[
                pl.BlockSpec((tile, f_pad), lambda i, j: (i, 0)),
                # Clamp to min(i, j): fully-masked (j > i) blocks re-use the
                # previous tile, so no DMA is issued for them.
                pl.BlockSpec((tile, f_pad), lambda i, j: (jnp.minimum(i, j), 0)),
                pl.BlockSpec((f_pad, f_pad), lambda i, j: (0, 0)),   # W.T resident
                pl.BlockSpec((1, f_pad), lambda i, j: (0, 0)),       # bias resident
            ],
            out_specs=[
                pl.BlockSpec((tile, k), lambda i, j: (i, 0)),
                pl.BlockSpec((tile, k), lambda i, j: (i, 0)),
            ],
            scratch_shapes=[
                pltpu.VMEM((tile, f_pad), jnp.bfloat16),   # proj row tile
                pltpu.VMEM((tile, kpad), jnp.float32),     # running top scores
                pltpu.VMEM((tile, kpad), jnp.int32),       # running top indices
            ],
        ),
        compiler_params=pltpu.CompilerParams(
            # i axis "parallel" (megacore / v7x 2-TC); j MUST stay "arbitrary"
            # because proj / top-k scratch carry state across the j sweep.
            dimension_semantics=("parallel", "arbitrary"),
            vmem_limit_bytes=vmem_limit),
    )(m_pad, m_pad, w_t, bias2d)

    # Drop padded rows; padded columns never appear in the result (the mask
    # and the triangular structure exclude them for valid rows).
    return out_s[:n], out_i[:n]


if __name__ == "__main__":
    # Small shapes consistent with the module: N mentions x F features.
    N, F = 16, 32
    ROUGH_K = 4

    key = jax.random.PRNGKey(0)
    k_mentions, k_weight, k_bias = jax.random.split(key, 3)

    mentions = jax.random.normal(k_mentions, (N, F), dtype=jnp.float32)
    # Deterministic synthetic parameters (not a checkpoint load).
    weight = jax.random.normal(k_weight, (F, F), dtype=jnp.float32) * 0.1
    bias = jax.random.normal(k_bias, (F,), dtype=jnp.float32) * 0.01

    top_scores, top_indices = rough_scorer_forward(
        mentions, weight, bias, rough_k=ROUGH_K)
    jax.block_until_ready((top_scores, top_indices))

    # Pure-JAX reference mirroring the kernel's bf16-operand / f32-accumulate
    # matmuls (the kernel intentionally trades exact f32 for MXU throughput).
    m_bf = mentions.astype(jnp.bfloat16)
    w_bf = weight.astype(jnp.bfloat16)
    proj = (jnp.dot(m_bf, w_bf.T, preferred_element_type=jnp.float32)
            + bias).astype(jnp.bfloat16)
    bilinear = jnp.dot(proj, m_bf.T, preferred_element_type=jnp.float32)
    idx = jnp.arange(N)
    pair_mask = jnp.where(idx[:, None] > idx[None, :], 0.0, -jnp.inf)
    ref_full = pair_mask + bilinear
    ref_scores, _ = lax.top_k(ref_full, min(ROUGH_K, N))

    assert top_scores.shape == (N, ROUGH_K)
    assert top_indices.shape == (N, ROUGH_K)
    # Scores: both kernel and reference are sorted descending per row
    # (torch.topk(sorted=False) allows any ordering of the same set).
    assert bool(jnp.allclose(top_scores, ref_scores, atol=5e-2, rtol=2e-2)), (
        "score mismatch vs reference")
    # Index check robust to ties: scores gathered at the returned indices must
    # match the reference top-k score multiset.  -inf slots point at a masked
    # pair (the row itself), so the gathered value is also -inf.
    gathered = jnp.take_along_axis(ref_full, top_indices, axis=1)
    assert bool(jnp.allclose(jnp.sort(gathered, axis=1),
                             jnp.sort(ref_scores, axis=1),
                             atol=5e-2, rtol=2e-2)), (
        "top-k index set mismatch vs reference")

    print("KERNEL_OK")
</pallas_src>

<mosaic_0001>
module attributes {stable_mosaic.version = 11 : i64} {
  func.func @_rough_scorer_kernel(%arg0: i32, %arg1: i32, %arg2: memref<128x128xbf16, #tpu.memory_space<vmem>>, %arg3: memref<128x128xbf16, #tpu.memory_space<vmem>>, %arg4: memref<128x128xbf16, #tpu.memory_space<vmem>>, %arg5: memref<1x128xf32, #tpu.memory_space<vmem>>, %arg6: memref<128x4xf32, #tpu.memory_space<vmem>>, %arg7: memref<128x4xi32, #tpu.memory_space<vmem>>, %arg8: memref<128x128xbf16, #tpu.memory_space<vmem>>, %arg9: memref<128x128xf32, #tpu.memory_space<vmem>>, %arg10: memref<128x128xi32, #tpu.memory_space<vmem>>) attributes {dimension_semantics = [#tpu.dimension_semantics<parallel>, #tpu.dimension_semantics<arbitrary>], iteration_bounds = array<i64: 1, 1>, scalar_prefetch = 0 : i64, scratch_operands = 3 : i64, tpu.core_type = #tpu.core_type<tc>, window_params = [{transform_indices = @transform_0, window_bounds = array<i64: 128, 128>}, {transform_indices = @transform_1, window_bounds = array<i64: 128, 128>}, {pipeline_mode = #tpu.pipeline_mode<synchronous>, transform_indices = @transform_2, window_bounds = array<i64: 128, 128>}, {pipeline_mode = #tpu.pipeline_mode<synchronous>, transform_indices = @transform_3, window_bounds = array<i64: 1, 128>}, {transform_indices = @transform_4, window_bounds = array<i64: 128, 4>}, {transform_indices = @transform_5, window_bounds = array<i64: 128, 4>}]} {
    %c128_i32 = arith.constant 128 : i32
    %0 = arith.muli %arg0, %c128_i32 : i32
    %c128_i32_0 = arith.constant 128 : i32
    %1 = arith.muli %arg1, %c128_i32_0 : i32
    %c0_i32 = arith.constant 0 : i32
    %2 = arith.cmpi eq, %arg1, %c0_i32 : i32
    %3 = arith.extui %2 : i1 to i32
    %c0_i32_1 = arith.constant 0 : i32
    %4 = arith.cmpi ne, %3, %c0_i32_1 : i32
    scf.if %4 {
      %c0 = arith.constant 0 : index
      %c0_4 = arith.constant 0 : index
      %11 = vector.load %arg2[%c0, %c0_4] : memref<128x128xbf16, #tpu.memory_space<vmem>>, vector<128x128xbf16>
      %c0_5 = arith.constant 0 : index
      %c0_6 = arith.constant 0 : index
      %12 = vector.load %arg4[%c0_5, %c0_6] : memref<128x128xbf16, #tpu.memory_space<vmem>>, vector<128x128xbf16>
      %cst = arith.constant dense<0.000000e+00> : vector<128x128xf32>
      %13 = tpu.matmul %11, %12, %cst {dimension_numbers = #tpu.dot_dimension_numbers<[1], [0], [0], [1], [0, 0, 1, 1], [], []>} : vector<128x128xbf16>, vector<128x128xbf16>, vector<128x128xf32> -> vector<128x128xf32>
      %c0_7 = arith.constant 0 : index
      %c0_8 = arith.constant 0 : index
      %14 = vector.load %arg5[%c0_7, %c0_8] : memref<1x128xf32, #tpu.memory_space<vmem>>, vector<1x128xf32>
      %15 = vector.broadcast %14 : vector<1x128xf32> to vector<128x128xf32>
      %16 = arith.addf %13, %15 : vector<128x128xf32>
      %17 = arith.truncf %16 : vector<128x128xf32> to vector<128x128xbf16>
      %c0_9 = arith.constant 0 : index
      %c0_10 = arith.constant 0 : index
      %18 = vector.load %arg8[%c0_9, %c0_10] : memref<128x128xbf16, #tpu.memory_space<vmem>>, vector<128x128xbf16>
      tpu.vector_store %arg8[%c0_9, %c0_10], %17 {strides = array<i32>} : memref<128x128xbf16, #tpu.memory_space<vmem>>, vector<128x128xbf16>,
      %cst_11 = arith.constant 0xFF800000 : f32
      %19 = vector.broadcast %cst_11 : f32 to vector<128x128xf32>
      %c0_12 = arith.constant 0 : index
      %c0_13 = arith.constant 0 : index
      %20 = vector.load %arg9[%c0_12, %c0_13] : memref<128x128xf32, #tpu.memory_space<vmem>>, vector<128x128xf32>
      tpu.vector_store %arg9[%c0_12, %c0_13], %19 {strides = array<i32>} : memref<128x128xf32, #tpu.memory_space<vmem>>, vector<128x128xf32>,
      %21 = tpu.iota {dimensions = array<i32: 0>} : vector<128x128xi32>
      %22 = vector.broadcast %0 : i32 to vector<128x128xi32>
      %23 = arith.addi %22, %21 : vector<128x128xi32>
      %c0_14 = arith.constant 0 : index
      %c0_15 = arith.constant 0 : index
      %24 = vector.load %arg10[%c0_14, %c0_15] : memref<128x128xi32, #tpu.memory_space<vmem>>, vector<128x128xi32>
      tpu.vector_store %arg10[%c0_14, %c0_15], %23 {strides = array<i32>} : memref<128x128xi32, #tpu.memory_space<vmem>>, vector<128x128xi32>,
    } else {
    }
    %5 = arith.cmpi slt, %arg1, %arg0 : i32
    %6 = arith.extui %5 : i1 to i32
    %c0_i32_2 = arith.constant 0 : i32
    %7 = arith.cmpi ne, %6, %c0_i32_2 : i32
    scf.if %7 {
      %c0 = arith.constant 0 : index
      %c0_4 = arith.constant 0 : index
      %11 = vector.load %arg8[%c0, %c0_4] : memref<128x128xbf16, #tpu.memory_space<vmem>>, vector<128x128xbf16>
      %c0_5 = arith.constant 0 : index
      %c0_6 = arith.constant 0 : index
      %12 = vector.load %arg3[%c0_5, %c0_6] : memref<128x128xbf16, #tpu.memory_space<vmem>>, vector<128x128xbf16>
      %cst = arith.constant dense<0.000000e+00> : vector<128x128xf32>
      %13 = tpu.matmul %11, %12, %cst {dimension_numbers = #tpu.dot_dimension_numbers<[1], [1], [0], [0], [0, 0, 1, 0], [], []>} : vector<128x128xbf16>, vector<128x128xbf16>, vector<128x128xf32> -> vector<128x128xf32>
      %14 = tpu.iota {dimensions = array<i32: 1>} : vector<128x128xi32>
      %15 = vector.broadcast %1 : i32 to vector<128x128xi32>
      %16 = arith.addi %15, %14 : vector<128x128xi32>
      %c0_7 = arith.constant 0 : index
      %c0_8 = arith.constant 0 : index
      %17 = vector.load %arg9[%c0_7, %c0_8] : memref<128x128xf32, #tpu.memory_space<vmem>>, vector<128x128xf32>
      %18 = tpu.concatenate %17, %13 in 1 : vector<128x128xf32>, vector<128x128xf32> -> vector<128x256xf32>
      %c0_9 = arith.constant 0 : index
      %c0_10 = arith.constant 0 : index
      %19 = vector.load %arg10[%c0_9, %c0_10] : memref<128x128xi32, #tpu.memory_space<vmem>>, vector<128x128xi32>
      %20 = tpu.concatenate %19, %16 in 1 : vector<128x128xi32>, vector<128x128xi32> -> vector<128x256xi32>
      %21 = tpu.iota {dimensions = array<i32: 1>} : vector<128x256xi32>
      %false = arith.constant false
      %22 = vector.broadcast %false : i1 to vector<128x256xi1>
      %cst_11 = arith.constant 0xFF800000 : f32
      %23 = vector.broadcast %cst_11 : f32 to vector<128x256xf32>
      %24 = arith.select %22, %23, %18 : vector<128x256xi1>, vector<128x256xf32>
      %cst_12 = arith.constant dense<0xFF800000> : vector<128xf32>
      %25 = vector.multi_reduction <maximumf>, %24, %cst_12 [1] : vector<128x256xf32> to vector<128xf32>
      %26 = vector.shape_cast %25 : vector<128xf32> to vector<128x1xf32>
      %27 = vector.broadcast %26 : vector<128x1xf32> to vector<128x256xf32>
      %28 = arith.cmpf oeq, %24, %27 : vector<128x256xf32>
      %cst_13 = arith.constant dense<true> : vector<128x256xi1>
      %29 = arith.xori %22, %cst_13 : vector<128x256xi1>
      %30 = arith.andi %28, %29 : vector<128x256xi1>
      %c256_i32 = arith.constant 256 : i32
      %31 = vector.broadcast %c256_i32 : i32 to vector<128x256xi32>
      %32 = arith.select %30, %21, %31 : vector<128x256xi1>, vector<128x256xi32>
      %cst_14 = arith.constant dense<2147483647> : vector<128xi32>
      %33 = vector.multi_reduction <minsi>, %32, %cst_14 [1] : vector<128x256xi32> to vector<128xi32>
      %34 = vector.shape_cast %33 : vector<128xi32> to vector<128x1xi32>
      %35 = vector.broadcast %34 : vector<128x1xi32> to vector<128x256xi32>
      %36 = arith.cmpi eq, %21, %35 : vector<128x256xi32>
      %c0_i32_15 = arith.constant 0 : i32
      %37 = vector.broadcast %c0_i32_15 : i32 to vector<128x256xi32>
      %38 = arith.select %36, %20, %37 : vector<128x256xi1>, vector<128x256xi32>
      %cst_16 = arith.constant dense<0> : vector<128xi32>
      %39 = vector.multi_reduction <add>, %38, %cst_16 [1] : vector<128x256xi32> to vector<128xi32>
      %40 = vector.shape_cast %39 : vector<128xi32> to vector<128x1xi32>
      %c0_17 = arith.constant 0 : index
      %c0_18 = arith.constant 0 : index
      %41 = vector.load %arg9[%c0_17, %c0_18] : memref<128x128xf32, #tpu.memory_space<vmem>>, vector<128x1xf32>
      tpu.vector_store %arg9[%c0_17, %c0_18], %26 {strides = array<i32>} : memref<128x128xf32, #tpu.memory_space<vmem>>, vector<128x1xf32>,
      %c0_19 = arith.constant 0 : index
      %c0_20 = arith.constant 0 : index
      %42 = vector.load %arg10[%c0_19, %c0_20] : memref<128x128xi32, #tpu.memory_space<vmem>>, vector<128x1xi32>
      tpu.vector_store %arg10[%c0_19, %c0_20], %40 {strides = array<i32>} : memref<128x128xi32, #tpu.memory_space<vmem>>, vector<128x1xi32>,
      %43 = arith.ori %22, %36 : vector<128x256xi1>
      %cst_21 = arith.constant 0xFF800000 : f32
      %44 = vector.broadcast %cst_21 : f32 to vector<128x256xf32>
      %45 = arith.select %43, %44, %18 : vector<128x256xi1>, vector<128x256xf32>
      %cst_22 = arith.constant dense<0xFF800000> : vector<128xf32>
      %46 = vector.multi_reduction <maximumf>, %45, %cst_22 [1] : vector<128x256xf32> to vector<128xf32>
      %47 = vector.shape_cast %46 : vector<128xf32> to vector<128x1xf32>
      %48 = vector.broadcast %47 : vector<128x1xf32> to vector<128x256xf32>
      %49 = arith.cmpf oeq, %45, %48 : vector<128x256xf32>
      %cst_23 = arith.constant dense<true> : vector<128x256xi1>
      %50 = arith.xori %43, %cst_23 : vector<128x256xi1>
      %51 = arith.andi %49, %50 : vector<128x256xi1>
      %c256_i32_24 = arith.constant 256 : i32
      %52 = vector.broadcast %c256_i32_24 : i32 to vector<128x256xi32>
      %53 = arith.select %51, %21, %52 : vector<128x256xi1>, vector<128x256xi32>
      %cst_25 = arith.constant dense<2147483647> : vector<128xi32>
      %54 = vector.multi_reduction <minsi>, %53, %cst_25 [1] : vector<128x256xi32> to vector<128xi32>
      %55 = vector.shape_cast %54 : vector<128xi32> to vector<128x1xi32>
      %56 = vector.broadcast %55 : vector<128x1xi32> to vector<128x256xi32>
      %57 = arith.cmpi eq, %21, %56 : vector<128x256xi32>
      %c0_i32_26 = arith.constant 0 : i32
      %58 = vector.broadcast %c0_i32_26 : i32 to vector<128x256xi32>
      %59 = arith.select %57, %20, %58 : vector<128x256xi1>, vector<128x256xi32>
      %cst_27 = arith.constant dense<0> : vector<128xi32>
      %60 = vector.multi_reduction <add>, %59, %cst_27 [1] : vector<128x256xi32> to vector<128xi32>
      %61 = vector.shape_cast %60 : vector<128xi32> to vector<128x1xi32>
      %c0_28 = arith.constant 0 : index
      %c1 = arith.constant 1 : index
      %62 = vector.load %arg9[%c0_28, %c1] : memref<128x128xf32, #tpu.memory_space<vmem>>, vector<128x1xf32>
      tpu.vector_store %arg9[%c0_28, %c1], %47 {strides = array<i32>} : memref<128x128xf32, #tpu.memory_space<vmem>>, vector<128x1xf32>,
      %c0_29 = arith.constant 0 : index
      %c1_30 = arith.constant 1 : index
      %63 = vector.load %arg10[%c0_29, %c1_30] : memref<128x128xi32, #tpu.memory_space<vmem>>, vector<128x1xi32>
      tpu.vector_store %arg10[%c0_29, %c1_30], %61 {strides = array<i32>} : memref<128x128xi32, #tpu.memory_space<vmem>>, vector<128x1xi32>,
      %64 = arith.ori %43, %57 : vector<128x256xi1>
      %cst_31 = arith.constant 0xFF800000 : f32
      %65 = vector.broadcast %cst_31 : f32 to vector<128x256xf32>
      %66 = arith.select %64, %65, %18 : vector<128x256xi1>, vector<128x256xf32>
      %cst_32 = arith.constant dense<0xFF800000> : vector<128xf32>
      %67 = vector.multi_reduction <maximumf>, %66, %cst_32 [1] : vector<128x256xf32> to vector<128xf32>
      %68 = vector.shape_cast %67 : vector<128xf32> to vector<128x1xf32>
      %69 = vector.broadcast %68 : vector<128x1xf32> to vector<128x256xf32>
      %70 = arith.cmpf oeq, %66, %69 : vector<128x256xf32>
      %cst_33 = arith.constant dense<true> : vector<128x256xi1>
      %71 = arith.xori %64, %cst_33 : vector<128x256xi1>
      %72 = arith.andi %70, %71 : vector<128x256xi1>
      %c256_i32_34 = arith.constant 256 : i32
      %73 = vector.broadcast %c256_i32_34 : i32 to vector<128x256xi32>
      %74 = arith.select %72, %21, %73 : vector<128x256xi1>, vector<128x256xi32>
      %cst_35 = arith.constant dense<2147483647> : vector<128xi32>
      %75 = vector.multi_reduction <minsi>, %74, %cst_35 [1] : vector<128x256xi32> to vector<128xi32>
      %76 = vector.shape_cast %75 : vector<128xi32> to vector<128x1xi32>
      %77 = vector.broadcast %76 : vector<128x1xi32> to vector<128x256xi32>
      %78 = arith.cmpi eq, %21, %77 : vector<128x256xi32>
      %c0_i32_36 = arith.constant 0 : i32
      %79 = vector.broadcast %c0_i32_36 : i32 to vector<128x256xi32>
      %80 = arith.select %78, %20, %79 : vector<128x256xi1>, vector<128x256xi32>
      %cst_37 = arith.constant dense<0> : vector<128xi32>
      %81 = vector.multi_reduction <add>, %80, %cst_37 [1] : vector<128x256xi32> to vector<128xi32>
      %82 = vector.shape_cast %81 : vector<128xi32> to vector<128x1xi32>
      %c0_38 = arith.constant 0 : index
      %c2 = arith.constant 2 : index
      %83 = vector.load %arg9[%c0_38, %c2] : memref<128x128xf32, #tpu.memory_space<vmem>>, vector<128x1xf32>
      tpu.vector_store %arg9[%c0_38, %c2], %68 {strides = array<i32>} : memref<128x128xf32, #tpu.memory_space<vmem>>, vector<128x1xf32>,
      %c0_39 = arith.constant 0 : index
      %c2_40 = arith.constant 2 : index
      %84 = vector.load %arg10[%c0_39, %c2_40] : memref<128x128xi32, #tpu.memory_space<vmem>>, vector<128x1xi32>
      tpu.vector_store %arg10[%c0_39, %c2_40], %82 {strides = array<i32>} : memref<128x128xi32, #tpu.memory_space<vmem>>, vector<128x1xi32>,
      %85 = arith.ori %64, %78 : vector<128x256xi1>
      %cst_41 = arith.constant 0xFF800000 : f32
      %86 = vector.broadcast %cst_41 : f32 to vector<128x256xf32>
      %87 = arith.select %85, %86, %18 : vector<128x256xi1>, vector<128x256xf32>
      %cst_42 = arith.constant dense<0xFF800000> : vector<128xf32>
      %88 = vector.multi_reduction <maximumf>, %87, %cst_42 [1] : vector<128x256xf32> to vector<128xf32>
      %89 = vector.shape_cast %88 : vector<128xf32> to vector<128x1xf32>
      %90 = vector.broadcast %89 : vector<128x1xf32> to vector<128x256xf32>
      %91 = arith.cmpf oeq, %87, %90 : vector<128x256xf32>
      %cst_43 = arith.constant dense<true> : vector<128x256xi1>
      %92 = arith.xori %85, %cst_43 : vector<128x256xi1>
      %93 = arith.andi %91, %92 : vector<128x256xi1>
      %c256_i32_44 = arith.constant 256 : i32
      %94 = vector.broadcast %c256_i32_44 : i32 to vector<128x256xi32>
      %95 = arith.select %93, %21, %94 : vector<128x256xi1>, vector<128x256xi32>
      %cst_45 = arith.constant dense<2147483647> : vector<128xi32>
      %96 = vector.multi_reduction <minsi>, %95, %cst_45 [1] : vector<128x256xi32> to vector<128xi32>
      %97 = vector.shape_cast %96 : vector<128xi32> to vector<128x1xi32>
      %98 = vector.broadcast %97 : vector<128x1xi32> to vector<128x256xi32>
      %99 = arith.cmpi eq, %21, %98 : vector<128x256xi32>
      %c0_i32_46 = arith.constant 0 : i32
      %100 = vector.broadcast %c0_i32_46 : i32 to vector<128x256xi32>
      %101 = arith.select %99, %20, %100 : vector<128x256xi1>, vector<128x256xi32>
      %cst_47 = arith.constant dense<0> : vector<128xi32>
      %102 = vector.multi_reduction <add>, %101, %cst_47 [1] : vector<128x256xi32> to vector<128xi32>
      %103 = vector.shape_cast %102 : vector<128xi32> to vector<128x1xi32>
      %c0_48 = arith.constant 0 : index
      %c3 = arith.constant 3 : index
      %104 = vector.load %arg9[%c0_48, %c3] : memref<128x128xf32, #tpu.memory_space<vmem>>, vector<128x1xf32>
      tpu.vector_store %arg9[%c0_48, %c3], %89 {strides = array<i32>} : memref<128x128xf32, #tpu.memory_space<vmem>>, vector<128x1xf32>,
      %c0_49 = arith.constant 0 : index
      %c3_50 = arith.constant 3 : index
      %105 = vector.load %arg10[%c0_49, %c3_50] : memref<128x128xi32, #tpu.memory_space<vmem>>, vector<128x1xi32>
      tpu.vector_store %arg10[%c0_49, %c3_50], %103 {strides = array<i32>} : memref<128x128xi32, #tpu.memory_space<vmem>>, vector<128x1xi32>,
    } else {
    }
    %8 = arith.cmpi eq, %arg1, %arg0 : i32
    %9 = arith.extui %8 : i1 to i32
    %c0_i32_3 = arith.constant 0 : i32
    %10 = arith.cmpi ne, %9, %c0_i32_3 : i32
    scf.if %10 {
      %c0 = arith.constant 0 : index
      %c0_4 = arith.constant 0 : index
      %11 = vector.load %arg8[%c0, %c0_4] : memref<128x128xbf16, #tpu.memory_space<vmem>>, vector<128x128xbf16>
      %c0_5 = arith.constant 0 : index
      %c0_6 = arith.constant 0 : index
      %12 = vector.load %arg3[%c0_5, %c0_6] : memref<128x128xbf16, #tpu.memory_space<vmem>>, vector<128x128xbf16>
      %cst = arith.constant dense<0.000000e+00> : vector<128x128xf32>
      %13 = tpu.matmul %11, %12, %cst {dimension_numbers = #tpu.dot_dimension_numbers<[1], [1], [0], [0], [0, 0, 1, 0], [], []>} : vector<128x128xbf16>, vector<128x128xbf16>, vector<128x128xf32> -> vector<128x128xf32>
      %14 = tpu.iota {dimensions = array<i32: 0>} : vector<128x128xi32>
      %15 = vector.broadcast %0 : i32 to vector<128x128xi32>
      %16 = arith.addi %15, %14 : vector<128x128xi32>
      %17 = tpu.iota {dimensions = array<i32: 1>} : vector<128x128xi32>
      %18 = vector.broadcast %1 : i32 to vector<128x128xi32>
      %19 = arith.addi %18, %17 : vector<128x128xi32>
      %20 = arith.cmpi sgt, %16, %19 : vector<128x128xi32>
      %cst_7 = arith.constant 0xFF800000 : f32
      %21 = vector.broadcast %cst_7 : f32 to vector<128x128xf32>
      %22 = arith.select %20, %13, %21 : vector<128x128xi1>, vector<128x128xf32>
      %23 = tpu.iota {dimensions = array<i32: 1>} : vector<128x128xi32>
      %24 = vector.broadcast %1 : i32 to vector<128x128xi32>
      %25 = arith.addi %24, %23 : vector<128x128xi32>
      %c0_8 = arith.constant 0 : index
      %c0_9 = arith.constant 0 : index
      %26 = vector.load %arg9[%c0_8, %c0_9] : memref<128x128xf32, #tpu.memory_space<vmem>>, vector<128x128xf32>
      %27 = tpu.concatenate %26, %22 in 1 : vector<128x128xf32>, vector<128x128xf32> -> vector<128x256xf32>
      %c0_10 = arith.constant 0 : index
      %c0_11 = arith.constant 0 : index
      %28 = vector.load %arg10[%c0_10, %c0_11] : memref<128x128xi32, #tpu.memory_space<vmem>>, vector<128x128xi32>
      %29 = tpu.concatenate %28, %25 in 1 : vector<128x128xi32>, vector<128x128xi32> -> vector<128x256xi32>
      %30 = tpu.iota {dimensions = array<i32: 1>} : vector<128x256xi32>
      %false = arith.constant false
      %31 = vector.broadcast %false : i1 to vector<128x256xi1>
      %cst_12 = arith.constant 0xFF800000 : f32
      %32 = vector.broadcast %cst_12 : f32 to vector<128x256xf32>
      %33 = arith.select %31, %32, %27 : vector<128x256xi1>, vector<128x256xf32>
      %cst_13 = arith.constant dense<0xFF800000> : vector<128xf32>
      %34 = vector.multi_reduction <maximumf>, %33, %cst_13 [1] : vector<128x256xf32> to vector<128xf32>
      %35 = vector.shape_cast %34 : vector<128xf32> to vector<128x1xf32>
      %36 = vector.broadcast %35 : vector<128x1xf32> to vector<128x256xf32>
      %37 = arith.cmpf oeq, %33, %36 : vector<128x256xf32>
      %cst_14 = arith.constant dense<true> : vector<128x256xi1>
      %38 = arith.xori %31, %cst_14 : vector<128x256xi1>
      %39 = arith.andi %37, %38 : vector<128x256xi1>
      %c256_i32 = arith.constant 256 : i32
      %40 = vector.broadcast %c256_i32 : i32 to vector<128x256xi32>
      %41 = arith.select %39, %30, %40 : vector<128x256xi1>, vector<128x256xi32>
      %cst_15 = arith.constant dense<2147483647> : vector<128xi32>
      %42 = vector.multi_reduction <minsi>, %41, %cst_15 [1] : vector<128x256xi32> to vector<128xi32>
      %43 = vector.shape_cast %42 : vector<128xi32> to vector<128x1xi32>
      %44 = vector.broadcast %43 : vector<128x1xi32> to vector<128x256xi32>
      %45 = arith.cmpi eq, %30, %44 : vector<128x256xi32>
      %c0_i32_16 = arith.constant 0 : i32
      %46 = vector.broadcast %c0_i32_16 : i32 to vector<128x256xi32>
      %47 = arith.select %45, %29, %46 : vector<128x256xi1>, vector<128x256xi32>
      %cst_17 = arith.constant dense<0> : vector<128xi32>
      %48 = vector.multi_reduction <add>, %47, %cst_17 [1] : vector<128x256xi32> to vector<128xi32>
      %49 = vector.shape_cast %48 : vector<128xi32> to vector<128x1xi32>
      %c0_18 = arith.constant 0 : index
      %c0_19 = arith.constant 0 : index
      %50 = vector.load %arg9[%c0_18, %c0_19] : memref<128x128xf32, #tpu.memory_space<vmem>>, vector<128x1xf32>
      tpu.vector_store %arg9[%c0_18, %c0_19], %35 {strides = array<i32>} : memref<128x128xf32, #tpu.memory_space<vmem>>, vector<128x1xf32>,
      %c0_20 = arith.constant 0 : index
      %c0_21 = arith.constant 0 : index
      %51 = vector.load %arg10[%c0_20, %c0_21] : memref<128x128xi32, #tpu.memory_space<vmem>>, vector<128x1xi32>
      tpu.vector_store %arg10[%c0_20, %c0_21], %49 {strides = array<i32>} : memref<128x128xi32, #tpu.memory_space<vmem>>, vector<128x1xi32>,
      %52 = arith.ori %31, %45 : vector<128x256xi1>
      %cst_22 = arith.constant 0xFF800000 : f32
      %53 = vector.broadcast %cst_22 : f32 to vector<128x256xf32>
      %54 = arith.select %52, %53, %27 : vector<128x256xi1>, vector<128x256xf32>
      %cst_23 = arith.constant dense<0xFF800000> : vector<128xf32>
      %55 = vector.multi_reduction <maximumf>, %54, %cst_23 [1] : vector<128x256xf32> to vector<128xf32>
      %56 = vector.shape_cast %55 : vector<128xf32> to vector<128x1xf32>
      %57 = vector.broadcast %56 : vector<128x1xf32> to vector<128x256xf32>
      %58 = arith.cmpf oeq, %54, %57 : vector<128x256xf32>
      %cst_24 = arith.constant dense<true> : vector<128x256xi1>
      %59 = arith.xori %52, %cst_24 : vector<128x256xi1>
      %60 = arith.andi %58, %59 : vector<128x256xi1>
      %c256_i32_25 = arith.constant 256 : i32
      %61 = vector.broadcast %c256_i32_25 : i32 to vector<128x256xi32>
      %62 = arith.select %60, %30, %61 : vector<128x256xi1>, vector<128x256xi32>
      %cst_26 = arith.constant dense<2147483647> : vector<128xi32>
      %63 = vector.multi_reduction <minsi>, %62, %cst_26 [1] : vector<128x256xi32> to vector<128xi32>
      %64 = vector.shape_cast %63 : vector<128xi32> to vector<128x1xi32>
      %65 = vector.broadcast %64 : vector<128x1xi32> to vector<128x256xi32>
      %66 = arith.cmpi eq, %30, %65 : vector<128x256xi32>
      %c0_i32_27 = arith.constant 0 : i32
      %67 = vector.broadcast %c0_i32_27 : i32 to vector<128x256xi32>
      %68 = arith.select %66, %29, %67 : vector<128x256xi1>, vector<128x256xi32>
      %cst_28 = arith.constant dense<0> : vector<128xi32>
      %69 = vector.multi_reduction <add>, %68, %cst_28 [1] : vector<128x256xi32> to vector<128xi32>
      %70 = vector.shape_cast %69 : vector<128xi32> to vector<128x1xi32>
      %c0_29 = arith.constant 0 : index
      %c1 = arith.constant 1 : index
      %71 = vector.load %arg9[%c0_29, %c1] : memref<128x128xf32, #tpu.memory_space<vmem>>, vector<128x1xf32>
      tpu.vector_store %arg9[%c0_29, %c1], %56 {strides = array<i32>} : memref<128x128xf32, #tpu.memory_space<vmem>>, vector<128x1xf32>,
      %c0_30 = arith.constant 0 : index
      %c1_31 = arith.constant 1 : index
      %72 = vector.load %arg10[%c0_30, %c1_31] : memref<128x128xi32, #tpu.memory_space<vmem>>, vector<128x1xi32>
      tpu.vector_store %arg10[%c0_30, %c1_31], %70 {strides = array<i32>} : memref<128x128xi32, #tpu.memory_space<vmem>>, vector<128x1xi32>,
      %73 = arith.ori %52, %66 : vector<128x256xi1>
      %cst_32 = arith.constant 0xFF800000 : f32
      %74 = vector.broadcast %cst_32 : f32 to vector<128x256xf32>
      %75 = arith.select %73, %74, %27 : vector<128x256xi1>, vector<128x256xf32>
      %cst_33 = arith.constant dense<0xFF800000> : vector<128xf32>
      %76 = vector.multi_reduction <maximumf>, %75, %cst_33 [1] : vector<128x256xf32> to vector<128xf32>
      %77 = vector.shape_cast %76 : vector<128xf32> to vector<128x1xf32>
      %78 = vector.broadcast %77 : vector<128x1xf32> to vector<128x256xf32>
      %79 = arith.cmpf oeq, %75, %78 : vector<128x256xf32>
      %cst_34 = arith.constant dense<true> : vector<128x256xi1>
      %80 = arith.xori %73, %cst_34 : vector<128x256xi1>
      %81 = arith.andi %79, %80 : vector<128x256xi1>
      %c256_i32_35 = arith.constant 256 : i32
      %82 = vector.broadcast %c256_i32_35 : i32 to vector<128x256xi32>
      %83 = arith.select %81, %30, %82 : vector<128x256xi1>, vector<128x256xi32>
      %cst_36 = arith.constant dense<2147483647> : vector<128xi32>
      %84 = vector.multi_reduction <minsi>, %83, %cst_36 [1] : vector<128x256xi32> to vector<128xi32>
      %85 = vector.shape_cast %84 : vector<128xi32> to vector<128x1xi32>
      %86 = vector.broadcast %85 : vector<128x1xi32> to vector<128x256xi32>
      %87 = arith.cmpi eq, %30, %86 : vector<128x256xi32>
      %c0_i32_37 = arith.constant 0 : i32
      %88 = vector.broadcast %c0_i32_37 : i32 to vector<128x256xi32>
      %89 = arith.select %87, %29, %88 : vector<128x256xi1>, vector<128x256xi32>
      %cst_38 = arith.constant dense<0> : vector<128xi32>
      %90 = vector.multi_reduction <add>, %89, %cst_38 [1] : vector<128x256xi32> to vector<128xi32>
      %91 = vector.shape_cast %90 : vector<128xi32> to vector<128x1xi32>
      %c0_39 = arith.constant 0 : index
      %c2 = arith.constant 2 : index
      %92 = vector.load %arg9[%c0_39, %c2] : memref<128x128xf32, #tpu.memory_space<vmem>>, vector<128x1xf32>
      tpu.vector_store %arg9[%c0_39, %c2], %77 {strides = array<i32>} : memref<128x128xf32, #tpu.memory_space<vmem>>, vector<128x1xf32>,
      %c0_40 = arith.constant 0 : index
      %c2_41 = arith.constant 2 : index
      %93 = vector.load %arg10[%c0_40, %c2_41] : memref<128x128xi32, #tpu.memory_space<vmem>>, vector<128x1xi32>
      tpu.vector_store %arg10[%c0_40, %c2_41], %91 {strides = array<i32>} : memref<128x128xi32, #tpu.memory_space<vmem>>, vector<128x1xi32>,
      %94 = arith.ori %73, %87 : vector<128x256xi1>
      %cst_42 = arith.constant 0xFF800000 : f32
      %95 = vector.broadcast %cst_42 : f32 to vector<128x256xf32>
      %96 = arith.select %94, %95, %27 : vector<128x256xi1>, vector<128x256xf32>
      %cst_43 = arith.constant dense<0xFF800000> : vector<128xf32>
      %97 = vector.multi_reduction <maximumf>, %96, %cst_43 [1] : vector<128x256xf32> to vector<128xf32>
      %98 = vector.shape_cast %97 : vector<128xf32> to vector<128x1xf32>
      %99 = vector.broadcast %98 : vector<128x1xf32> to vector<128x256xf32>
      %100 = arith.cmpf oeq, %96, %99 : vector<128x256xf32>
      %cst_44 = arith.constant dense<true> : vector<128x256xi1>
      %101 = arith.xori %94, %cst_44 : vector<128x256xi1>
      %102 = arith.andi %100, %101 : vector<128x256xi1>
      %c256_i32_45 = arith.constant 256 : i32
      %103 = vector.broadcast %c256_i32_45 : i32 to vector<128x256xi32>
      %104 = arith.select %102, %30, %103 : vector<128x256xi1>, vector<128x256xi32>
      %cst_46 = arith.constant dense<2147483647> : vector<128xi32>
      %105 = vector.multi_reduction <minsi>, %104, %cst_46 [1] : vector<128x256xi32> to vector<128xi32>
      %106 = vector.shape_cast %105 : vector<128xi32> to vector<128x1xi32>
      %107 = vector.broadcast %106 : vector<128x1xi32> to vector<128x256xi32>
      %108 = arith.cmpi eq, %30, %107 : vector<128x256xi32>
      %c0_i32_47 = arith.constant 0 : i32
      %109 = vector.broadcast %c0_i32_47 : i32 to vector<128x256xi32>
      %110 = arith.select %108, %29, %109 : vector<128x256xi1>, vector<128x256xi32>
      %cst_48 = arith.constant dense<0> : vector<128xi32>
      %111 = vector.multi_reduction <add>, %110, %cst_48 [1] : vector<128x256xi32> to vector<128xi32>
      %112 = vector.shape_cast %111 : vector<128xi32> to vector<128x1xi32>
      %c0_49 = arith.constant 0 : index
      %c3 = arith.constant 3 : index
      %113 = vector.load %arg9[%c0_49, %c3] : memref<128x128xf32, #tpu.memory_space<vmem>>, vector<128x1xf32>
      tpu.vector_store %arg9[%c0_49, %c3], %98 {strides = array<i32>} : memref<128x128xf32, #tpu.memory_space<vmem>>, vector<128x1xf32>,
      %c0_50 = arith.constant 0 : index
      %c3_51 = arith.constant 3 : index
      %114 = vector.load %arg10[%c0_50, %c3_51] : memref<128x128xi32, #tpu.memory_space<vmem>>, vector<128x1xi32>
      tpu.vector_store %arg10[%c0_50, %c3_51], %112 {strides = array<i32>} : memref<128x128xi32, #tpu.memory_space<vmem>>, vector<128x1xi32>,
      %c0_52 = arith.constant 0 : index
      %c0_53 = arith.constant 0 : index
      %115 = vector.load %arg9[%c0_52, %c0_53] : memref<128x128xf32, #tpu.memory_space<vmem>>, vector<128x4xf32>
      %c0_54 = arith.constant 0 : index
      %c0_55 = arith.constant 0 : index
      %116 = vector.load %arg6[%c0_54, %c0_55] : memref<128x4xf32, #tpu.memory_space<vmem>>, vector<128x4xf32>
      tpu.vector_store %arg6[%c0_54, %c0_55], %115 {strides = array<i32>} : memref<128x4xf32, #tpu.memory_space<vmem>>, vector<128x4xf32>,
      %c0_56 = arith.constant 0 : index
      %c0_57 = arith.constant 0 : index
      %117 = vector.load %arg10[%c0_56, %c0_57] : memref<128x128xi32, #tpu.memory_space<vmem>>, vector<128x4xi32>
      %c0_58 = arith.constant 0 : index
      %c0_59 = arith.constant 0 : index
      %118 = vector.load %arg7[%c0_58, %c0_59] : memref<128x4xi32, #tpu.memory_space<vmem>>, vector<128x4xi32>
      tpu.vector_store %arg7[%c0_58, %c0_59], %117 {strides = array<i32>} : memref<128x4xi32, #tpu.memory_space<vmem>>, vector<128x4xi32>,
    } else {
    }
    return
  }
  func.func @transform_0(%arg0: i32, %arg1: i32) -> (i32, i32) {
    %c0_i32 = arith.constant 0 : i32
    %c0_i32_0 = arith.constant 0 : i32
    return %arg0, %c0_i32 : i32, i32
  }
  func.func @transform_1(%arg0: i32, %arg1: i32) -> (i32, i32) {
    %0 = arith.minsi %arg0, %arg1 : i32
    %c0_i32 = arith.constant 0 : i32
    %c0_i32_0 = arith.constant 0 : i32
    return %0, %c0_i32 : i32, i32
  }
  func.func @transform_2(%arg0: i32, %arg1: i32) -> (i32, i32) {
    %c0_i32 = arith.constant 0 : i32
    %c0_i32_0 = arith.constant 0 : i32
    %c0_i32_1 = arith.constant 0 : i32
    return %c0_i32, %c0_i32_0 : i32, i32
  }
  func.func @transform_3(%arg0: i32, %arg1: i32) -> (i32, i32) {
    %c0_i32 = arith.constant 0 : i32
    %c0_i32_0 = arith.constant 0 : i32
    %c0_i32_1 = arith.constant 0 : i32
    return %c0_i32, %c0_i32_0 : i32, i32
  }
  func.func @transform_4(%arg0: i32, %arg1: i32) -> (i32, i32) {
    %c0_i32 = arith.constant 0 : i32
    %c0_i32_0 = arith.constant 0 : i32
    return %arg0, %c0_i32 : i32, i32
  }
  func.func @transform_5(%arg0: i32, %arg1: i32) -> (i32, i32) {
    %c0_i32 = arith.constant 0 : i32
    %c0_i32_0 = arith.constant 0 : i32
    return %arg0, %c0_i32 : i32, i32
  }
}

</mosaic_0001>

<bundles_post_ra>
// kernel: rough_scorer_forward.1
= control target key start
LH: loop header
LB: loop body
LE: loop exit
PB: predicated region body
PF: predicated region fallthrough
CT: control target
= control target key end

     0   :  { %s10343_s2 = inlined_call_operand.vmem [shape: bf16[128,128], index: 2, kind: input, shape index: {}]   ;;  %s10344_s3 = inlined_call_operand.vmem [shape: f32[1,128], index: 3, kind: input, shape index: {}]   ;;  %s10345_s0 = inlined_call_operand.vmem [shape: bf16[128,128], index: 0, kind: input, shape index: {}, may-alias: {0,1}]   ;;  %s10346_s1 = inlined_call_operand.vmem [shape: bf16[128,128], index: 1, kind: input, shape index: {}, may-alias: {0,1}]   ;;  %s10347_s4 = inlined_call_operand.vmem [shape: f32[128,4], index: 4, kind: output, shape index: {0}]   ;;  %s10348_s5 = inlined_call_operand.vmem [shape: s32[128,4], index: 5, kind: output, shape index: {1}]  }
   0x1   :  { %v7174_v0 = vld [vmem:[%s10343_s2 + $0x38] sm:$0xff]  ;;  %v7173_v1 = vld [vmem:[%s10343_s2 + $0x30] sm:$0xff]  ;;  %v7172_v2 = vld [vmem:[%s10343_s2 + $0x28] sm:$0xff] }
   0x2   :  { %157 = vmatpush.bf16.msra.mxu0 %v7174_v0  ;;  %7254 = vmatpush.bf16.msra.mxu3 %v7174_v0  ;;  %v7171_v3 = vld [vmem:[%s10343_s2 + $0x20] sm:$0xff]  ;;  %v7170_v4 = vld [vmem:[%s10343_s2 + $0x18] sm:$0xff]  ;;  %v7169_v5 = vld [vmem:[%s10343_s2 + $0x10] sm:$0xff] }
   0x3   :  { %v7168_v6 = vld [vmem:[%s10343_s2 + $0x8] sm:$0xff]  ;;  %v7167_v7 = vld [vmem:[%s10343_s2] sm:$0xff]  ;;  %v7165_v11 = vld [vmem:[%s10345_s0 + $0x30] sm:$0xff] }
   0x4   :  { %v7159_v8 = vld [vmem:[%s10345_s0] sm:$0xff]  ;;  %v7164_v9 = vld [vmem:[%s10345_s0 + $0x28] sm:$0xff]  ;;  %v7161_v12 = vld [vmem:[%s10345_s0 + $0x10] sm:$0xff] }
   0x5   :  { %v7160_v10 = vld [vmem:[%s10345_s0 + $0x8] sm:$0xff]  ;;  %v7166_v13 = vld [vmem:[%s10345_s0 + $0x38] sm:$0xff]  ;;  %v7205_v15 = vld [vmem:[%s10346_s1 + $0x30] sm:$0xff] }
   0x6   :  { %158 = vmatpush.bf16.msra.mxu0 %v7173_v1  ;;  %7255 = vmatpush.bf16.msra.mxu3 %v7173_v1  ;;  %v7206_v14 = vld [vmem:[%s10346_s1 + $0x38] sm:$0xff]  ;;  %v7204_v17 = vld [vmem:[%s10346_s1 + $0x28] sm:$0xff]  ;;  %v7203_v18 = vld [vmem:[%s10346_s1 + $0x20] sm:$0xff] }
   0x7   :  { %3698 = vmatpush.bf16.xpose.msra.mxu1 %v7206_v14  ;;  %7262 = vmatpush.bf16.xpose.msra.mxu2 %v7206_v14  ;;  %v7162_v16 = vld [vmem:[%s10345_s0 + $0x18] sm:$0xff]  ;;  %v7163_v19 = vld [vmem:[%s10345_s0 + $0x20] sm:$0xff]  ;;  %v7201_v21 = vld [vmem:[%s10346_s1 + $0x10] sm:$0xff] }
   0x8   :  { %v7202_v20 = vld [vmem:[%s10346_s1 + $0x18] sm:$0xff]  ;;  %v7200_v22 = vld [vmem:[%s10346_s1 + $0x8] sm:$0xff]  ;;  %v7199_v23 = vld [vmem:[%s10346_s1] sm:$0xff] }
   0x9   :  { %v7280_v25 = vld [vmem:[%s10344_s3] ss:$0 sm:$0xff] }
   0xa   :  { %159 = vmatpush.bf16.msra.mxu0 %v7172_v2  ;;  %7256 = vmatpush.bf16.msra.mxu3 %v7172_v2 }
   0xe   :  { %160 = vmatpush.bf16.msra.mxu0 %v7171_v3  ;;  %7257 = vmatpush.bf16.msra.mxu3 %v7171_v3 }
   0xf   :  { %3699 = vmatpush.bf16.xpose.msra.mxu1 %v7205_v15  ;;  %7264 = vmatpush.bf16.xpose.msra.mxu2 %v7205_v15 }
  0x12   :  { %161 = vmatpush.bf16.msra.mxu0 %v7170_v4  ;;  %7258 = vmatpush.bf16.msra.mxu3 %v7170_v4 }
  0x16   :  { %162 = vmatpush.bf16.msra.mxu0 %v7169_v5  ;;  %7259 = vmatpush.bf16.msra.mxu3 %v7169_v5 }
  0x17   :  { %3700 = vmatpush.bf16.xpose.msra.mxu1 %v7204_v17  ;;  %7266 = vmatpush.bf16.xpose.msra.mxu2 %v7204_v17 }
  0x1a   :  { %163 = vmatpush.bf16.msra.mxu0 %v7168_v6  ;;  %7260 = vmatpush.bf16.msra.mxu3 %v7168_v6 }
  0x1e   :  { %164 = vmatpush.bf16.msra.mxu0 %v7167_v7  ;;  %7261 = vmatpush.bf16.msra.mxu3 %v7167_v7  ;;  %v254_v7 = vlaneseq }
  0x1f   :  { %3701 = vmatpush.bf16.xpose.msra.mxu1 %v7203_v18  ;;  %7268 = vmatpush.bf16.xpose.msra.mxu2 %v7203_v18 }
  0x21   :  { %165 = vmatmul.bf16.vlgmr.msra.gmra.mxu0 %v7159_v8  ;;  %190 = vmatmul.bf16.vlgmr.msra.gmra.mxu3 %v7164_v9  ;;  %v7452_v8 = vshrl.u32 %v254_v7, 7 }
  0x22   :  { %7263 = vmatpush.bf16.xpose.msrb.mxu3 %v7206_v14 }
  0x23   :  { %10544 = vst [vmem:[#allocation5_spill] sm:$0xff] %v7452_v8  ;;  %v7464_v14 = vadd.s32 24, %v7452_v8 }
  0x24   :  { %288 = vst [vmem:[#allocation4] sm:$0xff] %v7452_v8 }
  0x25   :  { %10547 = vst [vmem:[#allocation8_spill] sm:$0xff] %v7464_v14 }
  0x26   :  { %291 = vst [vmem:[#allocation4 + $0x18] sm:$0xff] %v7464_v14 }
  0x27   :  { %3702 = vmatpush.bf16.xpose.msra.mxu1 %v7202_v20  ;;  %7270 = vmatpush.bf16.xpose.msra.mxu2 %v7202_v20 }
  0x2a   :  { %7265 = vmatpush.bf16.xpose.msrb.mxu3 %v7205_v15  ;;  %v7467_v15 = vand.u32 127, %v254_v7 }
  0x2c   :  { %vm3785_vm0 = vcmp.gt.s32.totalorder %v7452_v8, %v7467_v15  ;;  %vm3788_vm3 = vcmp.gt.s32.totalorder %v7464_v14, %v7467_v15 }
  0x2f   :  { %3703 = vmatpush.bf16.xpose.msra.mxu1 %v7201_v21  ;;  %7272 = vmatpush.bf16.xpose.msra.mxu2 %v7201_v21 }
  0x31   :  { %170 = vmatmul.bf16.gmra.mxu0 %v7160_v10  ;;  %195 = vmatmul.bf16.gmra.mxu3 %v7165_v11  ;;  %v7345_v11 = vmov -inf  }
  0x32   :  { %7267 = vmatpush.bf16.xpose.msrb.mxu3 %v7204_v17  ;;  %238 = vst [vmem:[#allocation3] sm:$0xff] %v7345_v11 }
  0x33   :  { %239 = vst [vmem:[#allocation3 + $0x8] sm:$0xff] %v7345_v11 }
  0x34   :  { %240 = vst [vmem:[#allocation3 + $0x10] sm:$0xff] %v7345_v11 }
  0x35   :  { %241 = vst [vmem:[#allocation3 + $0x18] sm:$0xff] %v7345_v11 }
  0x36   :  { %242 = vst [vmem:[#allocation3 + $0x20] sm:$0xff] %v7345_v11 }
  0x37   :  { %3704 = vmatpush.bf16.xpose.msra.mxu1 %v7200_v22  ;;  %7274 = vmatpush.bf16.xpose.msra.mxu2 %v7200_v22  ;;  %243 = vst [vmem:[#allocation3 + $0x28] sm:$0xff] %v7345_v11 }
  0x38   :  { %244 = vst [vmem:[#allocation3 + $0x30] sm:$0xff] %v7345_v11 }
  0x39   :  { %245 = vst [vmem:[#allocation3 + $0x38] sm:$0xff] %v7345_v11 }
  0x3a   :  { %7269 = vmatpush.bf16.xpose.msrb.mxu3 %v7203_v18  ;;  %246 = vst [vmem:[#allocation3 + $0x40] sm:$0xff] %v7345_v11 }
  0x3b   :  { %247 = vst [vmem:[#allocation3 + $0x48] sm:$0xff] %v7345_v11 }
  0x3c   :  { %248 = vst [vmem:[#allocation3 + $0x50] sm:$0xff] %v7345_v11 }
  0x3d   :  { %249 = vst [vmem:[#allocation3 + $0x58] sm:$0xff] %v7345_v11 }
  0x3e   :  { %250 = vst [vmem:[#allocation3 + $0x60] sm:$0xff] %v7345_v11 }
  0x3f   :  { %3705 = vmatpush.bf16.xpose.msra.mxu1 %v7199_v23  ;;  %7276 = vmatpush.bf16.xpose.msra.mxu2 %v7199_v23  ;;  %251 = vst [vmem:[#allocation3 + $0x68] sm:$0xff] %v7345_v11 }
  0x40   :  { %252 = vst [vmem:[#allocation3 + $0x70] sm:$0xff] %v7345_v11 }
  0x41   :  { %175 = vmatmul.bf16.gmra.mxu0 %v7161_v12  ;;  %200 = vmatmul.bf16.gmra.mxu3 %v7166_v13  ;;  %v7456_v12 = vadd.s32 8, %v7452_v8  ;;  %253 = vst [vmem:[#allocation3 + $0x78] sm:$0xff] %v7345_v11  ;;  %v7459_v13 = vadd.s32 16, %v7452_v8 }
  0x42   :  { %7271 = vmatpush.bf16.xpose.msrb.mxu3 %v7202_v20 }
  0x43   :  { %10545 = vst [vmem:[#allocation6_spill] sm:$0xff] %v7456_v12  ;;  %vm3786_vm1 = vcmp.gt.s32.totalorder %v7456_v12, %v7467_v15  ;;  %vm3787_vm2 = vcmp.gt.s32.totalorder %v7459_v13, %v7467_v15 }
  0x44   :  { %10546 = vst [vmem:[#allocation7_spill] sm:$0xff] %v7459_v13 }
  0x45   :  { %289 = vst [vmem:[#allocation4 + $0x8] sm:$0xff] %v7456_v12 }
  0x46   :  { %290 = vst [vmem:[#allocation4 + $0x10] sm:$0xff] %v7459_v13 }
  0x4a   :  { %7273 = vmatpush.bf16.xpose.msrb.mxu3 %v7201_v21 }
  0x51   :  { %180 = vmatmul.bf16.gmra.mxu0 %v7162_v16  ;;  %v7470_v16 = vadd.s32 32, %v7452_v8 }
  0x52   :  { %7275 = vmatpush.bf16.xpose.msrb.mxu3 %v7200_v22  ;;  %v269_v22 = vadd.s32 112, %v7452_v8 }
  0x53   :  { %10548 = vst [vmem:[#allocation9_spill] sm:$0xff] %v7470_v16  ;;  %vm3789_vm4 = vcmp.gt.s32.totalorder %v7470_v16, %v7467_v15 }
  0x54   :  { %292 = vst [vmem:[#allocation4 + $0x20] sm:$0xff] %v7470_v16  ;;  %vm3799_vm6 = vcmp.gt.s32.totalorder %v269_v22, %v7467_v15 }
  0x55   :  { %302 = vst [vmem:[#allocation4 + $0x70] sm:$0xff] %v269_v22 }
  0x5a   :  { %7277 = vmatpush.bf16.xpose.msrb.mxu3 %v7199_v23  ;;  %v270_v23 = vadd.s32 120, %v7452_v8 }
  0x5c   :  { %303 = vst [vmem:[#allocation4 + $0x78] sm:$0xff] %v270_v23  ;;  %vm3800_vm7 = vcmp.gt.s32.totalorder %v270_v23, %v7467_v15 }
  0x61   :  { %185 = vmatmul.bf16.gmra.mxu0 %v7163_v19  ;;  %v7479_v19 = vadd.s32 40, %v7452_v8 }
  0x63   :  { %10550 = vst [vmem:[#allocation11_spill] sm:$0xff] %v7479_v19  ;;  %vm3790_vm5 = vcmp.gt.s32.totalorder %v7479_v19, %v7467_v15 }
  0x64   :  { %293 = vst [vmem:[#allocation4 + $0x28] sm:$0xff] %v7479_v19 }
  0x9e   :  { %v166_v24 = vpop.f32.mrf.mxu0 }
  0x9f   :  { %v167_v28 = vadd.f32 %v7280_v25, %v166_v24 }
  0xa4   :  { %v191_v26 = vpop.f32.mrf.mxu3 }
  0xa5   :  { %v192_v32 = vadd.f32 %v7280_v25, %v191_v26  ;;  %v261_v26 = vadd.s32 48, %v7452_v8 }
  0xa6   :  { %v168_v27 = vpop.f32.mrf.mxu0 }
  0xa7   :  { %v169_v29 = vadd.f32 %v7280_v25, %v168_v27  ;;  %294 = vst [vmem:[#allocation4 + $0x30] sm:$0xff] %v261_v26  ;;  %vm3791_vm8 = vcmp.gt.s32.totalorder %v261_v26, %v7467_v15 }
  0xa9   :  { %v7210_v30 = vpack.c.bf16 %v169_v29, %v167_v28  ;;  %v262_v28 = vadd.s32 56, %v7452_v8 }
  0xab   :  { %7211 = vst [vmem:[#allocation2 + $0x30] sm:$0xff] %v7210_v30   ;;  %vm3792_vm9 = vcmp.gt.s32.totalorder %v262_v28, %v7467_v15 }
  0xac   :  { %v193_v31 = vpop.f32.mrf.mxu3  ;;  %295 = vst [vmem:[#allocation4 + $0x38] sm:$0xff] %v262_v28 }
  0xad   :  { %v194_v33 = vadd.f32 %v7280_v25, %v193_v31 }
  0xae   :  { %v171_v34 = vpop.f32.mrf.mxu0 }
  0xaf   :  { %v7235_v35 = vpack.c.bf16 %v194_v33, %v192_v32  ;;  %v172_v39 = vadd.f32 %v7280_v25, %v171_v34  ;;  %v263_v32 = vadd.s32 64, %v7452_v8 }
  0xb1   :  { %7251 = vst [vmem:[#allocation2 + $0x20] sm:$0xff] %v7235_v35   ;;  %v264_v35 = vadd.s32 72, %v7452_v8  ;;  %vm3793_vm10 = vcmp.gt.s32.totalorder %v263_v32, %v7467_v15 }
  0xb2   :  { %v7191_v36 = vld [vmem:[#allocation2 + $0x30] sm:$0xff]  ;;  %296 = vst [vmem:[#allocation4 + $0x40] sm:$0xff] %v263_v32 }
  0xb3   :  { %3706 = vmatmul.bf16.vlgmr.msra.gmra.mxu1 %v7191_v36  ;;  %297 = vst [vmem:[#allocation4 + $0x48] sm:$0xff] %v264_v35  ;;  %vm3794_vm11 = vcmp.gt.s32.totalorder %v264_v35, %v7467_v15 }
  0xb4   :  { %v196_v37 = vpop.f32.mrf.mxu3 }
  0xb5   :  { %v197_v43 = vadd.f32 %v7280_v25, %v196_v37 }
  0xb6   :  { %v173_v38 = vpop.f32.mrf.mxu0 }
  0xb7   :  { %v174_v40 = vadd.f32 %v7280_v25, %v173_v38  ;;  %v265_v38 = vadd.s32 80, %v7452_v8 }
  0xb8   :  { %v7196_v9 = vld [vmem:[#allocation2 + $0x20] sm:$0xff] }
  0xb9   :  { %v7215_v41 = vpack.c.bf16 %v174_v40, %v172_v39  ;;  %298 = vst [vmem:[#allocation4 + $0x50] sm:$0xff] %v265_v38  ;;  %vm3795_vm12 = vcmp.gt.s32.totalorder %v265_v38, %v7467_v15 }
  0xbb   :  { %7247 = vst [vmem:[#allocation2] sm:$0xff] %v7215_v41  }
  0xbc   :  { %v198_v42 = vpop.f32.mrf.mxu3 }
  0xbd   :  { %v199_v44 = vadd.f32 %v7280_v25, %v198_v42  ;;  %v266_v42 = vadd.s32 88, %v7452_v8 }
  0xbe   :  { %v176_v45 = vpop.f32.mrf.mxu0 }
  0xbf   :  { %v7240_v46 = vpack.c.bf16 %v199_v44, %v197_v43  ;;  %v177_v50 = vadd.f32 %v7280_v25, %v176_v45  ;;  %299 = vst [vmem:[#allocation4 + $0x58] sm:$0xff] %v266_v42  ;;  %vm3796_vm13 = vcmp.gt.s32.totalorder %v266_v42, %v7467_v15 }
  0xc1   :  { %7252 = vst [vmem:[#allocation2 + $0x28] sm:$0xff] %v7240_v46   ;;  %v267_v46 = vadd.s32 96, %v7452_v8 }
  0xc2   :  { %v7192_v47 = vld [vmem:[#allocation2] sm:$0xff] }
  0xc3   :  { %3711 = vmatmul.bf16.gmra.mxu1 %v7192_v47  ;;  %300 = vst [vmem:[#allocation4 + $0x60] sm:$0xff] %v267_v46  ;;  %vm3797_vm14 = vcmp.gt.s32.totalorder %v267_v46, %v7467_v15 }
  0xc4   :  { %v201_v48 = vpop.f32.mrf.mxu3 }
  0xc5   :  { %v202_v54 = vadd.f32 %v7280_v25, %v201_v48 }
  0xc6   :  { %v178_v49 = vpop.f32.mrf.mxu0 }
  0xc7   :  { %v179_v51 = vadd.f32 %v7280_v25, %v178_v49  ;;  %v268_v49 = vadd.s32 104, %v7452_v8 }
  0xc8   :  { %v7197_v10 = vld [vmem:[#allocation2 + $0x28] sm:$0xff] }
  0xc9   :  { %v7220_v52 = vpack.c.bf16 %v179_v51, %v177_v50  ;;  %301 = vst [vmem:[#allocation4 + $0x68] sm:$0xff] %v268_v49  ;;  %vm3798_vm15 = vcmp.gt.s32.totalorder %v268_v49, %v7467_v15 }
  0xcb   :  { %7248 = vst [vmem:[#allocation2 + $0x18] sm:$0xff] %v7220_v52  }
  0xcc   :  { %v203_v53 = vpop.f32.mrf.mxu3 }
  0xcd   :  { %v204_v55 = vadd.f32 %v7280_v25, %v203_v53 }
  0xce   :  { %v181_v56 = vpop.f32.mrf.mxu0 }
  0xcf   :  { %v7245_v57 = vpack.c.bf16 %v204_v55, %v202_v54  ;;  %v182_v59 = vadd.f32 %v7280_v25, %v181_v56 }
  0xd1   :  { %7253 = vst [vmem:[#allocation2 + $0x38] sm:$0xff] %v7245_v57  }
  0xd2   :  { %v7193_v58 = vld [vmem:[#allocation2 + $0x18] sm:$0xff] }
  0xd3   :  { %3716 = vmatmul.bf16.gmra.mxu1 %v7193_v58 }
  0xd6   :  { %v183_v60 = vpop.f32.mrf.mxu0 }
  0xd7   :  { %v184_v61 = vadd.f32 %v7280_v25, %v183_v60  ;;  %v7558_v60 = vadd.s32 128, %v7467_v15 }
  0xd8   :  { %v7198_v62 = vld [vmem:[#allocation2 + $0x38] sm:$0xff] }
  0xd9   :  { %v7225_v63 = vpack.c.bf16 %v184_v61, %v182_v59  ;;  %3741 = vmatmul.bf16.vlgmr.msrb.gmra.mxu3 %v7198_v62 }
  0xdb   :  { %7249 = vst [vmem:[#allocation2 + $0x10] sm:$0xff] %v7225_v63  }
  0xde   :  { %v186_v0 = vpop.f32.mrf.mxu0 }
  0xdf   :  { %v187_v2 = vadd.f32 %v7280_v25, %v186_v0 }
  0xe2   :  { %v7194_v1 = vld [vmem:[#allocation2 + $0x10] sm:$0xff] }
  0xe3   :  { %3721 = vmatmul.bf16.vlgmr.msra.gmra.mxu2 %v7194_v1 }
  0xe6   :  { %v188_v3 = vpop.f32.mrf.mxu0 }
  0xe7   :  { %v189_v4 = vadd.f32 %v7280_v25, %v188_v3 }
  0xe9   :  { %v7230_v5 = vpack.c.bf16 %v189_v4, %v187_v2 }
  0xeb   :  { %7250 = vst [vmem:[#allocation2 + $0x8] sm:$0xff] %v7230_v5  }
  0xf2   :  { %v7195_v6 = vld [vmem:[#allocation2 + $0x8] sm:$0xff] }
  0xf3   :  { %3726 = vmatmul.bf16.gmra.mxu2 %v7195_v6 }
 0x103   :  { %3731 = vmatmul.bf16.gmra.mxu2 %v7196_v9 }
 0x113   :  { %3736 = vmatmul.bf16.gmra.mxu2 %v7197_v10 }
 0x130   :  { %v3707_v17 = vpop.f32.mrf.mxu1 }
 0x131   :  { %v7475_v18 = vsel %vm3785_vm0, %v3707_v17, -inf  ;;  %vm4490_vm0 = vcmask 7168  }
 0x132   :  { %10549 = vst [vmem:[#allocation10_spill] sm:$0xff] %v7475_v18  ;;  %3851 = vmax.xlane.f32.xlu0 %v7475_v18 }
 0x138   :  { %v3709_v20 = vpop.f32.mrf.mxu1 }
 0x139   :  { %v7484_v21 = vsel %vm3786_vm1, %v3709_v20, -inf }
 0x13a   :  { %10551 = vst [vmem:[#allocation12_spill] sm:$0xff] %v7484_v21  ;;  %3854 = vmax.xlane.f32.xlu0 %v7484_v21 }
 0x140   :  { %v3712_v24 = vpop.f32.mrf.mxu1 }
 0x141   :  { %v7491_v25 = vsel %vm3787_vm2, %v3712_v24, -inf }
 0x142   :  { %10552 = vst [vmem:[#allocation13_spill] sm:$0xff] %v7491_v25  ;;  %3857 = vmax.xlane.f32.xlu1 %v7491_v25 }
 0x148   :  { %v3714_v27 = vpop.f32.mrf.mxu1 }
 0x149   :  { %v7498_v29 = vsel %vm3788_vm3, %v3714_v27, -inf }
 0x14a   :  { %10553 = vst [vmem:[#allocation14_spill] sm:$0xff] %v7498_v29  ;;  %3860 = vmax.xlane.f32.xlu1 %v7498_v29 }
 0x150   :  { %v3717_v30 = vpop.f32.mrf.mxu1 }
 0x151   :  { %v7503_v31 = vsel %vm3789_vm4, %v3717_v30, -inf }
 0x152   :  { %10554 = vst [vmem:[#allocation15_spill] sm:$0xff] %v7503_v31  ;;  %3863 = vmax.xlane.f32.xlu2 %v7503_v31 }
 0x158   :  { %v3719_v33 = vpop.f32.mrf.mxu1 }
 0x159   :  { %v7509_v34 = vsel %vm3790_vm5, %v3719_v33, -inf }
 0x15a   :  { %10555 = vst [vmem:[#allocation16_spill] sm:$0xff] %v7509_v34  ;;  %3866 = vmax.xlane.f32.xlu2 %v7509_v34 }
 0x15c   :  { %v3742_v36 = vpop.f32.mrf.mxu3 }
 0x15d   :  { %v7514_v37 = vsel %vm3799_vm6, %v3742_v36, -inf }
 0x15e   :  { %10556 = vst [vmem:[#allocation17_spill] sm:$0xff] %v7514_v37 }
 0x162   :  { %3893 = vmax.xlane.f32.xlu2 %v7514_v37 }
 0x164   :  { %v3744_v39 = vpop.f32.mrf.mxu3 }
 0x165   :  { %v7519_v40 = vsel %vm3800_vm7, %v3744_v39, -inf }
 0x166   :  { %10557 = vst [vmem:[#allocation18_spill] sm:$0xff] %v7519_v40  ;;  %v3722_v41 = vpop.f32.mrf.mxu2  ;;  %3896 = vmax.xlane.f32.xlu0 %v7519_v40 }
 0x167   :  { %v7524_v43 = vsel %vm3791_vm8, %v3722_v41, -inf }
 0x168   :  { %10558 = vst [vmem:[#allocation19_spill] sm:$0xff] %v7524_v43 }
 0x16e   :  { %v3724_v44 = vpop.f32.mrf.mxu2  ;;  %3869 = vmax.xlane.f32.xlu0 %v7524_v43 }
 0x16f   :  { %v7527_v45 = vsel %vm3792_vm9, %v3724_v44, -inf }
 0x170   :  { %10559 = vst [vmem:[#allocation20_spill] sm:$0xff] %v7527_v45  ;;  %3872 = vmax.xlane.f32.xlu1 %v7527_v45 }
 0x176   :  { %v3727_v47 = vpop.f32.mrf.mxu2 }
 0x177   :  { %v7533_v48 = vsel %vm3793_vm10, %v3727_v47, -inf }
 0x178   :  { %10560 = vst [vmem:[#allocation21_spill] sm:$0xff] %v7533_v48  ;;  %3875 = vmax.xlane.f32.xlu2 %v7533_v48 }
 0x17e   :  { %v3729_v50 = vpop.f32.mrf.mxu2 }
 0x17f   :  { %v7538_v51 = vsel %vm3794_vm11, %v3729_v50, -inf }
 0x180   :  { %10561 = vst [vmem:[#allocation22_spill] sm:$0xff] %v7538_v51  ;;  %3878 = vmax.xlane.f32.xlu0 %v7538_v51 }
 0x186   :  { %v3732_v52 = vpop.f32.mrf.mxu2 }
 0x187   :  { %v7542_v53 = vsel %vm3795_vm12, %v3732_v52, -inf }
 0x188   :  { %10562 = vst [vmem:[#allocation23_spill] sm:$0xff] %v7542_v53  ;;  %3881 = vmax.xlane.f32.xlu1 %v7542_v53 }
 0x18e   :  { %v3734_v54 = vpop.f32.mrf.mxu2 }
 0x18f   :  { %v7546_v55 = vsel %vm3796_vm13, %v3734_v54, -inf }
 0x190   :  { %10563 = vst [vmem:[#allocation24_spill] sm:$0xff] %v7546_v55  ;;  %3884 = vmax.xlane.f32.xlu2 %v7546_v55 }
 0x196   :  { %v3737_v56 = vpop.f32.mrf.mxu2 }
 0x197   :  { %v7550_v57 = vsel %vm3797_vm14, %v3737_v56, -inf }
 0x198   :  { %10564 = vst [vmem:[#allocation25_spill] sm:$0xff] %v7550_v57  ;;  %3887 = vmax.xlane.f32.xlu0 %v7550_v57 }
 0x19e   :  { %v3739_v58 = vpop.f32.mrf.mxu2 }
 0x19f   :  { %v7554_v59 = vsel %vm3798_vm15, %v3739_v58, -inf }
 0x1a0   :  { %10565 = vst [vmem:[#allocation26_spill] sm:$0xff] %v7554_v59  ;;  %3890 = vmax.xlane.f32.xlu1 %v7554_v59 }
 0x1a5   :  { %v3852_v61 = vpop.xlane.xlu0 %3851 }
 0x1a6   :  { %vm7281_vm1 = vcmp.eq.f32.partialorder %v3852_v61, -inf  ;;  %vm3899_vm2 = vcmp.eq.f32.partialorder %v7475_v18, %v3852_v61  ;;  %4491 = vst.msk [vmem:[#allocation3] sm:$0xff] %vm4490_vm0, %v3852_v61 }
 0x1a7   :  { %v3930_v62 = vsel %vm7281_vm1, %v7467_v15, 256  ;;  %v3931_v63 = vsel %vm3899_vm2, %v7558_v60, 256 }
 0x1a8   :  { %vm3962_vm3 = vcmp.lt.s32.totalorder %v3930_v62, %v3931_v63 }
 0x1a9   :  { %v7564_v0 = vsel %vm3962_vm3, %v3930_v62, %v3931_v63 }
 0x1aa   :  { %v3965_v1 = vshra.s32 %v7564_v0, 16 }
 0x1ac   :  { %v7567_v2 = vcvt.s32.f32 %v3965_v1 }
 0x1ad   :  { %v3855_v3 = vpop.xlane.xlu0 %3854 }
 0x1ae   :  { %vm7282_vm4 = vcmp.eq.f32.partialorder %v3855_v3, -inf  ;;  %vm3901_vm5 = vcmp.eq.f32.partialorder %v7484_v21, %v3855_v3  ;;  %4492 = vst.msk [vmem:[#allocation3 + $0x8] sm:$0xff] %vm4490_vm0, %v3855_v3  ;;  %3968 = vmin.xlane.f32.xlu1 %v7567_v2 }
 0x1af   :  { %v3932_v4 = vsel %vm7282_vm4, %v7467_v15, 256  ;;  %v3933_v5 = vsel %vm3901_vm5, %v7558_v60, 256 }
 0x1b0   :  { %vm3978_vm6 = vcmp.lt.s32.totalorder %v3932_v4, %v3933_v5 }
 0x1b1   :  { %v7574_v6 = vsel %vm3978_vm6, %v3932_v4, %v3933_v5 }
 0x1b2   :  { %v3981_v7 = vshra.s32 %v7574_v6, 16 }
 0x1b4   :  { %v7577_v9 = vcvt.s32.f32 %v3981_v7 }
 0x1b5   :  { %v3858_v10 = vpop.xlane.xlu1 %3857 }
 0x1b6   :  { %vm7283_vm7 = vcmp.eq.f32.partialorder %v3858_v10, -inf  ;;  %vm3903_vm8 = vcmp.eq.f32.partialorder %v7491_v25, %v3858_v10  ;;  %4493 = vst.msk [vmem:[#allocation3 + $0x10] sm:$0xff] %vm4490_vm0, %v3858_v10  ;;  %3984 = vmin.xlane.f32.xlu0 %v7577_v9 }
 0x1b7   :  { %v3934_v11 = vsel %vm7283_vm7, %v7467_v15, 256  ;;  %v3935_v17 = vsel %vm3903_vm8, %v7558_v60, 256 }
 0x1b8   :  { %vm3994_vm9 = vcmp.lt.s32.totalorder %v3934_v11, %v3935_v17 }
 0x1b9   :  { %v7584_v20 = vsel %vm3994_vm9, %v3934_v11, %v3935_v17 }
 0x1ba   :  { %v3997_v22 = vshra.s32 %v7584_v20, 16 }
 0x1bc   :  { %v7587_v23 = vcvt.s32.f32 %v3997_v22 }
 0x1bd   :  { %v3861_v24 = vpop.xlane.xlu1 %3860 }
 0x1be   :  { %vm7284_vm10 = vcmp.eq.f32.partialorder %v3861_v24, -inf  ;;  %vm3905_vm11 = vcmp.eq.f32.partialorder %v7498_v29, %v3861_v24  ;;  %4494 = vst.msk [vmem:[#allocation3 + $0x18] sm:$0xff] %vm4490_vm0, %v3861_v24  ;;  %4000 = vmin.xlane.f32.xlu2 %v7587_v23 }
 0x1bf   :  { %v3936_v26 = vsel %vm7284_vm10, %v7467_v15, 256  ;;  %v3937_v27 = vsel %vm3905_vm11, %v7558_v60, 256 }
 0x1c0   :  { %vm4010_vm12 = vcmp.lt.s32.totalorder %v3936_v26, %v3937_v27 }
 0x1c1   :  { %v7594_v28 = vsel %vm4010_vm12, %v3936_v26, %v3937_v27 }
 0x1c2   :  { %v4013_v30 = vshra.s32 %v7594_v28, 16 }
 0x1c4   :  { %v7597_v32 = vcvt.s32.f32 %v4013_v30 }
 0x1c5   :  { %v3864_v33 = vpop.xlane.xlu2 %3863 }
 0x1c6   :  { %vm7285_vm13 = vcmp.eq.f32.partialorder %v3864_v33, -inf  ;;  %vm3907_vm14 = vcmp.eq.f32.partialorder %v7503_v31, %v3864_v33  ;;  %4495 = vst.msk [vmem:[#allocation3 + $0x20] sm:$0xff] %vm4490_vm0, %v3864_v33  ;;  %4016 = vmin.xlane.f32.xlu1 %v7597_v32 }
 0x1c7   :  { %v3938_v35 = vsel %vm7285_vm13, %v7467_v15, 256  ;;  %v3939_v36 = vsel %vm3907_vm14, %v7558_v60, 256 }
 0x1c8   :  { %vm4026_vm15 = vcmp.lt.s32.totalorder %v3938_v35, %v3939_v36 }
 0x1c9   :  { %v7604_v38 = vsel %vm4026_vm15, %v3938_v35, %v3939_v36 }
 0x1ca   :  { %v4029_v39 = vshra.s32 %v7604_v38, 16 }
 0x1cc   :  { %v7607_v41 = vcvt.s32.f32 %v4029_v39 }
 0x1cd   :  { %v3867_v42 = vpop.xlane.xlu2 %3866 }
 0x1ce   :  { %vm7286_vm1 = vcmp.eq.f32.partialorder %v3867_v42, -inf  ;;  %vm3909_vm2 = vcmp.eq.f32.partialorder %v7509_v34, %v3867_v42  ;;  %4496 = vst.msk [vmem:[#allocation3 + $0x28] sm:$0xff] %vm4490_vm0, %v3867_v42  ;;  %4032 = vmin.xlane.f32.xlu0 %v7607_v41 }
 0x1cf   :  { %v3940_v44 = vsel %vm7286_vm1, %v7467_v15, 256  ;;  %v3941_v46 = vsel %vm3909_vm2, %v7558_v60, 256 }
 0x1d0   :  { %vm4042_vm3 = vcmp.lt.s32.totalorder %v3940_v44, %v3941_v46 }
 0x1d1   :  { %v7614_v47 = vsel %vm4042_vm3, %v3940_v44, %v3941_v46 }
 0x1d2   :  { %v4045_v49 = vshra.s32 %v7614_v47, 16 }
 0x1d4   :  { %v7617_v50 = vcvt.s32.f32 %v4045_v49 }
 0x1d5   :  { %v3894_v52 = vpop.xlane.xlu2 %3893 }
 0x1d6   :  { %vm7287_vm4 = vcmp.eq.f32.partialorder %v3894_v52, -inf  ;;  %vm3927_vm5 = vcmp.eq.f32.partialorder %v7514_v37, %v3894_v52  ;;  %4505 = vst.msk [vmem:[#allocation3 + $0x70] sm:$0xff] %vm4490_vm0, %v3894_v52  ;;  %4048 = vmin.xlane.f32.xlu2 %v7617_v50 }
 0x1d7   :  { %v3958_v54 = vsel %vm7287_vm4, %v7467_v15, 256  ;;  %v3959_v56 = vsel %vm3927_vm5, %v7558_v60, 256 }
 0x1d8   :  { %vm4186_vm6 = vcmp.lt.s32.totalorder %v3958_v54, %v3959_v56 }
 0x1d9   :  { %v3897_v58 = vpop.xlane.xlu0 %3896  ;;  %v7624_v61 = vsel %vm4186_vm6, %v3958_v54, %v3959_v56 }
 0x1da   :  { %vm7288_vm7 = vcmp.eq.f32.partialorder %v3897_v58, -inf  ;;  %vm3929_vm8 = vcmp.eq.f32.partialorder %v7519_v40, %v3897_v58  ;;  %4506 = vst.msk [vmem:[#allocation3 + $0x78] sm:$0xff] %vm4490_vm0, %v3897_v58  ;;  %v4189_v62 = vshra.s32 %v7624_v61, 16 }
 0x1db   :  { %v3960_v63 = vsel %vm7288_vm7, %v7467_v15, 256  ;;  %v3961_v1 = vsel %vm3929_vm8, %v7558_v60, 256 }
 0x1dc   :  { %v7631_v3 = vcvt.s32.f32 %v4189_v62  ;;  %vm4202_vm9 = vcmp.lt.s32.totalorder %v3960_v63, %v3961_v1 }
 0x1dd   :  { %v7633_v4 = vsel %vm4202_vm9, %v3960_v63, %v3961_v1 }
 0x1de   :  { %4192 = vmin.xlane.f32.xlu2 %v7631_v3  ;;  %v4205_v5 = vshra.s32 %v7633_v4, 16 }
 0x1e0   :  { %v7637_v7 = vcvt.s32.f32 %v4205_v5 }
 0x1e1   :  { %v3870_v10 = vpop.xlane.xlu0 %3869 }
 0x1e2   :  { %vm7289_vm10 = vcmp.eq.f32.partialorder %v3870_v10, -inf  ;;  %vm3911_vm11 = vcmp.eq.f32.partialorder %v7524_v43, %v3870_v10  ;;  %4497 = vst.msk [vmem:[#allocation3 + $0x30] sm:$0xff] %vm4490_vm0, %v3870_v10  ;;  %4208 = vmin.xlane.f32.xlu1 %v7637_v7 }
 0x1e3   :  { %v3873_v11 = vpop.xlane.xlu1 %3872  ;;  %v3942_v17 = vsel %vm7289_vm10, %v7467_v15, 256  ;;  %v3943_v22 = vsel %vm3911_vm11, %v7558_v60, 256 }
 0x1e4   :  { %vm7290_vm12 = vcmp.eq.f32.partialorder %v3873_v11, -inf  ;;  %vm3913_vm13 = vcmp.eq.f32.partialorder %v7527_v45, %v3873_v11  ;;  %4498 = vst.msk [vmem:[#allocation3 + $0x38] sm:$0xff] %vm4490_vm0, %v3873_v11  ;;  %vm4058_vm14 = vcmp.lt.s32.totalorder %v3942_v17, %v3943_v22 }
 0x1e5   :  { %v7646_v24 = vsel %vm4058_vm14, %v3942_v17, %v3943_v22  ;;  %v3944_v26 = vsel %vm7290_vm12, %v7467_v15, 256  ;;  %v3945_v27 = vsel %vm3913_vm13, %v7558_v60, 256 }
 0x1e6   :  { %v4061_v30 = vshra.s32 %v7646_v24, 16  ;;  %vm4074_vm15 = vcmp.lt.s32.totalorder %v3944_v26, %v3945_v27 }
 0x1e7   :  { %v7651_v33 = vsel %vm4074_vm15, %v3944_v26, %v3945_v27 }
 0x1e8   :  { %v7653_v35 = vcvt.s32.f32 %v4061_v30  ;;  %v4077_v36 = vshra.s32 %v7651_v33, 16 }
 0x1ea   :  { %4064 = vmin.xlane.f32.xlu1 %v7653_v35  ;;  %v7657_v39 = vcvt.s32.f32 %v4077_v36 }
 0x1eb   :  { %v3876_v42 = vpop.xlane.xlu2 %3875 }
 0x1ec   :  { %vm7291_vm1 = vcmp.eq.f32.partialorder %v3876_v42, -inf  ;;  %vm3915_vm2 = vcmp.eq.f32.partialorder %v7533_v48, %v3876_v42  ;;  %4499 = vst.msk [vmem:[#allocation3 + $0x40] sm:$0xff] %vm4490_vm0, %v3876_v42  ;;  %4080 = vmin.xlane.f32.xlu0 %v7657_v39 }
 0x1ed   :  { %v3946_v44 = vsel %vm7291_vm1, %v7467_v15, 256  ;;  %v3947_v46 = vsel %vm3915_vm2, %v7558_v60, 256 }
 0x1ee   :  { %vm4090_vm3 = vcmp.lt.s32.totalorder %v3946_v44, %v3947_v46 }
 0x1ef   :  { %v7664_v49 = vsel %vm4090_vm3, %v3946_v44, %v3947_v46 }
 0x1f0   :  { %v4093_v52 = vshra.s32 %v7664_v49, 16 }
 0x1f2   :  { %v7667_v54 = vcvt.s32.f32 %v4093_v52 }
 0x1f3   :  { %v3879_v56 = vpop.xlane.xlu0 %3878 }
 0x1f4   :  { %vm7292_vm4 = vcmp.eq.f32.partialorder %v3879_v56, -inf  ;;  %vm3917_vm5 = vcmp.eq.f32.partialorder %v7538_v51, %v3879_v56  ;;  %4500 = vst.msk [vmem:[#allocation3 + $0x48] sm:$0xff] %vm4490_vm0, %v3879_v56  ;;  %4096 = vmin.xlane.f32.xlu2 %v7667_v54 }
 0x1f5   :  { %v3948_v58 = vsel %vm7292_vm4, %v7467_v15, 256  ;;  %v3949_v62 = vsel %vm3917_vm5, %v7558_v60, 256 }
 0x1f6   :  { %vm4106_vm6 = vcmp.lt.s32.totalorder %v3948_v58, %v3949_v62 }
 0x1f7   :  { %v7674_v63 = vsel %vm4106_vm6, %v3948_v58, %v3949_v62 }
 0x1f8   :  { %v4109_v1 = vshra.s32 %v7674_v63, 16 }
 0x1fa   :  { %v7677_v5 = vcvt.s32.f32 %v4109_v1 }
 0x1fb   :  { %v3882_v10 = vpop.xlane.xlu1 %3881 }
 0x1fc   :  { %vm7293_vm7 = vcmp.eq.f32.partialorder %v3882_v10, -inf  ;;  %vm3919_vm8 = vcmp.eq.f32.partialorder %v7542_v53, %v3882_v10  ;;  %4501 = vst.msk [vmem:[#allocation3 + $0x50] sm:$0xff] %vm4490_vm0, %v3882_v10  ;;  %4112 = vmin.xlane.f32.xlu1 %v7677_v5 }
 0x1fd   :  { %v3950_v11 = vsel %vm7293_vm7, %v7467_v15, 256  ;;  %v3951_v17 = vsel %vm3919_vm8, %v7558_v60, 256 }
 0x1fe   :  { %vm4122_vm9 = vcmp.lt.s32.totalorder %v3950_v11, %v3951_v17 }
 0x1ff   :  { %v7684_v22 = vsel %vm4122_vm9, %v3950_v11, %v3951_v17 }
 0x200   :  { %v4125_v26 = vshra.s32 %v7684_v22, 16 }
 0x202   :  { %v7687_v27 = vcvt.s32.f32 %v4125_v26 }
 0x203   :  { %v3885_v30 = vpop.xlane.xlu2 %3884 }
 0x204   :  { %vm7294_vm10 = vcmp.eq.f32.partialorder %v3885_v30, -inf  ;;  %vm3921_vm11 = vcmp.eq.f32.partialorder %v7546_v55, %v3885_v30  ;;  %4502 = vst.msk [vmem:[#allocation3 + $0x58] sm:$0xff] %vm4490_vm0, %v3885_v30  ;;  %4128 = vmin.xlane.f32.xlu0 %v7687_v27 }
 0x205   :  { %v3952_v36 = vsel %vm7294_vm10, %v7467_v15, 256  ;;  %v3953_v42 = vsel %vm3921_vm11, %v7558_v60, 256 }
 0x206   :  { %vm4138_vm12 = vcmp.lt.s32.totalorder %v3952_v36, %v3953_v42 }
 0x207   :  { %v7694_v44 = vsel %vm4138_vm12, %v3952_v36, %v3953_v42 }
 0x208   :  { %v4141_v46 = vshra.s32 %v7694_v44, 16 }
 0x20a   :  { %v7697_v52 = vcvt.s32.f32 %v4141_v46 }
 0x20b   :  { %v3888_v56 = vpop.xlane.xlu0 %3887 }
 0x20c   :  { %vm7295_vm13 = vcmp.eq.f32.partialorder %v3888_v56, -inf  ;;  %vm3923_vm14 = vcmp.eq.f32.partialorder %v7550_v57, %v3888_v56  ;;  %4503 = vst.msk [vmem:[#allocation3 + $0x60] sm:$0xff] %vm4490_vm0, %v3888_v56  ;;  %4144 = vmin.xlane.f32.xlu2 %v7697_v52  ;;  %v3964_v56 = vand.u32 65535, %v7564_v0  ;;  %v3996_v0 = vand.u32 65535, %v7584_v20 }
 0x20d   :  { %v3954_v58 = vsel %vm7295_vm13, %v7467_v15, 256  ;;  %v3955_v62 = vsel %vm3923_vm14, %v7558_v60, 256  ;;  %v4028_v20 = vand.u32 65535, %v7604_v38  ;;  %v4188_v38 = vand.u32 65535, %v7624_v61 }
 0x20e   :  { %vm4154_vm15 = vcmp.lt.s32.totalorder %v3954_v58, %v3955_v62  ;;  %v4060_v61 = vand.u32 65535, %v7646_v24  ;;  %v4092_v24 = vand.u32 65535, %v7664_v49  ;;  %v4124_v49 = vand.u32 65535, %v7684_v22 }
 0x20f   :  { %v7704_v1 = vsel %vm4154_vm15, %v3954_v58, %v3955_v62  ;;  %v3966_v62 = vcvt.s32.f32 %v3964_v56  ;;  %v3998_v56 = vcvt.s32.f32 %v3996_v0 }
 0x210   :  { %v4157_v10 = vshra.s32 %v7704_v1, 16  ;;  %v4156_v22 = vand.u32 65535, %v7704_v1 }
 0x212   :  { %v7707_v11 = vcvt.s32.f32 %v4157_v10 }
 0x213   :  { %v3891_v17 = vpop.xlane.xlu1 %3890 }
 0x214   :  { %vm7296_vm1 = vcmp.eq.f32.partialorder %v3891_v17, -inf  ;;  %vm3925_vm2 = vcmp.eq.f32.partialorder %v7554_v59, %v3891_v17  ;;  %4504 = vst.msk [vmem:[#allocation3 + $0x68] sm:$0xff] %vm4490_vm0, %v3891_v17  ;;  %4160 = vmin.xlane.f32.xlu1 %v7707_v11  ;;  %v3980_v17 = vand.u32 65535, %v7574_v6  ;;  %v4012_v6 = vand.u32 65535, %v7594_v28 }
 0x215   :  { %v3956_v26 = vsel %vm7296_vm1, %v7467_v15, 256  ;;  %v3957_v30 = vsel %vm3925_vm2, %v7558_v60, 256  ;;  %v4044_v28 = vand.u32 65535, %v7614_v47 }
 0x216   :  { %vm4170_vm3 = vcmp.lt.s32.totalorder %v3956_v26, %v3957_v30 }
 0x217   :  { %v7714_v36 = vsel %vm4170_vm3, %v3956_v26, %v3957_v30  ;;  %v3982_v30 = vcvt.s32.f32 %v3980_v17  ;;  %v4046_v0 = vcvt.s32.f32 %v4044_v28 }
 0x218   :  { %v4173_v42 = vshra.s32 %v7714_v36, 16 }
 0x21a   :  { %v7717_v46 = vcvt.s32.f32 %v4173_v42 }
 0x21c   :  { %4176 = vmin.xlane.f32.xlu0 %v7717_v46 }
 0x221   :  { %v7721_v58 = vpop.xlane.xlu1 %3968 }
 0x222   :  { %vm3970_vm4 = vcmp.eq.f32.partialorder %v7567_v2, %v7721_v58  ;;  %v3975_v1 = vcvt.f32.s32 %v7721_v58 }
 0x223   :  { %v3971_v10 = vsel %vm3970_vm4, %v3966_v62, inf }
 0x224   :  { %3972 = vmin.xlane.f32.xlu2 %v3971_v10  ;;  %v4014_v10 = vcvt.s32.f32 %v4012_v6  ;;  %v4204_v6 = vand.u32 65535, %v7633_v4  ;;  %v4062_v4 = vcvt.s32.f32 %v4060_v61  ;;  %v4158_v61 = vcvt.s32.f32 %v4156_v22 }
 0x229   :  { %v7726_v26 = vpop.xlane.xlu0 %3984 }
 0x22a   :  { %vm3986_vm5 = vcmp.eq.f32.partialorder %v7577_v9, %v7726_v26 }
 0x22b   :  { %v3987_v42 = vsel %vm3986_vm5, %v3982_v30, inf  ;;  %v4030_v30 = vcvt.s32.f32 %v4028_v20 }
 0x22c   :  { %3988 = vmin.xlane.f32.xlu1 %v3987_v42 }
 0x231   :  { %v7731_v59 = vpop.xlane.xlu2 %4000 }
 0x232   :  { %vm4002_vm6 = vcmp.eq.f32.partialorder %v7587_v23, %v7731_v59 }
 0x233   :  { %v4003_v2 = vsel %vm4002_vm6, %v3998_v56, inf }
 0x234   :  { %4004 = vmin.xlane.f32.xlu0 %v4003_v2  ;;  %v4190_v2 = vcvt.s32.f32 %v4188_v38 }
 0x239   :  { %v7736_v62 = vpop.xlane.xlu1 %4016 }
 0x23a   :  { %vm4018_vm7 = vcmp.eq.f32.partialorder %v7597_v32, %v7736_v62 }
 0x23b   :  { %v4019_v9 = vsel %vm4018_vm7, %v4014_v10, inf  ;;  %v4206_v10 = vcvt.s32.f32 %v4204_v6  ;;  %v4126_v6 = vcvt.s32.f32 %v4124_v49 }
 0x23c   :  { %4020 = vmin.xlane.f32.xlu2 %v4019_v9  ;;  %v4076_v9 = vand.u32 65535, %v7651_v33  ;;  %v4094_v33 = vcvt.s32.f32 %v4092_v24 }
 0x241   :  { %v7741_v17 = vpop.xlane.xlu0 %4032 }
 0x242   :  { %vm4034_vm8 = vcmp.eq.f32.partialorder %v7607_v41, %v7741_v17 }
 0x243   :  { %v4035_v23 = vsel %vm4034_vm8, %v4030_v30, inf }
 0x244   :  { %4036 = vmin.xlane.f32.xlu1 %v4035_v23  ;;  %v4078_v23 = vcvt.s32.f32 %v4076_v9 }
 0x249   :  { %v7746_v42 = vpop.xlane.xlu2 %4048 }
 0x24a   :  { %vm4050_vm9 = vcmp.eq.f32.partialorder %v7617_v50, %v7746_v42 }
 0x24b   :  { %v4051_v32 = vsel %vm4050_vm9, %v4046_v0, inf }
 0x24c   :  { %4052 = vmin.xlane.f32.xlu0 %v4051_v32 }
 0x251   :  { %v7751_v56 = vpop.xlane.xlu2 %4192 }
 0x252   :  { %vm4194_vm10 = vcmp.eq.f32.partialorder %v7631_v3, %v7751_v56 }
 0x253   :  { %v4195_v41 = vsel %vm4194_vm10, %v4190_v2, inf }
 0x254   :  { %4196 = vmin.xlane.f32.xlu0 %v4195_v41 }
 0x255   :  { %v7756_v47 = vpop.xlane.xlu1 %4208 }
 0x256   :  { %vm4210_vm11 = vcmp.eq.f32.partialorder %v7637_v7, %v7756_v47 }
 0x257   :  { %v4211_v50 = vsel %vm4210_vm11, %v4206_v10, inf }
 0x258   :  { %4212 = vmin.xlane.f32.xlu2 %v4211_v50 }
 0x25d   :  { %v7762_v20 = vpop.xlane.xlu1 %4064 }
 0x25e   :  { %vm4066_vm12 = vcmp.eq.f32.partialorder %v7653_v35, %v7762_v20  ;;  %v4108_v35 = vand.u32 65535, %v7674_v63  ;;  %v4140_v63 = vand.u32 65535, %v7694_v44  ;;  %v4172_v44 = vand.u32 65535, %v7714_v36 }
 0x25f   :  { %v7766_v3 = vpop.xlane.xlu0 %4080  ;;  %v4067_v30 = vsel %vm4066_vm12, %v4062_v4, inf }
 0x260   :  { %4068 = vmin.xlane.f32.xlu2 %v4067_v30  ;;  %vm4082_vm13 = vcmp.eq.f32.partialorder %v7657_v39, %v7766_v3  ;;  %v4110_v38 = vcvt.s32.f32 %v4108_v35  ;;  %v4142_v10 = vcvt.s32.f32 %v4140_v63  ;;  %v4174_v4 = vcvt.s32.f32 %v4172_v44 }
 0x261   :  { %v4083_v7 = vsel %vm4082_vm13, %v4078_v23, inf  ;;  %v3976_v23 = vshll.u32 %v3975_v1, 16  ;;  %v4007_v63 = vcvt.f32.s32 %v7731_v59 }
 0x262   :  { %4084 = vmin.xlane.f32.xlu1 %v4083_v7 }
 0x267   :  { %v7771_v28 = vpop.xlane.xlu2 %4096 }
 0x268   :  { %vm4098_vm14 = vcmp.eq.f32.partialorder %v7667_v54, %v7771_v28 }
 0x269   :  { %v4099_v0 = vsel %vm4098_vm14, %v4094_v33, inf }
 0x26a   :  { %4100 = vmin.xlane.f32.xlu0 %v4099_v0 }
 0x26f   :  { %v7776_v32 = vpop.xlane.xlu1 %4112 }
 0x270   :  { %vm4114_vm15 = vcmp.eq.f32.partialorder %v7677_v5, %v7776_v32 }
 0x271   :  { %v4115_v39 = vsel %vm4114_vm15, %v4110_v38, inf }
 0x272   :  { %4116 = vmin.xlane.f32.xlu2 %v4115_v39 }
 0x277   :  { %v7781_v2 = vpop.xlane.xlu0 %4128 }
 0x278   :  { %vm4130_vm1 = vcmp.eq.f32.partialorder %v7687_v27, %v7781_v2 }
 0x279   :  { %v4131_v54 = vsel %vm4130_vm1, %v4126_v6, inf }
 0x27a   :  { %4132 = vmin.xlane.f32.xlu1 %v4131_v54 }
 0x27f   :  { %v7786_v41 = vpop.xlane.xlu2 %4144 }
 0x280   :  { %vm4146_vm2 = vcmp.eq.f32.partialorder %v7697_v52, %v7786_v41 }
 0x281   :  { %v4147_v5 = vsel %vm4146_vm2, %v4142_v10, inf }
 0x282   :  { %4148 = vmin.xlane.f32.xlu0 %v4147_v5 }
 0x287   :  { %v7791_v50 = vpop.xlane.xlu1 %4160 }
 0x288   :  { %vm4162_vm3 = vcmp.eq.f32.partialorder %v7707_v11, %v7791_v50  ;;  %v3991_v11 = vcvt.f32.s32 %v7726_v26 }
 0x289   :  { %v4163_v27 = vsel %vm4162_vm3, %v4158_v61, inf }
 0x28a   :  { %4164 = vmin.xlane.f32.xlu2 %v4163_v27  ;;  %v3992_v0 = vshll.u32 %v3991_v11, 16  ;;  %v4008_v27 = vshll.u32 %v4007_v63, 16 }
 0x28f   :  { %v7796_v9 = vpop.xlane.xlu0 %4176 }
 0x290   :  { %vm4178_vm4 = vcmp.eq.f32.partialorder %v7717_v46, %v7796_v9 }
 0x291   :  { %v4179_v52 = vsel %vm4178_vm4, %v4174_v4, inf }
 0x292   :  { %4180 = vmin.xlane.f32.xlu1 %v4179_v52 }
 0x297   :  { %v3973_v30 = vpop.xlane.xlu2 %3972 }
 0x298   :  { %v3974_v7 = vcvt.f32.s32 %v3973_v30  ;;  %v4023_v30 = vcvt.f32.s32 %v7736_v62 }
 0x29a   :  { %v7801_v24 = vadd.s32 %v3976_v23, %v3974_v7 }
 0x29c   :  { %vm10414_vm5 = vcmp.eq.s32.totalorder %v7467_v15, %v7801_v24  ;;  %vm10413_vm6 = vcmp.eq.s32.totalorder %v7558_v60, %v7801_v24 }
 0x29d   :  { %v7812_v36 = vsel %vm10413_vm6, -inf, %v7475_v18  ;;  %v4250_v46 = vsel %vm10414_vm5, %v7452_v8, 0  ;;  %v4251_v58 = vsel %vm10413_vm6, %v7467_v15, 0 }
 0x29e   :  { %v4282_v26 = vadd.s32 %v4251_v58, %v4250_v46  ;;  %4556 = vmax.xlane.f32.xlu2 %v7812_v36 }
 0x29f   :  { %v3989_v33 = vpop.xlane.xlu1 %3988 }
 0x2a0   :  { %v3990_v35 = vcvt.f32.s32 %v3989_v33  ;;  %v4284_v38 = vshrl.u32 %v4282_v26, 16  ;;  %v4283_v39 = vand.u32 65535, %v4282_v26  ;;  %v4024_v26 = vshll.u32 %v4023_v30, 16 }
 0x2a2   :  { %v7823_v49 = vadd.s32 %v3992_v0, %v3990_v35  ;;  %v4286_v6 = vcvt.s32.f32 %v4284_v38  ;;  %v4285_v54 = vcvt.s32.f32 %v4283_v39 }
 0x2a4   :  { %vm10412_vm7 = vcmp.eq.s32.totalorder %v7467_v15, %v7823_v49  ;;  %vm10415_vm8 = vcmp.eq.s32.totalorder %v7558_v60, %v7823_v49  ;;  %4289 = vadd.xlane.f32.xlu1 %v4286_v6  ;;  %4287 = vadd.xlane.f32.xlu0 %v4285_v54  ;;  %v4039_v54 = vcvt.f32.s32 %v7741_v17 }
 0x2a5   :  { %v4252_v10 = vsel %vm10412_vm7, %v7456_v12, 0  ;;  %v4253_v5 = vsel %vm10415_vm8, %v7467_v15, 0  ;;  %v7842_v61 = vsel %vm10415_vm8, -inf, %v7484_v21 }
 0x2a6   :  { %v4295_v22 = vadd.s32 %v4253_v5, %v4252_v10 }
 0x2a7   :  { %v4005_v59 = vpop.xlane.xlu0 %4004 }
 0x2a8   :  { %v4006_v44 = vcvt.f32.s32 %v4005_v59  ;;  %v4296_v4 = vand.u32 65535, %v4295_v22  ;;  %v4297_v46 = vshrl.u32 %v4295_v22, 16 }
 0x2aa   :  { %v7844_v52 = vadd.s32 %v4008_v27, %v4006_v44  ;;  %v4298_v1 = vcvt.s32.f32 %v4296_v4  ;;  %v4299_v39 = vcvt.s32.f32 %v4297_v46  ;;  %v4040_v27 = vshll.u32 %v4039_v54, 16 }
 0x2ac   :  { %vm4222_vm9 = vcmp.eq.s32.totalorder %v7467_v15, %v7844_v52  ;;  %vm10425_vm10 = vcmp.eq.s32.totalorder %v7558_v60, %v7844_v52  ;;  %4300 = vadd.xlane.f32.xlu2 %v4298_v1  ;;  %4559 = vmax.xlane.f32.xlu0 %v7842_v61 }
 0x2ad   :  { %v7856_v23 = vsel %vm10425_vm10, -inf, %v7491_v25  ;;  %v4254_v62 = vsel %vm4222_vm9, %v7459_v13, 0  ;;  %v4255_v7 = vsel %vm10425_vm10, %v7467_v15, 0 }
 0x2ae   :  { %v4308_v11 = vadd.s32 %v4255_v7, %v4254_v62  ;;  %4562 = vmax.xlane.f32.xlu1 %v7856_v23  ;;  %v4055_v7 = vcvt.f32.s32 %v7746_v42 }
 0x2af   :  { %v4021_v58 = vpop.xlane.xlu2 %4020 }
 0x2b0   :  { %v4022_v33 = vcvt.f32.s32 %v4021_v58  ;;  %v4310_v0 = vshrl.u32 %v4308_v11, 16  ;;  %v4309_v6 = vand.u32 65535, %v4308_v11 }
 0x2b2   :  { %v7867_v35 = vadd.s32 %v4024_v26, %v4022_v33  ;;  %v4312_v38 = vcvt.s32.f32 %v4310_v0  ;;  %v4311_v5 = vcvt.s32.f32 %v4309_v6  ;;  %v4056_v0 = vshll.u32 %v4055_v7, 16 }
 0x2b4   :  { %vm10424_vm11 = vcmp.eq.s32.totalorder %v7467_v15, %v7867_v35  ;;  %vm10403_vm12 = vcmp.eq.s32.totalorder %v7558_v60, %v7867_v35  ;;  %4315 = vadd.xlane.f32.xlu2 %v4312_v38  ;;  %4302 = vadd.xlane.f32.xlu0 %v4299_v39 }
 0x2b5   :  { %v4256_v63 = vsel %vm10424_vm11, %v7464_v14, 0  ;;  %v4257_v10 = vsel %vm10403_vm12, %v7467_v15, 0  ;;  %v7886_v59 = vsel %vm10403_vm12, -inf, %v7498_v29 }
 0x2b6   :  { %v4321_v17 = vadd.s32 %v4257_v10, %v4256_v63  ;;  %4313 = vadd.xlane.f32.xlu1 %v4311_v5  ;;  %v4199_v63 = vcvt.f32.s32 %v7751_v56 }
 0x2b7   :  { %v4037_v22 = vpop.xlane.xlu1 %4036 }
 0x2b8   :  { %v4038_v44 = vcvt.f32.s32 %v4037_v22  ;;  %v4322_v4 = vand.u32 65535, %v4321_v17  ;;  %v4323_v62 = vshrl.u32 %v4321_v17, 16 }
 0x2ba   :  { %v7888_v1 = vadd.s32 %v4040_v27, %v4038_v44  ;;  %v4324_v30 = vcvt.s32.f32 %v4322_v4  ;;  %v4325_v42 = vcvt.s32.f32 %v4323_v62  ;;  %v4200_v44 = vshll.u32 %v4199_v63, 16 }
 0x2bb   :  { %v4215_v4 = vcvt.f32.s32 %v7756_v47 }
 0x2bc   :  { %vm10401_vm13 = vcmp.eq.s32.totalorder %v7467_v15, %v7888_v1  ;;  %vm10400_vm14 = vcmp.eq.s32.totalorder %v7558_v60, %v7888_v1  ;;  %4565 = vmax.xlane.f32.xlu2 %v7886_v59  ;;  %4326 = vadd.xlane.f32.xlu0 %v4324_v30 }
 0x2bd   :  { %v4258_v11 = vsel %vm10401_vm13, %v7470_v16, 0  ;;  %v4259_v46 = vsel %vm10400_vm14, %v7467_v15, 0  ;;  %v7908_v33 = vsel %vm10400_vm14, -inf, %v7503_v31 }
 0x2be   :  { %v4334_v58 = vadd.s32 %v4259_v46, %v4258_v11  ;;  %4328 = vadd.xlane.f32.xlu1 %v4325_v42 }
 0x2bf   :  { %v4053_v26 = vpop.xlane.xlu0 %4052 }
 0x2c0   :  { %v4054_v38 = vcvt.f32.s32 %v4053_v26  ;;  %v4335_v39 = vand.u32 65535, %v4334_v58  ;;  %v4336_v22 = vshrl.u32 %v4334_v58, 16  ;;  %v7936_v26 = vld [vmem:[#allocation4 + $0x70] sm:$0xff] }
 0x2c1   :  { %10568 = vst [vmem:[#allocation29_spill] sm:$0xff] %v7936_v26 }
 0x2c2   :  { %v7910_v6 = vadd.s32 %v4056_v0, %v4054_v38  ;;  %v4337_v54 = vcvt.s32.f32 %v4335_v39  ;;  %v4338_v46 = vcvt.s32.f32 %v4336_v22  ;;  %v4216_v38 = vshll.u32 %v4215_v4, 16 }
 0x2c4   :  { %10566 = vst [vmem:[#allocation27_spill] sm:$0xff] %v7910_v6  ;;  %vm10399_vm15 = vcmp.eq.s32.totalorder %v7467_v15, %v7910_v6  ;;  %vm10351_vm1 = vcmp.eq.s32.totalorder %v7558_v60, %v7910_v6  ;;  %4339 = vadd.xlane.f32.xlu2 %v4337_v54  ;;  %4568 = vmax.xlane.f32.xlu0 %v7908_v33 }
 0x2c5   :  { %v7922_v10 = vsel %vm10351_vm1, -inf, %v7509_v34  ;;  %v4260_v56 = vsel %vm10399_vm15, %v7479_v19, 0  ;;  %v4261_v5 = vsel %vm10351_vm1, %v7467_v15, 0 }
 0x2c6   :  { %v4347_v17 = vadd.s32 %v4261_v5, %v4260_v56  ;;  %4571 = vmax.xlane.f32.xlu1 %v7922_v10  ;;  %v7952_v5 = vld [vmem:[#allocation4 + $0x78] sm:$0xff] }
 0x2c7   :  { %v4197_v27 = vpop.xlane.xlu0 %4196  ;;  %10570 = vst [vmem:[#allocation31_spill] sm:$0xff] %v7952_v5 }
 0x2c8   :  { %v4198_v30 = vcvt.f32.s32 %v4197_v27  ;;  %v4349_v62 = vshrl.u32 %v4347_v17, 16  ;;  %v4348_v42 = vand.u32 65535, %v4347_v17  ;;  %v4071_v17 = vcvt.f32.s32 %v7762_v20 }
 0x2c9   :  { %v4087_v27 = vcvt.f32.s32 %v7766_v3 }
 0x2ca   :  { %v7934_v7 = vadd.s32 %v4200_v44, %v4198_v30  ;;  %v4351_v11 = vcvt.s32.f32 %v4349_v62  ;;  %v4350_v63 = vcvt.s32.f32 %v4348_v42  ;;  %v4072_v3 = vshll.u32 %v4071_v17, 16 }
 0x2cb   :  { %v4213_v0 = vpop.xlane.xlu2 %4212 }
 0x2cc   :  { %10567 = vst [vmem:[#allocation28_spill] sm:$0xff] %v7934_v7  ;;  %vm10355_vm2 = vcmp.eq.s32.totalorder %v7467_v15, %v7934_v7  ;;  %vm10353_vm3 = vcmp.eq.s32.totalorder %v7558_v60, %v7934_v7  ;;  %v4214_v47 = vcvt.f32.s32 %v4213_v0  ;;  %4354 = vadd.xlane.f32.xlu2 %v4351_v11  ;;  %4341 = vadd.xlane.f32.xlu0 %v4338_v46  ;;  %v4088_v0 = vshll.u32 %v4087_v27, 16 }
 0x2cd   :  { %v4278_v58 = vsel %vm10355_vm2, %v7936_v26, 0  ;;  %v4279_v39 = vsel %vm10353_vm3, %v7467_v15, 0  ;;  %v7972_v11 = vsel %vm10353_vm3, -inf, %v7514_v37 }
 0x2ce   :  { %v7950_v54 = vadd.s32 %v4216_v38, %v4214_v47  ;;  %v4464_v56 = vadd.s32 %v4279_v39, %v4278_v58  ;;  %4352 = vadd.xlane.f32.xlu1 %v4350_v63  ;;  %v7976_v63 = vld [vmem:[#allocation4 + $0x30] sm:$0xff] }
 0x2cf   :  { %10572 = vst [vmem:[#allocation33_spill] sm:$0xff] %v7976_v63 }
 0x2d0   :  { %10569 = vst [vmem:[#allocation30_spill] sm:$0xff] %v7950_v54  ;;  %vm10352_vm4 = vcmp.eq.s32.totalorder %v7467_v15, %v7950_v54  ;;  %vm10354_vm1 = vcmp.eq.s32.totalorder %v7558_v60, %v7950_v54  ;;  %v4466_v22 = vshrl.u32 %v4464_v56, 16 }
 0x2d1   :  { %v4280_v44 = vsel %vm10352_vm4, %v7952_v5, 0  ;;  %v4281_v20 = vsel %vm10354_vm1, %v7467_v15, 0 }
 0x2d2   :  { %v4468_v4 = vcvt.s32.f32 %v4466_v22  ;;  %v4477_v30 = vadd.s32 %v4281_v20, %v4280_v44  ;;  %v7982_v22 = vsel %vm10354_vm1, -inf, %v7519_v40  ;;  %v4103_v20 = vcvt.f32.s32 %v7771_v28 }
 0x2d3   :  { %v4069_v62 = vpop.xlane.xlu2 %4068 }
 0x2d4   :  { %v4070_v46 = vcvt.f32.s32 %v4069_v62  ;;  %4471 = vadd.xlane.f32.xlu2 %v4468_v4  ;;  %v4478_v42 = vand.u32 65535, %v4477_v30  ;;  %v4465_v4 = vand.u32 65535, %v4464_v56 }
 0x2d5   :  { %v4085_v38 = vpop.xlane.xlu1 %4084 }
 0x2d6   :  { %v7974_v47 = vadd.s32 %v4072_v3, %v4070_v46  ;;  %v4086_v58 = vcvt.f32.s32 %v4085_v38  ;;  %v4480_v39 = vcvt.s32.f32 %v4478_v42  ;;  %4598 = vmax.xlane.f32.xlu1 %v7972_v11  ;;  %v8005_v46 = vld [vmem:[#allocation4 + $0x38] sm:$0xff] }
 0x2d7   :  { %10574 = vst [vmem:[#allocation35_spill] sm:$0xff] %v8005_v46 }
 0x2d8   :  { %10571 = vst [vmem:[#allocation32_spill] sm:$0xff] %v7974_v47  ;;  %vm10377_vm4 = vcmp.eq.s32.totalorder %v7467_v15, %v7974_v47  ;;  %vm10357_vm3 = vcmp.eq.s32.totalorder %v7558_v60, %v7974_v47  ;;  %v7988_v17 = vadd.s32 %v4088_v0, %v4086_v58  ;;  %4482 = vadd.xlane.f32.xlu0 %v4480_v39  ;;  %v4104_v0 = vshll.u32 %v4103_v20, 16 }
 0x2d9   :  { %v4262_v27 = vsel %vm10377_vm4, %v7976_v63, 0  ;;  %v4263_v44 = vsel %vm10357_vm3, %v7467_v15, 0  ;;  %v4467_v58 = vcvt.s32.f32 %v4465_v4  ;;  %v8011_v28 = vsel %vm10357_vm3, -inf, %v7524_v43 }
 0x2da   :  { %10573 = vst [vmem:[#allocation34_spill] sm:$0xff] %v7988_v17  ;;  %v4360_v62 = vadd.s32 %v4263_v44, %v4262_v27  ;;  %vm10356_vm1 = vcmp.eq.s32.totalorder %v7467_v15, %v7988_v17  ;;  %vm10362_vm2 = vcmp.eq.s32.totalorder %v7558_v60, %v7988_v17  ;;  %v4119_v20 = vcvt.f32.s32 %v7776_v32 }
 0x2db   :  { %v4264_v56 = vsel %vm10356_vm1, %v8005_v46, 0  ;;  %v4265_v27 = vsel %vm10362_vm2, %v7467_v15, 0  ;;  %v4479_v4 = vshrl.u32 %v4477_v30, 16 }
 0x2dc   :  { %4601 = vmax.xlane.f32.xlu2 %v7982_v22  ;;  %v4361_v3 = vand.u32 65535, %v4360_v62 }
 0x2dd   :  { %v4101_v42 = vpop.xlane.xlu0 %4100 }
 0x2de   :  { %v4102_v38 = vcvt.f32.s32 %v4101_v42  ;;  %v4363_v39 = vcvt.s32.f32 %v4361_v3  ;;  %4469 = vadd.xlane.f32.xlu1 %v4467_v58  ;;  %v4373_v3 = vadd.s32 %v4265_v27, %v4264_v56  ;;  %v8028_v42 = vsel %vm10362_vm2, -inf, %v7527_v45 }
 0x2df   :  { %v4481_v58 = vcvt.s32.f32 %v4479_v4  ;;  %v4135_v4 = vcvt.f32.s32 %v7781_v2 }
 0x2e0   :  { %v8021_v44 = vadd.s32 %v4104_v0, %v4102_v38  ;;  %4365 = vadd.xlane.f32.xlu0 %v4363_v39  ;;  %v8035_v0 = vld [vmem:[#allocation4 + $0x40] sm:$0xff]  ;;  %v4120_v38 = vshll.u32 %v4119_v20, 16  ;;  %v4374_v39 = vand.u32 65535, %v4373_v3  ;;  %v8048_v20 = vld [vmem:[#allocation4 + $0x48] sm:$0xff]  ;;  %v4375_v43 = vshrl.u32 %v4373_v3, 16 }
 0x2e1   :  { %10576 = vst [vmem:[#allocation37_spill] sm:$0xff] %v8035_v0 }
 0x2e2   :  { %10575 = vst [vmem:[#allocation36_spill] sm:$0xff] %v8021_v44  ;;  %vm10363_vm1 = vcmp.eq.s32.totalorder %v7467_v15, %v8021_v44  ;;  %vm10395_vm3 = vcmp.eq.s32.totalorder %v7558_v60, %v8021_v44  ;;  %v4377_v63 = vcvt.s32.f32 %v4375_v43  ;;  %v8076_v43 = vld [vmem:[#allocation4 + $0x50] sm:$0xff] }
 0x2e3   :  { %v4266_v56 = vsel %vm10363_vm1, %v8035_v0, 0  ;;  %v4267_v27 = vsel %vm10395_vm3, %v7467_v15, 0  ;;  %10578 = vst [vmem:[#allocation39_spill] sm:$0xff] %v8048_v20  ;;  %v4376_v0 = vcvt.s32.f32 %v4374_v39 }
 0x2e4   :  { %4574 = vmax.xlane.f32.xlu2 %v8011_v28  ;;  %v4386_v46 = vadd.s32 %v4267_v27, %v4266_v56  ;;  %v4151_v56 = vcvt.f32.s32 %v7786_v41  ;;  %10580 = vst [vmem:[#allocation41_spill] sm:$0xff] %v8076_v43 }
 0x2e5   :  { %v4117_v32 = vpop.xlane.xlu2 %4116 }
 0x2e6   :  { %v4118_v30 = vcvt.f32.s32 %v4117_v32  ;;  %4484 = vadd.xlane.f32.xlu1 %v4481_v58  ;;  %v4362_v32 = vshrl.u32 %v4360_v62, 16  ;;  %v4136_v62 = vshll.u32 %v4135_v4, 16  ;;  %v4388_v40 = vshrl.u32 %v4386_v46, 16 }
 0x2e7   :  { %v4152_v4 = vshll.u32 %v4151_v56, 16  ;;  %v8107_v56 = vld [vmem:[#allocation4 + $0x58] sm:$0xff] }
 0x2e8   :  { %v8045_v45 = vadd.s32 %v4120_v38, %v4118_v30  ;;  %4577 = vmax.xlane.f32.xlu0 %v8028_v42  ;;  %v4364_v30 = vcvt.s32.f32 %v4362_v32  ;;  %v4390_v27 = vcvt.s32.f32 %v4388_v40  ;;  %10581 = vst [vmem:[#allocation42_spill] sm:$0xff] %v8107_v56 }
 0x2ea   :  { %10577 = vst [vmem:[#allocation38_spill] sm:$0xff] %v8045_v45  ;;  %vm10376_vm2 = vcmp.eq.s32.totalorder %v7467_v15, %v8045_v45  ;;  %vm10379_vm1 = vcmp.eq.s32.totalorder %v7558_v60, %v8045_v45 }
 0x2eb   :  { %v4268_v38 = vsel %vm10376_vm2, %v8048_v20, 0  ;;  %v4269_v2 = vsel %vm10379_vm1, %v7467_v15, 0  ;;  %v8082_v32 = vsel %vm10379_vm1, -inf, %v7538_v51 }
 0x2ec   :  { %4378 = vadd.xlane.f32.xlu2 %v4376_v0  ;;  %v4399_v37 = vadd.s32 %v4269_v2, %v4268_v38  ;;  %v8070_v0 = vsel %vm10395_vm3, -inf, %v7533_v48 }
 0x2ed   :  { %v4133_v3 = vpop.xlane.xlu1 %4132 }
 0x2ee   :  { %v4134_v58 = vcvt.f32.s32 %v4133_v3  ;;  %4367 = vadd.xlane.f32.xlu1 %v4364_v30  ;;  %v4400_v20 = vand.u32 65535, %v4399_v37  ;;  %v4387_v3 = vand.u32 65535, %v4386_v46 }
 0x2f0   :  { %v8063_v39 = vadd.s32 %v4136_v62, %v4134_v58  ;;  %4380 = vadd.xlane.f32.xlu0 %v4377_v63  ;;  %v4402_v40 = vcvt.s32.f32 %v4400_v20  ;;  %v4167_v20 = vcvt.f32.s32 %v7791_v50 }
 0x2f2   :  { %10579 = vst [vmem:[#allocation40_spill] sm:$0xff] %v8063_v39  ;;  %vm10378_vm2 = vcmp.eq.s32.totalorder %v7467_v15, %v8063_v39  ;;  %vm10380_vm4 = vcmp.eq.s32.totalorder %v7558_v60, %v8063_v39 }
 0x2f3   :  { %v4270_v38 = vsel %vm10378_vm2, %v8076_v43, 0  ;;  %v4271_v2 = vsel %vm10380_vm4, %v7467_v15, 0  ;;  %v8100_v58 = vsel %vm10380_vm4, -inf, %v7542_v53 }
 0x2f4   :  { %4393 = vadd.xlane.f32.xlu2 %v4390_v27  ;;  %v4412_v30 = vadd.s32 %v4271_v2, %v4270_v38  ;;  %v4168_v27 = vshll.u32 %v4167_v20, 16  ;;  %v8120_v2 = vld [vmem:[#allocation4 + $0x60] sm:$0xff]  ;;  %v4183_v20 = vcvt.f32.s32 %v7796_v9 }
 0x2f5   :  { %v4149_v63 = vpop.xlane.xlu0 %4148  ;;  %10583 = vst [vmem:[#allocation44_spill] sm:$0xff] %v8120_v2 }
 0x2f6   :  { %v4150_v41 = vcvt.f32.s32 %v4149_v63  ;;  %4580 = vmax.xlane.f32.xlu1 %v8070_v0  ;;  %v4389_v63 = vcvt.s32.f32 %v4387_v3  ;;  %v4401_v3 = vshrl.u32 %v4399_v37, 16  ;;  %v4184_v37 = vshll.u32 %v4183_v20, 16 }
 0x2f8   :  { %v8092_v62 = vadd.s32 %v4152_v4, %v4150_v41  ;;  %4404 = vadd.xlane.f32.xlu0 %v4402_v40  ;;  %v4413_v4 = vand.u32 65535, %v4412_v30 }
 0x2fa   :  { %vm10381_vm2 = vcmp.eq.s32.totalorder %v7467_v15, %v8092_v62  ;;  %vm10396_vm1 = vcmp.eq.s32.totalorder %v7558_v60, %v8092_v62 }
 0x2fb   :  { %v4272_v41 = vsel %vm10381_vm2, %v8107_v56, 0  ;;  %v4273_v40 = vsel %vm10396_vm1, %v7467_v15, 0  ;;  %v4415_v56 = vcvt.s32.f32 %v4413_v4 }
 0x2fc   :  { %4583 = vmax.xlane.f32.xlu2 %v8082_v32  ;;  %v4425_v53 = vadd.s32 %v4273_v40, %v4272_v41 }
 0x2fd   :  { %v4165_v50 = vpop.xlane.xlu2 %4164 }
 0x2fe   :  { %v4166_v46 = vcvt.f32.s32 %v4165_v50  ;;  %4391 = vadd.xlane.f32.xlu1 %v4389_v63  ;;  %v4414_v50 = vshrl.u32 %v4412_v30, 16  ;;  %v4427_v43 = vshrl.u32 %v4425_v53, 16 }
 0x300   :  { %v8117_v38 = vadd.s32 %v4168_v27, %v4166_v46  ;;  %4586 = vmax.xlane.f32.xlu0 %v8100_v58  ;;  %v4403_v46 = vcvt.s32.f32 %v4401_v3  ;;  %v4416_v51 = vcvt.s32.f32 %v4414_v50  ;;  %v4429_v41 = vcvt.s32.f32 %v4427_v43 }
 0x301   :  { %v4426_v50 = vand.u32 65535, %v4425_v53 }
 0x302   :  { %10582 = vst [vmem:[#allocation43_spill] sm:$0xff] %v8117_v38  ;;  %vm10394_vm4 = vcmp.eq.s32.totalorder %v7467_v15, %v8117_v38  ;;  %vm10397_vm2 = vcmp.eq.s32.totalorder %v7558_v60, %v8117_v38 }
 0x303   :  { %v4274_v27 = vsel %vm10394_vm4, %v8120_v2, 0  ;;  %v4275_v9 = vsel %vm10397_vm2, %v7467_v15, 0  ;;  %v8141_v2 = vsel %vm10396_vm1, -inf, %v7546_v55  ;;  %vm10446_vm1 = vcmask 15368  }
 0x304   :  { %4417 = vadd.xlane.f32.xlu2 %v4415_v56  ;;  %v4438_v48 = vadd.s32 %v4275_v9, %v4274_v27  ;;  %v8147_v56 = vld [vmem:[#allocation4 + $0x68] sm:$0xff]  ;;  %v4428_v53 = vcvt.s32.f32 %v4426_v50 }
 0x305   :  { %v4181_v30 = vpop.xlane.xlu1 %4180  ;;  %10585 = vst [vmem:[#allocation46_spill] sm:$0xff] %v8147_v56 }
 0x306   :  { %v4182_v63 = vcvt.f32.s32 %v4181_v30  ;;  %4406 = vadd.xlane.f32.xlu1 %v4403_v46  ;;  %v4439_v40 = vand.u32 65535, %v4438_v48 }
 0x308   :  { %v8135_v4 = vadd.s32 %v4184_v37, %v4182_v63  ;;  %4419 = vadd.xlane.f32.xlu0 %v4416_v51  ;;  %v4441_v20 = vcvt.s32.f32 %v4439_v40  ;;  %v8153_v51 = vsel %vm10397_vm2, -inf, %v7550_v57  ;;  %v10586_v37 = vld [vmem:[#allocation26_spill] sm:$0xff]  ;;  %vm10447_vm2 = vmmov 1  }
 0x309   :  { %vm4636_vm13 = vmxor %vm10413_vm6, %vm10447_vm2 }
 0x30a   :  { %10584 = vst [vmem:[#allocation45_spill] sm:$0xff] %v8135_v4  ;;  %vm10398_vm4 = vcmp.eq.s32.totalorder %v7467_v15, %v8135_v4  ;;  %vm10402_vm3 = vcmp.eq.s32.totalorder %v7558_v60, %v8135_v4 }
 0x30b   :  { %v4276_v43 = vsel %vm10398_vm4, %v8147_v56, 0  ;;  %v4277_v3 = vsel %vm10402_vm3, %v7467_v15, 0  ;;  %v8168_v30 = vsel %vm10402_vm3, -inf, %v10586_v37  ;;  %vm4635_vm4 = vmxor %vm10414_vm5, %vm10447_vm2 }
 0x30c   :  { %4432 = vadd.xlane.f32.xlu2 %v4429_v41  ;;  %v4451_v27 = vadd.s32 %v4277_v3, %v4276_v43 }
 0x30e   :  { %4589 = vmax.xlane.f32.xlu1 %v8141_v2  ;;  %v4452_v46 = vand.u32 65535, %v4451_v27  ;;  %v4453_v57 = vshrl.u32 %v4451_v27, 16 }
 0x310   :  { %4443 = vadd.xlane.f32.xlu0 %v4441_v20  ;;  %v4454_v37 = vcvt.s32.f32 %v4452_v46  ;;  %v4455_v55 = vcvt.s32.f32 %v4453_v57 }
 0x311   :  { %v4557_v9 = vpop.xlane.xlu2 %4556 }
 0x312   :  { %vm7297_vm15 = vcmp.eq.f32.partialorder %v4557_v9, -inf  ;;  %vm4604_vm14 = vcmp.eq.f32.partialorder %v7812_v36, %v4557_v9  ;;  %5260 = vst.msk [vmem:[#allocation3] sm:$0xff] %vm10446_vm1, %v4557_v9  ;;  %v4440_v36 = vshrl.u32 %v4438_v48, 16 }
 0x313   :  { %vm4667_vm3 = vmand %vm7297_vm15, %vm4635_vm4 }
 0x314   :  { %4592 = vmax.xlane.f32.xlu2 %v8153_v51  ;;  %vm4668_vm12 = vmand %vm4604_vm14, %vm4636_vm13  ;;  %v4699_v20 = vsel %vm4667_vm3, %v7467_v15, 256  ;;  %v4442_v50 = vcvt.s32.f32 %v4440_v36 }
 0x315   :  { %v4700_v43 = vsel %vm4668_vm12, %v7558_v60, 256  ;;  %vm4637_vm12 = vmxor %vm10412_vm7, %vm10447_vm2 }
 0x316   :  { %4430 = vadd.xlane.f32.xlu1 %v4428_v53  ;;  %vm4731_vm15 = vcmp.lt.s32.totalorder %v4699_v20, %v4700_v43  ;;  %vm4638_vm3 = vmxor %vm10415_vm8, %vm10447_vm2 }
 0x317   :  { %v4290_v63 = vpop.xlane.xlu1 %4289  ;;  %v4288_v41 = vpop.xlane.xlu0 %4287  ;;  %v8185_v5 = vsel %vm4731_vm15, %v4699_v20, %v4700_v43  ;;  %vm4639_vm7 = vmxor %vm4222_vm9, %vm10447_vm2 }
 0x318   :  { %v4292_v40 = vcvt.f32.s32 %v4290_v63  ;;  %4595 = vmax.xlane.f32.xlu0 %v8168_v30  ;;  %v4291_v9 = vcvt.f32.s32 %v4288_v41  ;;  %v4734_v48 = vshra.s32 %v8185_v5, 16 }
 0x31a   :  { %v4293_v3 = vshll.u32 %v4292_v40, 16 }
 0x31c   :  { %v4294_v56 = vadd.s32 %v4293_v3, %v4291_v9  ;;  %4456 = vadd.xlane.f32.xlu2 %v4454_v37 }
 0x31e   :  { %4507 = vst.msk [vmem:[#allocation4] sm:$0xff] %vm4490_vm0, %v4294_v56  ;;  %4445 = vadd.xlane.f32.xlu1 %v4442_v50 }
 0x31f   :  { %v4560_v63 = vpop.xlane.xlu0 %4559  ;;  %v4301_v53 = vpop.xlane.xlu2 %4300 }
 0x320   :  { %vm7298_vm13 = vcmp.eq.f32.partialorder %v4560_v63, -inf  ;;  %vm4606_vm14 = vcmp.eq.f32.partialorder %v7842_v61, %v4560_v63  ;;  %5261 = vst.msk [vmem:[#allocation3 + $0x8] sm:$0xff] %vm10446_vm1, %v4560_v63  ;;  %4458 = vadd.xlane.f32.xlu0 %v4455_v55  ;;  %v8212_v61 = vcvt.s32.f32 %v4734_v48  ;;  %v4304_v9 = vcvt.f32.s32 %v4301_v53 }
 0x321   :  { %vm4669_vm4 = vmand %vm7298_vm13, %vm4637_vm12  ;;  %v4563_v56 = vpop.xlane.xlu1 %4562 }
 0x322   :  { %vm4670_vm15 = vmand %vm4606_vm14, %vm4638_vm3  ;;  %v4701_v57 = vsel %vm4669_vm4, %v7467_v15, 256  ;;  %vm7299_vm6 = vcmp.eq.f32.partialorder %v4563_v56, -inf  ;;  %vm4608_vm5 = vcmp.eq.f32.partialorder %v7856_v23, %v4563_v56  ;;  %5262 = vst.msk [vmem:[#allocation3 + $0x10] sm:$0xff] %vm10446_vm1, %v4563_v56  ;;  %vm10587_vm3 = vcmp.eq.s32.totalorder %v7558_v60, %v7867_v35 }
 0x323   :  { %v4702_v27 = vsel %vm4670_vm15, %v7558_v60, 256  ;;  %vm4640_vm12 = vmxor %vm10425_vm10, %vm10447_vm2 }
 0x324   :  { %vm4747_vm8 = vcmp.lt.s32.totalorder %v4701_v57, %v4702_v27  ;;  %vm4671_vm13 = vmand %vm7299_vm6, %vm4639_vm7 }
 0x325   :  { %v8210_v55 = vsel %vm4747_vm8, %v4701_v57, %v4702_v27  ;;  %vm4672_vm14 = vmand %vm4608_vm5, %vm4640_vm12  ;;  %v4703_v46 = vsel %vm4671_vm13, %v7467_v15, 256 }
 0x326   :  { %v4750_v37 = vshra.s32 %v8210_v55, 16  ;;  %v4704_v40 = vsel %vm4672_vm14, %v7558_v60, 256  ;;  %vm4641_vm5 = vmxor %vm10424_vm11, %vm10447_vm2  ;;  %vm10588_vm14 = vcmp.eq.s32.totalorder %v7467_v15, %v7888_v1 }
 0x327   :  { %v4303_v41 = vpop.xlane.xlu0 %4302  ;;  %v4316_v23 = vpop.xlane.xlu2 %4315  ;;  %vm4763_vm8 = vcmp.lt.s32.totalorder %v4703_v46, %v4704_v40  ;;  %vm4642_vm4 = vmxor %vm10587_vm3, %vm10447_vm2 }
 0x328   :  { %v4305_v36 = vcvt.f32.s32 %v4303_v41  ;;  %v4318_v20 = vcvt.f32.s32 %v4316_v23  ;;  %4737 = vmin.xlane.f32.xlu0 %v8212_v61  ;;  %v8218_v43 = vcvt.s32.f32 %v4750_v37  ;;  %v8220_v3 = vsel %vm4763_vm8, %v4703_v46, %v4704_v40  ;;  %vm4643_vm8 = vmxor %vm10588_vm14, %vm10447_vm2 }
 0x329   :  { %v4766_v63 = vshra.s32 %v8220_v3, 16  ;;  %v4314_v48 = vpop.xlane.xlu1 %4313 }
 0x32a   :  { %v4306_v50 = vshll.u32 %v4305_v36, 16  ;;  %4753 = vmin.xlane.f32.xlu2 %v8218_v43  ;;  %v4319_v56 = vshll.u32 %v4318_v20, 16  ;;  %v4317_v27 = vcvt.f32.s32 %v4314_v48 }
 0x32b   :  { %v8224_v26 = vcvt.s32.f32 %v4766_v63 }
 0x32c   :  { %v4307_v57 = vadd.s32 %v4306_v50, %v4304_v9  ;;  %v4320_v41 = vadd.s32 %v4319_v56, %v4317_v27 }
 0x32d   :  { %4769 = vmin.xlane.f32.xlu1 %v8224_v26 }
 0x32e   :  { %4508 = vst.msk [vmem:[#allocation4 + $0x8] sm:$0xff] %vm4490_vm0, %v4307_v57 }
 0x32f   :  { %v4327_v37 = vpop.xlane.xlu0 %4326  ;;  %v4566_v46 = vpop.xlane.xlu2 %4565  ;;  %4509 = vst.msk [vmem:[#allocation4 + $0x10] sm:$0xff] %vm4490_vm0, %v4320_v41 }
 0x330   :  { %vm7300_vm6 = vcmp.eq.f32.partialorder %v4566_v46, -inf  ;;  %vm4610_vm7 = vcmp.eq.f32.partialorder %v7886_v59, %v4566_v46  ;;  %5263 = vst.msk [vmem:[#allocation3 + $0x18] sm:$0xff] %vm10446_vm1, %v4566_v46  ;;  %v4330_v9 = vcvt.f32.s32 %v4327_v37 }
 0x331   :  { %vm4673_vm15 = vmand %vm7300_vm6, %vm4641_vm5  ;;  %v4329_v23 = vpop.xlane.xlu1 %4328 }
 0x332   :  { %vm4674_vm12 = vmand %vm4610_vm7, %vm4642_vm4  ;;  %v4705_v53 = vsel %vm4673_vm15, %v7467_v15, 256  ;;  %v4331_v36 = vcvt.f32.s32 %v4329_v23  ;;  %vm10589_vm7 = vcmp.eq.s32.totalorder %v7558_v60, %v7888_v1 }
 0x333   :  { %v4706_v40 = vsel %vm4674_vm12, %v7558_v60, 256  ;;  %vm4644_vm3 = vmxor %vm10589_vm7, %vm10447_vm2  ;;  %vm10590_vm12 = vcmp.eq.s32.totalorder %v7467_v15, %v7910_v6 }
 0x334   :  { %vm4779_vm13 = vcmp.lt.s32.totalorder %v4705_v53, %v4706_v40  ;;  %v4332_v59 = vshll.u32 %v4331_v36, 16 }
 0x335   :  { %v8241_v20 = vsel %vm4779_vm13, %v4705_v53, %v4706_v40  ;;  %vm4645_vm13 = vmxor %vm10590_vm12, %vm10447_vm2  ;;  %vm10592_vm12 = vcmp.eq.s32.totalorder %v7467_v15, %v7934_v7 }
 0x336   :  { %v4782_v50 = vshra.s32 %v8241_v20, 16  ;;  %v4333_v57 = vadd.s32 %v4332_v59, %v4330_v9 }
 0x337   :  { %v4569_v63 = vpop.xlane.xlu0 %4568  ;;  %v4340_v48 = vpop.xlane.xlu2 %4339 }
 0x338   :  { %vm7301_vm5 = vcmp.eq.f32.partialorder %v4569_v63, -inf  ;;  %vm4612_vm6 = vcmp.eq.f32.partialorder %v7908_v33, %v4569_v63  ;;  %5264 = vst.msk [vmem:[#allocation3 + $0x20] sm:$0xff] %vm10446_vm1, %v4569_v63  ;;  %v8254_v56 = vcvt.s32.f32 %v4782_v50  ;;  %v4343_v63 = vcvt.f32.s32 %v4340_v48 }
 0x339   :  { %vm4675_vm4 = vmand %vm7301_vm5, %vm4643_vm8  ;;  %4510 = vst.msk [vmem:[#allocation4 + $0x18] sm:$0xff] %vm4490_vm0, %v4333_v57  ;;  %v4572_v41 = vpop.xlane.xlu1 %4571  ;;  %vm10591_vm5 = vcmp.eq.s32.totalorder %v7558_v60, %v7910_v6 }
 0x33a   :  { %vm4676_vm15 = vmand %vm4612_vm6, %vm4644_vm3  ;;  %v4707_v27 = vsel %vm4675_vm4, %v7467_v15, 256  ;;  %4785 = vmin.xlane.f32.xlu0 %v8254_v56  ;;  %vm7302_vm14 = vcmp.eq.f32.partialorder %v4572_v41, -inf  ;;  %vm4614_vm7 = vcmp.eq.f32.partialorder %v7922_v10, %v4572_v41  ;;  %5265 = vst.msk [vmem:[#allocation3 + $0x28] sm:$0xff] %vm10446_vm1, %v4572_v41 }
 0x33b   :  { %v4708_v33 = vsel %vm4676_vm15, %v7558_v60, 256  ;;  %vm4646_vm6 = vmxor %vm10591_vm5, %vm10447_vm2 }
 0x33c   :  { %vm4795_vm8 = vcmp.lt.s32.totalorder %v4707_v27, %v4708_v33  ;;  %vm4677_vm3 = vmand %vm7302_vm14, %vm4645_vm13 }
 0x33d   :  { %v8270_v37 = vsel %vm4795_vm8, %v4707_v27, %v4708_v33  ;;  %vm4678_vm4 = vmand %vm4614_vm7, %vm4646_vm6  ;;  %v4709_v53 = vsel %vm4677_vm3, %v7467_v15, 256  ;;  %vm10593_vm8 = vcmp.eq.s32.totalorder %v7558_v60, %v7934_v7 }
 0x33e   :  { %v4798_v46 = vshra.s32 %v8270_v37, 16  ;;  %v4710_v10 = vsel %vm4678_vm4, %v7558_v60, 256  ;;  %vm4663_vm13 = vmxor %vm10592_vm12, %vm10447_vm2  ;;  %vm10594_vm4 = vcmp.eq.s32.totalorder %v7467_v15, %v7950_v54 }
 0x33f   :  { %v4342_v23 = vpop.xlane.xlu0 %4341  ;;  %v4355_v40 = vpop.xlane.xlu2 %4354  ;;  %vm4811_vm15 = vcmp.lt.s32.totalorder %v4709_v53, %v4710_v10  ;;  %vm4664_vm5 = vmxor %vm10593_vm8, %vm10447_vm2 }
 0x340   :  { %v4344_v36 = vcvt.f32.s32 %v4342_v23  ;;  %v4357_v9 = vcvt.f32.s32 %v4355_v40  ;;  %v8275_v59 = vcvt.s32.f32 %v4798_v46  ;;  %v8277_v50 = vsel %vm4811_vm15, %v4709_v53, %v4710_v10  ;;  %vm4665_vm15 = vmxor %vm10594_vm4, %vm10447_vm2 }
 0x341   :  { %v4814_v27 = vshra.s32 %v8277_v50, 16  ;;  %v4353_v41 = vpop.xlane.xlu1 %4352  ;;  %vm10597_vm4 = vcmp.eq.s32.totalorder %v7558_v60, %v7974_v47 }
 0x342   :  { %v4345_v57 = vshll.u32 %v4344_v36, 16  ;;  %4801 = vmin.xlane.f32.xlu2 %v8275_v59  ;;  %v4358_v34 = vshll.u32 %v4357_v9, 16  ;;  %v4356_v31 = vcvt.f32.s32 %v4353_v41 }
 0x343   :  { %v8281_v19 = vcvt.s32.f32 %v4814_v27 }
 0x344   :  { %v4346_v33 = vadd.s32 %v4345_v57, %v4343_v63  ;;  %v4359_v23 = vadd.s32 %v4358_v34, %v4356_v31 }
 0x345   :  { %4817 = vmin.xlane.f32.xlu1 %v8281_v19 }
 0x346   :  { %4511 = vst.msk [vmem:[#allocation4 + $0x20] sm:$0xff] %vm4490_vm0, %v4346_v33 }
 0x347   :  { %v4472_v46 = vpop.xlane.xlu2 %4471  ;;  %4512 = vst.msk [vmem:[#allocation4 + $0x28] sm:$0xff] %vm4490_vm0, %v4359_v23 }
 0x349   :  { %v4599_v48 = vpop.xlane.xlu1 %4598 }
 0x34a   :  { %vm7303_vm14 = vcmp.eq.f32.partialorder %v4599_v48, -inf  ;;  %vm4632_vm7 = vcmp.eq.f32.partialorder %v7972_v11, %v4599_v48  ;;  %5274 = vst.msk [vmem:[#allocation3 + $0x70] sm:$0xff] %vm10446_vm1, %v4599_v48  ;;  %v4474_v11 = vcvt.f32.s32 %v4472_v46 }
 0x34b   :  { %v8286_v53 = vpop.xlane.xlu0 %4482  ;;  %vm4695_vm6 = vmand %vm7303_vm14, %vm4663_vm13  ;;  %vm10595_vm13 = vcmp.eq.s32.totalorder %v7558_v60, %v7950_v54 }
 0x34c   :  { %vm4696_vm3 = vmand %vm4632_vm7, %vm4664_vm5  ;;  %v4727_v31 = vsel %vm4695_vm6, %v7467_v15, 256  ;;  %v4475_v27 = vshll.u32 %v4474_v11, 16 }
 0x34d   :  { %v4728_v40 = vsel %vm4696_vm3, %v7558_v60, 256  ;;  %vm4666_vm14 = vmxor %vm10595_vm13, %vm10447_vm2 }
 0x34e   :  { %vm4955_vm10 = vcmp.lt.s32.totalorder %v4727_v31, %v4728_v40 }
 0x34f   :  { %v4602_v34 = vpop.xlane.xlu2 %4601  ;;  %v8310_v10 = vsel %vm4955_vm10, %v4727_v31, %v4728_v40  ;;  %vm10596_vm10 = vcmp.eq.s32.totalorder %v7467_v15, %v7974_v47 }
 0x350   :  { %vm7304_vm12 = vcmp.eq.f32.partialorder %v4602_v34, -inf  ;;  %vm4634_vm11 = vcmp.eq.f32.partialorder %v7982_v22, %v4602_v34  ;;  %5275 = vst.msk [vmem:[#allocation3 + $0x78] sm:$0xff] %vm10446_vm1, %v4602_v34  ;;  %v4958_v36 = vshra.s32 %v8310_v10, 16 }
 0x351   :  { %vm4697_vm7 = vmand %vm7304_vm12, %vm4665_vm15  ;;  %v4470_v63 = vpop.xlane.xlu1 %4469 }
 0x352   :  { %vm4698_vm8 = vmand %vm4634_vm11, %vm4666_vm14  ;;  %v4729_v9 = vsel %vm4697_vm7, %v7467_v15, 256  ;;  %v4473_v41 = vcvt.f32.s32 %v4470_v63  ;;  %v8315_v33 = vcvt.s32.f32 %v4958_v36  ;;  %vm10598_vm14 = vcmp.eq.s32.totalorder %v7467_v15, %v7988_v17 }
 0x353   :  { %v4366_v57 = vpop.xlane.xlu0 %4365  ;;  %v4730_v22 = vsel %vm4698_vm8, %v7558_v60, 256  ;;  %vm4647_vm11 = vmxor %vm10596_vm10, %vm10447_vm2 }
 0x354   :  { %vm4971_vm5 = vcmp.lt.s32.totalorder %v4729_v9, %v4730_v22  ;;  %v4476_v46 = vadd.s32 %v4475_v27, %v4473_v41  ;;  %4961 = vmin.xlane.f32.xlu1 %v8315_v33  ;;  %vm4648_vm15 = vmxor %vm10597_vm4, %vm10447_vm2  ;;  %v4369_v54 = vcvt.f32.s32 %v4366_v57 }
 0x355   :  { %v8317_v23 = vsel %vm4971_vm5, %v4729_v9, %v4730_v22  ;;  %vm4649_vm7 = vmxor %vm10598_vm14, %vm10447_vm2  ;;  %v4486_v22 = vcvt.f32.s32 %v8286_v53 }
 0x356   :  { %v4974_v48 = vshra.s32 %v8317_v23, 16  ;;  %4521 = vst.msk [vmem:[#allocation4 + $0x70] sm:$0xff] %vm4490_vm0, %v4476_v46 }
 0x357   :  { %v4575_v31 = vpop.xlane.xlu2 %4574 }
 0x358   :  { %vm7305_vm6 = vcmp.eq.f32.partialorder %v4575_v31, -inf  ;;  %vm4616_vm3 = vcmp.eq.f32.partialorder %v8011_v28, %v4575_v31  ;;  %v8327_v34 = vcvt.s32.f32 %v4974_v48  ;;  %5266 = vst.msk [vmem:[#allocation3 + $0x30] sm:$0xff] %vm10446_vm1, %v4575_v31 }
 0x359   :  { %vm4679_vm12 = vmand %vm7305_vm6, %vm4647_vm11  ;;  %v4485_v11 = vpop.xlane.xlu1 %4484  ;;  %vm10599_vm11 = vcmp.eq.s32.totalorder %v7558_v60, %v7988_v17 }
 0x35a   :  { %4977 = vmin.xlane.f32.xlu0 %v8327_v34  ;;  %vm4680_vm13 = vmand %vm4616_vm3, %vm4648_vm15  ;;  %v4711_v40 = vsel %vm4679_vm12, %v7467_v15, 256  ;;  %v4487_v28 = vcvt.f32.s32 %v4485_v11  ;;  %vm10600_vm12 = vcmp.eq.s32.totalorder %v7467_v15, %v8021_v44 }
 0x35b   :  { %v4578_v36 = vpop.xlane.xlu0 %4577  ;;  %v4712_v9 = vsel %vm4680_vm13, %v7558_v60, 256  ;;  %vm4650_vm6 = vmxor %vm10599_vm11, %vm10447_vm2 }
 0x35c   :  { %vm7306_vm8 = vcmp.eq.f32.partialorder %v4578_v36, -inf  ;;  %vm4618_vm5 = vcmp.eq.f32.partialorder %v8028_v42, %v4578_v36  ;;  %5267 = vst.msk [vmem:[#allocation3 + $0x38] sm:$0xff] %vm10446_vm1, %v4578_v36  ;;  %vm4827_vm10 = vcmp.lt.s32.totalorder %v4711_v40, %v4712_v9  ;;  %v4488_v27 = vshll.u32 %v4487_v28, 16  ;;  %vm4651_vm13 = vmxor %vm10600_vm12, %vm10447_vm2 }
 0x35d   :  { %v8347_v63 = vsel %vm4827_vm10, %v4711_v40, %v4712_v9  ;;  %vm4681_vm3 = vmand %vm7306_vm8, %vm4649_vm7  ;;  %vm10601_vm8 = vcmp.eq.s32.totalorder %v7558_v60, %v8021_v44 }
 0x35e   :  { %v4830_v41 = vshra.s32 %v8347_v63, 16  ;;  %vm4682_vm4 = vmand %vm4618_vm5, %vm4650_vm6  ;;  %v4713_v46 = vsel %vm4681_vm3, %v7467_v15, 256  ;;  %v4489_v31 = vadd.s32 %v4488_v27, %v4486_v22  ;;  %vm10602_vm6 = vcmp.eq.s32.totalorder %v7467_v15, %v8045_v45 }
 0x35f   :  { %v4379_v42 = vpop.xlane.xlu2 %4378  ;;  %v4714_v48 = vsel %vm4682_vm4, %v7558_v60, 256  ;;  %vm4652_vm5 = vmxor %vm10601_vm8, %vm10447_vm2 }
 0x360   :  { %v8353_v11 = vcvt.s32.f32 %v4830_v41  ;;  %vm4843_vm15 = vcmp.lt.s32.totalorder %v4713_v46, %v4714_v48  ;;  %4522 = vst.msk [vmem:[#allocation4 + $0x78] sm:$0xff] %vm4490_vm0, %v4489_v31  ;;  %v4382_v7 = vcvt.f32.s32 %v4379_v42  ;;  %vm4653_vm3 = vmxor %vm10602_vm6, %vm10447_vm2 }
 0x361   :  { %v8355_v36 = vsel %vm4843_vm15, %v4713_v46, %v4714_v48  ;;  %v4368_v40 = vpop.xlane.xlu1 %4367 }
 0x362   :  { %4833 = vmin.xlane.f32.xlu0 %v8353_v11  ;;  %v4846_v53 = vshra.s32 %v8355_v36, 16  ;;  %v4370_v28 = vcvt.f32.s32 %v4368_v40 }
 0x363   :  { %v4381_v9 = vpop.xlane.xlu0 %4380 }
 0x364   :  { %v4383_v17 = vcvt.f32.s32 %v4381_v9  ;;  %v8360_v47 = vcvt.s32.f32 %v4846_v53  ;;  %v4371_v22 = vshll.u32 %v4370_v28, 16 }
 0x366   :  { %v4384_v27 = vshll.u32 %v4383_v17, 16  ;;  %4849 = vmin.xlane.f32.xlu2 %v8360_v47  ;;  %v4372_v46 = vadd.s32 %v4371_v22, %v4369_v54 }
 0x367   :  { %v4394_v41 = vpop.xlane.xlu2 %4393 }
 0x368   :  { %v4385_v48 = vadd.s32 %v4384_v27, %v4382_v7  ;;  %4513 = vst.msk [vmem:[#allocation4 + $0x30] sm:$0xff] %vm4490_vm0, %v4372_v46  ;;  %v4396_v54 = vcvt.f32.s32 %v4394_v41 }
 0x369   :  { %v4581_v31 = vpop.xlane.xlu1 %4580 }
 0x36a   :  { %4514 = vst.msk [vmem:[#allocation4 + $0x38] sm:$0xff] %vm4490_vm0, %v4385_v48  ;;  %vm7307_vm14 = vcmp.eq.f32.partialorder %v4581_v31, -inf  ;;  %vm4620_vm7 = vcmp.eq.f32.partialorder %v8070_v0, %v4581_v31  ;;  %v4397_v40 = vshll.u32 %v4396_v54, 16 }
 0x36b   :  { %v4405_v6 = vpop.xlane.xlu0 %4404  ;;  %5268 = vst.msk [vmem:[#allocation3 + $0x40] sm:$0xff] %vm10446_vm1, %v4581_v31  ;;  %vm4683_vm10 = vmand %vm7307_vm14, %vm4651_vm13  ;;  %vm10603_vm13 = vcmp.eq.s32.totalorder %v7558_v60, %v8045_v45 }
 0x36c   :  { %vm4684_vm11 = vmand %vm4620_vm7, %vm4652_vm5  ;;  %v4715_v7 = vsel %vm4683_vm10, %v7467_v15, 256  ;;  %vm10604_vm5 = vcmp.eq.s32.totalorder %v7467_v15, %v8063_v39 }
 0x36d   :  { %v4716_v57 = vsel %vm4684_vm11, %v7558_v60, 256  ;;  %vm4654_vm14 = vmxor %vm10603_vm13, %vm10447_vm2 }
 0x36e   :  { %vm4859_vm12 = vcmp.lt.s32.totalorder %v4715_v7, %v4716_v57  ;;  %vm4655_vm10 = vmxor %vm10604_vm5, %vm10447_vm2 }
 0x36f   :  { %v4584_v17 = vpop.xlane.xlu2 %4583  ;;  %v8387_v0 = vsel %vm4859_vm12, %v4715_v7, %v4716_v57 }
 0x370   :  { %vm7308_vm4 = vcmp.eq.f32.partialorder %v4584_v17, -inf  ;;  %vm4622_vm15 = vcmp.eq.f32.partialorder %v8082_v32, %v4584_v17  ;;  %5269 = vst.msk [vmem:[#allocation3 + $0x48] sm:$0xff] %vm10446_vm1, %v4584_v17  ;;  %v4862_v42 = vshra.s32 %v8387_v0, 16 }
 0x371   :  { %vm4685_vm7 = vmand %vm7308_vm4, %vm4653_vm3  ;;  %v4392_v9 = vpop.xlane.xlu1 %4391  ;;  %vm10605_vm3 = vcmp.eq.s32.totalorder %v7558_v60, %v8063_v39 }
 0x372   :  { %vm4686_vm8 = vmand %vm4622_vm15, %vm4654_vm14  ;;  %v4717_v53 = vsel %vm4685_vm7, %v7467_v15, 256  ;;  %v4395_v22 = vcvt.f32.s32 %v4392_v9  ;;  %v8398_v27 = vcvt.s32.f32 %v4862_v42  ;;  %vm10606_vm7 = vcmp.eq.s32.totalorder %v7467_v15, %v8092_v62 }
 0x373   :  { %v4587_v28 = vpop.xlane.xlu0 %4586  ;;  %v4718_v32 = vsel %vm4686_vm8, %v7558_v60, 256  ;;  %vm4656_vm4 = vmxor %vm10605_vm3, %vm10447_vm2 }
 0x374   :  { %vm7309_vm11 = vcmp.eq.f32.partialorder %v4587_v28, -inf  ;;  %vm4624_vm6 = vcmp.eq.f32.partialorder %v8100_v58, %v4587_v28  ;;  %5270 = vst.msk [vmem:[#allocation3 + $0x50] sm:$0xff] %vm10446_vm1, %v4587_v28  ;;  %vm4875_vm15 = vcmp.lt.s32.totalorder %v4717_v53, %v4718_v32  ;;  %v4398_v41 = vadd.s32 %v4397_v40, %v4395_v22  ;;  %4865 = vmin.xlane.f32.xlu1 %v8398_v27  ;;  %vm4657_vm8 = vmxor %vm10606_vm7, %vm10447_vm2 }
 0x375   :  { %vm4687_vm12 = vmand %vm7309_vm11, %vm4655_vm10  ;;  %v8405_v46 = vsel %vm4875_vm15, %v4717_v53, %v4718_v32  ;;  %v4408_v32 = vcvt.f32.s32 %v4405_v6  ;;  %vm10607_vm11 = vcmp.eq.s32.totalorder %v7558_v60, %v8092_v62  ;;  %vm10608_vm15 = vcmp.eq.s32.totalorder %v7467_v15, %v8117_v38 }
 0x376   :  { %vm4688_vm13 = vmand %vm4624_vm6, %vm4656_vm4  ;;  %v4719_v48 = vsel %vm4687_vm12, %v7467_v15, 256  ;;  %v4878_v31 = vshra.s32 %v8405_v46, 16  ;;  %4515 = vst.msk [vmem:[#allocation4 + $0x40] sm:$0xff] %vm4490_vm0, %v4398_v41 }
 0x377   :  { %v4418_v58 = vpop.xlane.xlu2 %4417  ;;  %v4720_v7 = vsel %vm4688_vm13, %v7558_v60, 256  ;;  %vm4658_vm6 = vmxor %vm10607_vm11, %vm10447_vm2 }
 0x378   :  { %vm4891_vm14 = vcmp.lt.s32.totalorder %v4719_v48, %v4720_v7  ;;  %v8411_v54 = vcvt.s32.f32 %v4878_v31  ;;  %v4421_v22 = vcvt.f32.s32 %v4418_v58  ;;  %vm4659_vm12 = vmxor %vm10608_vm15, %vm10447_vm2 }
 0x379   :  { %v8413_v17 = vsel %vm4891_vm14, %v4719_v48, %v4720_v7  ;;  %v4407_v42 = vpop.xlane.xlu1 %4406 }
 0x37a   :  { %v4894_v57 = vshra.s32 %v8413_v17, 16  ;;  %4881 = vmin.xlane.f32.xlu0 %v8411_v54  ;;  %v4409_v40 = vcvt.f32.s32 %v4407_v42 }
 0x37b   :  { %v4420_v53 = vpop.xlane.xlu0 %4419 }
 0x37c   :  { %v4422_v9 = vcvt.f32.s32 %v4420_v53  ;;  %v8417_v28 = vcvt.s32.f32 %v4894_v57  ;;  %v4410_v39 = vshll.u32 %v4409_v40, 16 }
 0x37e   :  { %v4423_v45 = vshll.u32 %v4422_v9, 16  ;;  %4897 = vmin.xlane.f32.xlu2 %v8417_v28  ;;  %v4411_v31 = vadd.s32 %v4410_v39, %v4408_v32 }
 0x37f   :  { %v4433_v41 = vpop.xlane.xlu2 %4432 }
 0x380   :  { %v4424_v48 = vadd.s32 %v4423_v45, %v4421_v22  ;;  %4516 = vst.msk [vmem:[#allocation4 + $0x48] sm:$0xff] %vm4490_vm0, %v4411_v31  ;;  %v4435_v6 = vcvt.f32.s32 %v4433_v41 }
 0x381   :  { %v4590_v7 = vpop.xlane.xlu1 %4589 }
 0x382   :  { %4517 = vst.msk [vmem:[#allocation4 + $0x50] sm:$0xff] %vm4490_vm0, %v4424_v48  ;;  %vm7310_vm5 = vcmp.eq.f32.partialorder %v4590_v7, -inf  ;;  %vm4626_vm10 = vcmp.eq.f32.partialorder %v8141_v2, %v4590_v7  ;;  %v4436_v53 = vshll.u32 %v4435_v6, 16 }
 0x383   :  { %v4444_v44 = vpop.xlane.xlu0 %4443  ;;  %5271 = vst.msk [vmem:[#allocation3 + $0x58] sm:$0xff] %vm10446_vm1, %v4590_v7  ;;  %vm4689_vm3 = vmand %vm7310_vm5, %vm4657_vm8  ;;  %vm10609_vm8 = vcmp.eq.s32.totalorder %v7558_v60, %v8117_v38  ;;  %v4749_v38 = vand.u32 65535, %v8210_v55 }
 0x384   :  { %vm4690_vm4 = vmand %vm4626_vm10, %vm4658_vm6  ;;  %v4721_v45 = vsel %vm4689_vm3, %v7467_v15, 256  ;;  %vm10610_vm6 = vcmp.eq.s32.totalorder %v7467_v15, %v8135_v4 }
 0x385   :  { %v4722_v58 = vsel %vm4690_vm4, %v7558_v60, 256  ;;  %vm4660_vm5 = vmxor %vm10609_vm8, %vm10447_vm2 }
 0x386   :  { %vm4907_vm7 = vcmp.lt.s32.totalorder %v4721_v45, %v4722_v58  ;;  %vm4661_vm3 = vmxor %vm10610_vm6, %vm10447_vm2 }
 0x387   :  { %v4593_v39 = vpop.xlane.xlu2 %4592  ;;  %v8444_v2 = vsel %vm4907_vm7, %v4721_v45, %v4722_v58 }
 0x388   :  { %vm7311_vm13 = vcmp.eq.f32.partialorder %v4593_v39, -inf  ;;  %vm4628_vm14 = vcmp.eq.f32.partialorder %v8153_v51, %v4593_v39  ;;  %5272 = vst.msk [vmem:[#allocation3 + $0x60] sm:$0xff] %vm10446_vm1, %v4593_v39  ;;  %v4910_v57 = vshra.s32 %v8444_v2, 16 }
 0x389   :  { %vm4691_vm10 = vmand %vm7311_vm13, %vm4659_vm12  ;;  %v4431_v40 = vpop.xlane.xlu1 %4430  ;;  %vm10611_vm12 = vcmp.eq.s32.totalorder %v7558_v60, %v8135_v4 }
 0x38a   :  { %vm4692_vm11 = vmand %vm4628_vm14, %vm4660_vm5  ;;  %v4723_v42 = vsel %vm4691_vm10, %v7467_v15, 256  ;;  %v4434_v32 = vcvt.f32.s32 %v4431_v40  ;;  %v8455_v22 = vcvt.s32.f32 %v4910_v57 }
 0x38b   :  { %v4596_v9 = vpop.xlane.xlu0 %4595  ;;  %v4724_v51 = vsel %vm4692_vm11, %v7558_v60, 256  ;;  %vm4662_vm13 = vmxor %vm10611_vm12, %vm10447_vm2 }
 0x38c   :  { %vm7312_vm4 = vcmp.eq.f32.partialorder %v4596_v9, -inf  ;;  %vm4630_vm15 = vcmp.eq.f32.partialorder %v8168_v30, %v4596_v9  ;;  %5273 = vst.msk [vmem:[#allocation3 + $0x68] sm:$0xff] %vm10446_vm1, %v4596_v9  ;;  %vm4923_vm14 = vcmp.lt.s32.totalorder %v4723_v42, %v4724_v51  ;;  %v4437_v41 = vadd.s32 %v4436_v53, %v4434_v32  ;;  %4913 = vmin.xlane.f32.xlu1 %v8455_v22 }
 0x38d   :  { %vm4693_vm7 = vmand %vm7312_vm4, %vm4661_vm3  ;;  %v8462_v31 = vsel %vm4923_vm14, %v4723_v42, %v4724_v51  ;;  %v4447_v51 = vcvt.f32.s32 %v4444_v44  ;;  %vm10642_vm1 = vcmp.eq.s32.totalorder %v7558_v60, %v7888_v1 }
 0x38e   :  { %vm4694_vm8 = vmand %vm4630_vm15, %vm4662_vm13  ;;  %v4725_v48 = vsel %vm4693_vm7, %v7467_v15, 256  ;;  %v4926_v30 = vshra.s32 %v8462_v31, 16  ;;  %4518 = vst.msk [vmem:[#allocation4 + $0x58] sm:$0xff] %vm4490_vm0, %v4437_v41 }
 0x38f   :  { %v4726_v7 = vsel %vm4694_vm8, %v7558_v60, 256  ;;  %v4457_v39 = vpop.xlane.xlu2 %4456 }
 0x390   :  { %vm4939_vm5 = vcmp.lt.s32.totalorder %v4725_v48, %v4726_v7  ;;  %v8468_v45 = vcvt.s32.f32 %v4926_v30  ;;  %v4460_v32 = vcvt.f32.s32 %v4457_v39 }
 0x391   :  { %v8470_v6 = vsel %vm4939_vm5, %v4725_v48, %v4726_v7  ;;  %v4446_v57 = vpop.xlane.xlu1 %4445  ;;  %v4733_v48 = vand.u32 65535, %v8185_v5  ;;  %v4765_v5 = vand.u32 65535, %v8220_v3 }
 0x392   :  { %v4942_v58 = vshra.s32 %v8470_v6, 16  ;;  %4929 = vmin.xlane.f32.xlu0 %v8468_v45  ;;  %v4448_v53 = vcvt.f32.s32 %v4446_v57 }
 0x393   :  { %v4459_v42 = vpop.xlane.xlu0 %4458 }
 0x394   :  { %v4461_v40 = vcvt.f32.s32 %v4459_v42  ;;  %v8474_v9 = vcvt.s32.f32 %v4942_v58  ;;  %v4449_v4 = vshll.u32 %v4448_v53, 16  ;;  %v4735_v58 = vcvt.s32.f32 %v4733_v48 }
 0x395   :  { %v4751_v42 = vcvt.s32.f32 %v4749_v38  ;;  %v4767_v53 = vcvt.s32.f32 %v4765_v5  ;;  %v4813_v48 = vand.u32 65535, %v8277_v50  ;;  %v4973_v50 = vand.u32 65535, %v8317_v23 }
 0x396   :  { %v4462_v41 = vshll.u32 %v4461_v40, 16  ;;  %4945 = vmin.xlane.f32.xlu2 %v8474_v9  ;;  %v4450_v30 = vadd.s32 %v4449_v4, %v4447_v51  ;;  %v4845_v23 = vand.u32 65535, %v8355_v36 }
 0x398   :  { %v4463_v7 = vadd.s32 %v4462_v41, %v4460_v32  ;;  %4519 = vst.msk [vmem:[#allocation4 + $0x60] sm:$0xff] %vm4490_vm0, %v4450_v30  ;;  %v4815_v30 = vcvt.s32.f32 %v4813_v48 }
 0x39a   :  { %4520 = vst.msk [vmem:[#allocation4 + $0x68] sm:$0xff] %vm4490_vm0, %v4463_v7 }
 0x39b   :  { %v8481_v57 = vpop.xlane.xlu0 %4737 }
 0x39c   :  { %vm4739_vm10 = vcmp.eq.f32.partialorder %v8212_v61, %v8481_v57  ;;  %v4781_v61 = vand.u32 65535, %v8241_v20 }
 0x39d   :  { %v8485_v44 = vpop.xlane.xlu2 %4753  ;;  %v4740_v39 = vsel %vm4739_vm10, %v4735_v58, inf }
 0x39e   :  { %4741 = vmin.xlane.f32.xlu1 %v4740_v39  ;;  %vm4755_vm11 = vcmp.eq.f32.partialorder %v8218_v43, %v8485_v44  ;;  %v4783_v38 = vcvt.s32.f32 %v4781_v61  ;;  %v4797_v43 = vand.u32 65535, %v8270_v37  ;;  %v4957_v37 = vand.u32 65535, %v8310_v10 }
 0x39f   :  { %v4756_v4 = vsel %vm4755_vm11, %v4751_v42, inf  ;;  %v4975_v42 = vcvt.s32.f32 %v4973_v50  ;;  %v4829_v10 = vand.u32 65535, %v8347_v63  ;;  %v4861_v63 = vand.u32 65535, %v8387_v0 }
 0x3a0   :  { %4757 = vmin.xlane.f32.xlu0 %v4756_v4  ;;  %v8490_v55 = vpop.xlane.xlu1 %4769  ;;  %v4799_v41 = vcvt.s32.f32 %v4797_v43  ;;  %v4959_v58 = vcvt.s32.f32 %v4957_v37 }
 0x3a1   :  { %vm4771_vm0 = vcmp.eq.f32.partialorder %v8224_v26, %v8490_v55  ;;  %v4831_v4 = vcvt.s32.f32 %v4829_v10  ;;  %v4776_v10 = vcvt.f32.s32 %v8490_v55 }
 0x3a2   :  { %v4772_v40 = vsel %vm4771_vm0, %v4767_v53, inf }
 0x3a3   :  { %4773 = vmin.xlane.f32.xlu2 %v4772_v40  ;;  %v4847_v40 = vcvt.s32.f32 %v4845_v23 }
 0x3ad   :  { %v8495_v51 = vpop.xlane.xlu0 %4785 }
 0x3ae   :  { %vm4787_vm6 = vcmp.eq.f32.partialorder %v8254_v56, %v8495_v51 }
 0x3af   :  { %v4788_v3 = vsel %vm4787_vm6, %v4783_v38, inf  ;;  %v4863_v38 = vcvt.s32.f32 %v4861_v63 }
 0x3b0   :  { %4789 = vmin.xlane.f32.xlu1 %v4788_v3  ;;  %v4893_v3 = vand.u32 65535, %v8413_v17 }
 0x3b2   :  { %v4895_v48 = vcvt.s32.f32 %v4893_v3 }
 0x3b5   :  { %v8500_v32 = vpop.xlane.xlu2 %4801 }
 0x3b6   :  { %vm4803_vm3 = vcmp.eq.f32.partialorder %v8275_v59, %v8500_v32 }
 0x3b7   :  { %v4804_v26 = vsel %vm4803_vm3, %v4799_v41, inf }
 0x3b8   :  { %4805 = vmin.xlane.f32.xlu0 %v4804_v26  ;;  %v8505_v20 = vpop.xlane.xlu1 %4817 }
 0x3b9   :  { %vm4819_vm4 = vcmp.eq.f32.partialorder %v8281_v19, %v8505_v20 }
 0x3ba   :  { %v4820_v56 = vsel %vm4819_vm4, %v4815_v30, inf  ;;  %vm10612_vm4 = vcmp.eq.s32.totalorder %v7467_v15, %v7801_v24 }
 0x3bb   :  { %4821 = vmin.xlane.f32.xlu2 %v4820_v56  ;;  %v4941_v56 = vand.u32 65535, %v8470_v6  ;;  %v4760_v6 = vcvt.f32.s32 %v8485_v44 }
 0x3bd   :  { %v4943_v50 = vcvt.s32.f32 %v4941_v56  ;;  %v10624_v56 = vmov 0 }
 0x3c7   :  { %v8510_v7 = vpop.xlane.xlu1 %4961 }
 0x3c8   :  { %vm4963_vm15 = vcmp.eq.f32.partialorder %v8315_v33, %v8510_v7 }
 0x3c9   :  { %v4964_v59 = vsel %vm4963_vm15, %v4959_v58, inf }
 0x3ca   :  { %4965 = vmin.xlane.f32.xlu2 %v4964_v59 }
 0x3cd   :  { %v8515_v39 = vpop.xlane.xlu0 %4977 }
 0x3ce   :  { %vm4979_vm12 = vcmp.eq.f32.partialorder %v8327_v34, %v8515_v39 }
 0x3cf   :  { %v4980_v19 = vsel %vm4979_vm12, %v4975_v42, inf }
 0x3d0   :  { %4981 = vmin.xlane.f32.xlu1 %v4980_v19 }
 0x3d5   :  { %v8520_v5 = vpop.xlane.xlu0 %4833 }
 0x3d6   :  { %vm4835_vm13 = vcmp.eq.f32.partialorder %v8353_v11, %v8520_v5  ;;  %v4877_v11 = vand.u32 65535, %v8405_v46  ;;  %v4909_v46 = vand.u32 65535, %v8444_v2 }
 0x3d7   :  { %v4836_v33 = vsel %vm4835_vm13, %v4831_v4, inf  ;;  %v4761_v4 = vshll.u32 %v4760_v6, 16 }
 0x3d8   :  { %4837 = vmin.xlane.f32.xlu1 %v4836_v33  ;;  %v4879_v41 = vcvt.s32.f32 %v4877_v11  ;;  %v4911_v17 = vcvt.s32.f32 %v4909_v46 }
 0x3d9   :  { %v8525_v53 = vpop.xlane.xlu2 %4849 }
 0x3da   :  { %vm4851_vm14 = vcmp.eq.f32.partialorder %v8360_v47, %v8525_v53 }
 0x3db   :  { %v4852_v34 = vsel %vm4851_vm14, %v4847_v40, inf  ;;  %vm10616_vm14 = vcmp.eq.s32.totalorder %v7558_v60, %v7801_v24 }
 0x3dc   :  { %4853 = vmin.xlane.f32.xlu0 %v4852_v34 }
 0x3e7   :  { %v8530_v61 = vpop.xlane.xlu1 %4865 }
 0x3e8   :  { %vm4867_vm7 = vcmp.eq.f32.partialorder %v8398_v27, %v8530_v61 }
 0x3e9   :  { %v4868_v36 = vsel %vm4867_vm7, %v4863_v38, inf  ;;  %v10617_v38 = vmov 0 }
 0x3ea   :  { %4869 = vmin.xlane.f32.xlu2 %v4868_v36 }
 0x3ed   :  { %v8536_v43 = vpop.xlane.xlu0 %4881 }
 0x3ee   :  { %vm4883_vm8 = vcmp.eq.f32.partialorder %v8411_v54, %v8536_v43  ;;  %v4925_v54 = vand.u32 65535, %v8462_v31  ;;  %v4744_v31 = vcvt.f32.s32 %v8481_v57  ;;  %v10613_v57 = vmov 0 }
 0x3ef   :  { %v4884_v47 = vsel %vm4883_vm8, %v4879_v41, inf }
 0x3f0   :  { %4885 = vmin.xlane.f32.xlu1 %v4884_v47  ;;  %v4927_v58 = vcvt.s32.f32 %v4925_v54  ;;  %v4745_v42 = vshll.u32 %v4744_v31, 16  ;;  %v10621_v54 = vmov 0 }
 0x3f1   :  { %v8540_v0 = vpop.xlane.xlu2 %4897 }
 0x3f2   :  { %vm4899_vm5 = vcmp.eq.f32.partialorder %v8417_v28, %v8540_v0 }
 0x3f3   :  { %v4900_v27 = vsel %vm4899_vm5, %v4895_v48, inf }
 0x3f4   :  { %4901 = vmin.xlane.f32.xlu0 %v4900_v27 }
 0x3ff   :  { %v8545_v26 = vpop.xlane.xlu1 %4913 }
 0x400   :  { %vm4915_vm10 = vcmp.eq.f32.partialorder %v8455_v22, %v8545_v26 }
 0x401   :  { %v4916_v30 = vsel %vm4915_vm10, %v4911_v17, inf  ;;  %vm10620_vm10 = vcmp.eq.s32.totalorder %v7467_v15, %v7823_v49 }
 0x402   :  { %4917 = vmin.xlane.f32.xlu2 %v4916_v30 }
 0x405   :  { %v8551_v37 = vpop.xlane.xlu0 %4929 }
 0x406   :  { %vm4931_vm11 = vcmp.eq.f32.partialorder %v8468_v45, %v8551_v37 }
 0x407   :  { %v4932_v28 = vsel %vm4931_vm11, %v4927_v58, inf  ;;  %v10627_v58 = vmov 0 }
 0x408   :  { %4933 = vmin.xlane.f32.xlu1 %v4932_v28 }
 0x409   :  { %v8555_v2 = vpop.xlane.xlu2 %4945 }
 0x40a   :  { %vm4947_vm0 = vcmp.eq.f32.partialorder %v8474_v9, %v8555_v2  ;;  %v4777_v9 = vshll.u32 %v4776_v10, 16 }
 0x40b   :  { %v4948_v22 = vsel %vm4947_vm0, %v4943_v50, inf  ;;  %vm10623_vm0 = vcmp.eq.s32.totalorder %v7558_v60, %v7823_v49  ;;  %v10630_v49 = vmov 0 }
 0x40c   :  { %4949 = vmin.xlane.f32.xlu0 %v4948_v22  ;;  %v4792_v22 = vcvt.f32.s32 %v8495_v51  ;;  %v4808_v51 = vcvt.f32.s32 %v8500_v32 }
 0x40e   :  { %v4809_v32 = vshll.u32 %v4808_v51, 16  ;;  %v10648_v51 = vmov 0 }
 0x411   :  { %v4742_v59 = vpop.xlane.xlu1 %4741 }
 0x412   :  { %v4743_v19 = vcvt.f32.s32 %v4742_v59 }
 0x413   :  { %v4758_v45 = vpop.xlane.xlu0 %4757 }
 0x414   :  { %v4746_v23 = vadd.s32 %v4745_v42, %v4743_v19  ;;  %v4759_v33 = vcvt.f32.s32 %v4758_v45 }
 0x416   :  { %v4762_v40 = vadd.s32 %v4761_v4, %v4759_v33  ;;  %vm4987_vm6 = vcmp.eq.s32.totalorder %v7467_v15, %v4746_v23  ;;  %vm4988_vm3 = vcmp.eq.s32.totalorder %v7558_v60, %v4746_v23  ;;  %v4774_v34 = vpop.xlane.xlu2 %4773 }
 0x417   :  { %vm8567_vm15 = vmor %vm10612_vm4, %vm4987_vm6  ;;  %v5019_v44 = vsel %vm4987_vm6, %v7452_v8, 0  ;;  %v5020_v55 = vsel %vm4988_vm3, %v7467_v15, 0  ;;  %v4775_v63 = vcvt.f32.s32 %v4774_v34  ;;  %vm10629_vm4 = vcmp.eq.s32.totalorder %v7558_v60, %v7844_v52 }
 0x418   :  { %v10614_v57 = vsel %vm8567_vm15, 4294967295, %v10613_v57  ;;  %vm4989_vm12 = vcmp.eq.s32.totalorder %v7467_v15, %v4762_v40  ;;  %vm4990_vm13 = vcmp.eq.s32.totalorder %v7558_v60, %v4762_v40  ;;  %vm8578_vm7 = vmor %vm10616_vm14, %vm4988_vm3  ;;  %v5051_v36 = vadd.s32 %v5020_v55, %v5019_v44 }
 0x419   :  { %10615 = vst [vmem:[#allocation47_spill] sm:$0xff] %v10614_v57  ;;  %v10618_v38 = vsel %vm8578_vm7, 4294967295, %v10617_v38  ;;  %v8585_v11 = vsel %vm8578_vm7, -inf, %v7475_v18  ;;  %v5021_v3 = vsel %vm4989_vm12, %v7456_v12, 0  ;;  %v5022_v41 = vsel %vm4990_vm13, %v7467_v15, 0  ;;  %vm8601_vm11 = vmor %vm10620_vm10, %vm4989_vm12 }
 0x41a   :  { %10619 = vst [vmem:[#allocation48_spill] sm:$0xff] %v10618_v38  ;;  %v4778_v47 = vadd.s32 %v4777_v9, %v4775_v63  ;;  %v5064_v24 = vadd.s32 %v5022_v41, %v5021_v3  ;;  %v5052_v48 = vand.u32 65535, %v5051_v36  ;;  %v5053_v27 = vshrl.u32 %v5051_v36, 16  ;;  %5357 = vmax.xlane.f32.xlu1 %v8585_v11  ;;  %vm8610_vm6 = vmor %vm10623_vm0, %vm4990_vm13 }
 0x41b   :  { %v10622_v54 = vsel %vm8601_vm11, 4294967295, %v10621_v54  ;;  %v10625_v56 = vsel %vm8610_vm6, 4294967295, %v10624_v56  ;;  %v8634_v31 = vsel %vm8610_vm6, -inf, %v7484_v21  ;;  %v4793_v52 = vshll.u32 %v4792_v22, 16 }
 0x41c   :  { %vm4991_vm8 = vcmp.eq.s32.totalorder %v7467_v15, %v4778_v47  ;;  %vm4992_vm5 = vcmp.eq.s32.totalorder %v7558_v60, %v4778_v47  ;;  %v5054_v46 = vcvt.s32.f32 %v5052_v48  ;;  %v5055_v17 = vcvt.s32.f32 %v5053_v27  ;;  %10626 = vst [vmem:[#allocation49_spill] sm:$0xff] %v10625_v56 }
 0x41d   :  { %v5065_v30 = vand.u32 65535, %v5064_v24  ;;  %vm8617_vm3 = vmor %vm4222_vm9, %vm4991_vm8  ;;  %v5023_v28 = vsel %vm4991_vm8, %v7459_v13, 0  ;;  %v5024_v50 = vsel %vm4992_vm5, %v7467_v15, 0  ;;  %v5066_v23 = vshrl.u32 %v5064_v24, 16 }
 0x41e   :  { %5056 = vadd.xlane.f32.xlu2 %v5054_v46  ;;  %5058 = vadd.xlane.f32.xlu0 %v5055_v17  ;;  %v10628_v58 = vsel %vm8617_vm3, 4294967295, %v10627_v58  ;;  %vm8626_vm12 = vmor %vm10629_vm4, %vm4992_vm5  ;;  %v5077_v42 = vadd.s32 %v5024_v50, %v5023_v28  ;;  %vm10632_vm14 = vcmp.eq.s32.totalorder %v7467_v15, %v7867_v35  ;;  %v10633_v55 = vmov 0 }
 0x41f   :  { %v10631_v49 = vsel %vm8626_vm12, 4294967295, %v10630_v49  ;;  %v5067_v6 = vcvt.s32.f32 %v5065_v30  ;;  %v8639_v59 = vsel %vm8626_vm12, -inf, %v7491_v25  ;;  %v4824_v63 = vcvt.f32.s32 %v8505_v20 }
 0x420   :  { %v5079_v45 = vshrl.u32 %v5077_v42, 16  ;;  %v5078_v33 = vand.u32 65535, %v5077_v42  ;;  %vm10635_vm5 = vcmp.eq.s32.totalorder %v7558_v60, %v7867_v35  ;;  %v10636_v3 = vmov 0 }
 0x421   :  { %v5068_v41 = vcvt.s32.f32 %v5066_v23  ;;  %v4825_v46 = vshll.u32 %v4824_v63, 16  ;;  %v10639_v42 = vmov 0  ;;  %v10651_v23 = vmov 0 }
 0x422   :  { %5069 = vadd.xlane.f32.xlu1 %v5067_v6  ;;  %v5081_v40 = vcvt.s32.f32 %v5079_v45  ;;  %v5080_v47 = vcvt.s32.f32 %v5078_v33  ;;  %v4936_v21 = vcvt.f32.s32 %v8551_v37  ;;  %v4952_v13 = vcvt.f32.s32 %v8555_v2 }
 0x423   :  { %v4790_v19 = vpop.xlane.xlu1 %4789 }
 0x424   :  { %v4791_v10 = vcvt.f32.s32 %v4790_v19 }
 0x426   :  { %v4794_v4 = vadd.s32 %v4793_v52, %v4791_v10  ;;  %5360 = vmax.xlane.f32.xlu2 %v8634_v31  ;;  %5363 = vmax.xlane.f32.xlu0 %v8639_v59  ;;  %v10643_v10 = vmov 0 }
 0x428   :  { %vm4993_vm9 = vcmp.eq.s32.totalorder %v7467_v15, %v4794_v4  ;;  %vm4994_vm13 = vcmp.eq.s32.totalorder %v7558_v60, %v4794_v4  ;;  %v10646_v4 = vld [vmem:[#allocation27_spill] sm:$0xff] }
 0x429   :  { %v5025_v9 = vsel %vm4993_vm9, %v7464_v14, 0  ;;  %v5026_v34 = vsel %vm4994_vm13, %v7467_v15, 0  ;;  %vm8651_vm8 = vmor %vm10632_vm14, %vm4993_vm9  ;;  %vm10638_vm9 = vcmp.eq.s32.totalorder %v7467_v15, %v7888_v1  ;;  %v10654_v1 = vld [vmem:[#allocation11_spill] sm:$0xff] }
 0x42a   :  { %v10634_v55 = vsel %vm8651_vm8, 4294967295, %v10633_v55  ;;  %5084 = vadd.xlane.f32.xlu1 %v5081_v40  ;;  %vm8659_vm10 = vmor %vm10635_vm5, %vm4994_vm13  ;;  %v5090_v24 = vadd.s32 %v5026_v34, %v5025_v9  ;;  %v10655_v9 = vld [vmem:[#allocation15_spill] sm:$0xff] }
 0x42b   :  { %v4806_v44 = vpop.xlane.xlu0 %4805  ;;  %v10637_v3 = vsel %vm8659_vm10, 4294967295, %v10636_v3  ;;  %v8666_v20 = vsel %vm8659_vm10, -inf, %v7498_v29 }
 0x42c   :  { %v4807_v36 = vcvt.f32.s32 %v4806_v44  ;;  %v5091_v17 = vand.u32 65535, %v5090_v24  ;;  %v5092_v30 = vshrl.u32 %v5090_v24, 16 }
 0x42e   :  { %v4810_v48 = vadd.s32 %v4809_v32, %v4807_v36  ;;  %5071 = vadd.xlane.f32.xlu2 %v5068_v41  ;;  %5082 = vadd.xlane.f32.xlu0 %v5080_v47  ;;  %v4822_v27 = vpop.xlane.xlu2 %4821  ;;  %v5093_v19 = vcvt.s32.f32 %v5091_v17  ;;  %v5094_v52 = vcvt.s32.f32 %v5092_v30  ;;  %v10656_v32 = vld [vmem:[#allocation16_spill] sm:$0xff]  ;;  %v4968_v41 = vcvt.f32.s32 %v8510_v7 }
 0x42f   :  { %v4823_v35 = vcvt.f32.s32 %v4822_v27  ;;  %v4984_v27 = vcvt.f32.s32 %v8515_v39  ;;  %v10658_v39 = vld [vmem:[#allocation28_spill] sm:$0xff] }
 0x430   :  { %vm4995_vm0 = vcmp.eq.s32.totalorder %v7467_v15, %v4810_v48  ;;  %vm4996_vm4 = vcmp.eq.s32.totalorder %v7558_v60, %v4810_v48  ;;  %v4969_v48 = vshll.u32 %v4968_v41, 16  ;;  %v4840_v41 = vcvt.f32.s32 %v8520_v5 }
 0x431   :  { %v5027_v28 = vsel %vm4995_vm0, %v7470_v16, 0  ;;  %v5028_v50 = vsel %vm4996_vm4, %v7467_v15, 0  ;;  %v4826_v22 = vadd.s32 %v4825_v46, %v4823_v35  ;;  %vm8676_vm13 = vmor %vm10638_vm9, %vm4995_vm0  ;;  %vm10647_vm0 = vcmp.eq.s32.totalorder %v7467_v15, %v10646_v4 }
 0x432   :  { %v5103_v6 = vadd.s32 %v5028_v50, %v5027_v28  ;;  %5366 = vmax.xlane.f32.xlu1 %v8666_v20  ;;  %v10640_v42 = vsel %vm8676_vm13, 4294967295, %v10639_v42  ;;  %vm8685_vm2 = vmor %vm10642_vm1, %vm4996_vm4  ;;  %vm10650_vm13 = vcmp.eq.s32.totalorder %v7558_v60, %v10646_v4  ;;  %v10669_v5 = vmov 0 }
 0x433   :  { %10641 = vst [vmem:[#allocation50_spill] sm:$0xff] %v10640_v42  ;;  %vm4997_vm14 = vcmp.eq.s32.totalorder %v7467_v15, %v4826_v22  ;;  %vm4998_vm5 = vcmp.eq.s32.totalorder %v7558_v60, %v4826_v22  ;;  %v10644_v10 = vsel %vm8685_vm2, 4294967295, %v10643_v10  ;;  %v8708_v34 = vsel %vm8685_vm2, -inf, %v10655_v9 }
 0x434   :  { %10645 = vst [vmem:[#allocation51_spill] sm:$0xff] %v10644_v10  ;;  %v5104_v45 = vand.u32 65535, %v5103_v6  ;;  %vm8692_vm9 = vmor %vm10647_vm0, %vm4997_vm14  ;;  %v5029_v33 = vsel %vm4997_vm14, %v10654_v1, 0  ;;  %v5030_v40 = vsel %vm4998_vm5, %v7467_v15, 0  ;;  %v5105_v35 = vshrl.u32 %v5103_v6, 16 }
 0x435   :  { %v10649_v51 = vsel %vm8692_vm9, 4294967295, %v10648_v51  ;;  %vm8699_vm10 = vmor %vm10650_vm13, %vm4998_vm5  ;;  %v5116_v36 = vadd.s32 %v5030_v40, %v5029_v33  ;;  %v4985_v22 = vshll.u32 %v4984_v27, 16  ;;  %vm10659_vm13 = vcmp.eq.s32.totalorder %v7467_v15, %v10658_v39 }
 0x436   :  { %5095 = vadd.xlane.f32.xlu2 %v5093_v19  ;;  %5097 = vadd.xlane.f32.xlu0 %v5094_v52  ;;  %v10652_v23 = vsel %vm8699_vm10, 4294967295, %v10651_v23  ;;  %v5106_v44 = vcvt.s32.f32 %v5104_v45  ;;  %v8713_v63 = vsel %vm8699_vm10, -inf, %v10656_v32  ;;  %v10657_v19 = vld [vmem:[#allocation29_spill] sm:$0xff]  ;;  %v5107_v4 = vcvt.s32.f32 %v5105_v35 }
 0x437   :  { %10653 = vst [vmem:[#allocation27_spill] sm:$0xff] %v10652_v23  ;;  %v5118_v47 = vshrl.u32 %v5116_v36, 16  ;;  %v5117_v17 = vand.u32 65535, %v5116_v36  ;;  %v10660_v6 = vmov 0  ;;  %vm10662_vm5 = vcmp.eq.s32.totalorder %v7558_v60, %v10658_v39  ;;  %v10666_v35 = vld [vmem:[#allocation17_spill] sm:$0xff] }
 0x438   :  { %v10663_v36 = vmov 0  ;;  %v4888_v9 = vcvt.f32.s32 %v8536_v43  ;;  %v4904_v1 = vcvt.f32.s32 %v8540_v0  ;;  %v10704_v0 = vmov 0 }
 0x439   :  { %v5120_v28 = vcvt.s32.f32 %v5118_v47  ;;  %v5119_v33 = vcvt.s32.f32 %v5117_v17 }
 0x43a   :  { %5108 = vadd.xlane.f32.xlu1 %v5106_v44 }
 0x43d   :  { %v4966_v24 = vpop.xlane.xlu2 %4965 }
 0x43e   :  { %5369 = vmax.xlane.f32.xlu2 %v8708_v34  ;;  %5372 = vmax.xlane.f32.xlu0 %v8713_v63  ;;  %v4967_v46 = vcvt.f32.s32 %v4966_v24  ;;  %v10665_v24 = vld [vmem:[#allocation31_spill] sm:$0xff] }
 0x440   :  { %v4970_v30 = vadd.s32 %v4969_v48, %v4967_v46 }
 0x442   :  { %vm5015_vm1 = vcmp.eq.s32.totalorder %v7467_v15, %v4970_v30  ;;  %vm5016_vm4 = vcmp.eq.s32.totalorder %v7558_v60, %v4970_v30  ;;  %5123 = vadd.xlane.f32.xlu1 %v5120_v28  ;;  %v10667_v28 = vld [vmem:[#allocation30_spill] sm:$0xff] }
 0x443   :  { %v4982_v50 = vpop.xlane.xlu1 %4981  ;;  %v5047_v52 = vsel %vm5015_vm1, %v10657_v19, 0  ;;  %v5048_v45 = vsel %vm5016_vm4, %v7467_v15, 0  ;;  %vm8726_vm14 = vmor %vm10659_vm13, %vm5015_vm1 }
 0x444   :  { %v4983_v7 = vcvt.f32.s32 %v4982_v50  ;;  %v10661_v6 = vsel %vm8726_vm14, 4294967295, %v10660_v6  ;;  %v5233_v44 = vadd.s32 %v5048_v45, %v5047_v52  ;;  %vm8733_vm0 = vmor %vm10662_vm5, %vm5016_vm4  ;;  %vm10668_vm4 = vcmp.eq.s32.totalorder %v7467_v15, %v10667_v28 }
 0x445   :  { %v10664_v36 = vsel %vm8733_vm0, 4294967295, %v10663_v36  ;;  %v8745_v17 = vsel %vm8733_vm0, -inf, %v10666_v35  ;;  %vm10671_vm5 = vcmp.eq.s32.totalorder %v7558_v60, %v10667_v28  ;;  %v10672_v52 = vmov 0 }
 0x446   :  { %v4986_v40 = vadd.s32 %v4985_v22, %v4983_v7  ;;  %5110 = vadd.xlane.f32.xlu2 %v5107_v4  ;;  %5121 = vadd.xlane.f32.xlu0 %v5119_v33  ;;  %v5235_v47 = vshrl.u32 %v5233_v44, 16  ;;  %v4841_v22 = vshll.u32 %v4840_v41, 16  ;;  %v4856_v7 = vcvt.f32.s32 %v8525_v53 }
 0x448   :  { %vm5017_vm10 = vcmp.eq.s32.totalorder %v7467_v15, %v4986_v40  ;;  %vm5018_vm1 = vcmp.eq.s32.totalorder %v7558_v60, %v4986_v40  ;;  %v5237_v46 = vcvt.s32.f32 %v5235_v47  ;;  %v10675_v47 = vld [vmem:[#allocation18_spill] sm:$0xff]  ;;  %v4857_v53 = vshll.u32 %v4856_v7, 16 }
 0x449   :  { %v5049_v48 = vsel %vm5017_vm10, %v10665_v24, 0  ;;  %v5050_v27 = vsel %vm5018_vm1, %v7467_v15, 0  ;;  %vm8750_vm13 = vmor %vm10668_vm4, %vm5017_vm10  ;;  %v10683_v7 = vmov 0 }
 0x44a   :  { %v5246_v30 = vadd.s32 %v5050_v27, %v5049_v48  ;;  %v10670_v5 = vsel %vm8750_vm13, 4294967295, %v10669_v5  ;;  %vm8758_vm14 = vmor %vm10671_vm5, %vm5018_vm1  ;;  %5240 = vadd.xlane.f32.xlu1 %v5237_v46  ;;  %v10676_v27 = vld [vmem:[#allocation33_spill] sm:$0xff] }
 0x44b   :  { %v4838_v50 = vpop.xlane.xlu1 %4837  ;;  %v10673_v52 = vsel %vm8758_vm14, 4294967295, %v10672_v52  ;;  %v8766_v41 = vsel %vm8758_vm14, -inf, %v10675_v47  ;;  %v10679_v47 = vmov 0 }
 0x44c   :  { %10674 = vst [vmem:[#allocation28_spill] sm:$0xff] %v10673_v52  ;;  %v4839_v45 = vcvt.f32.s32 %v4838_v50  ;;  %v5247_v4 = vand.u32 65535, %v5246_v30  ;;  %v5234_v50 = vand.u32 65535, %v5233_v44 }
 0x44e   :  { %v4842_v33 = vadd.s32 %v4841_v22, %v4839_v45  ;;  %v5249_v39 = vcvt.s32.f32 %v5247_v4  ;;  %5399 = vmax.xlane.f32.xlu0 %v8745_v17  ;;  %v10677_v4 = vld [vmem:[#allocation32_spill] sm:$0xff] }
 0x44f   :  { %v4854_v40 = vpop.xlane.xlu0 %4853  ;;  %vm10678_vm4 = vcmp.eq.s32.totalorder %v7467_v15, %v10677_v4  ;;  %vm10682_vm14 = vcmp.eq.s32.totalorder %v7558_v60, %v10677_v4  ;;  %v10692_v4 = vld [vmem:[#allocation19_spill] sm:$0xff] }
 0x450   :  { %vm4999_vm10 = vcmp.eq.s32.totalorder %v7467_v15, %v4842_v33  ;;  %vm5000_vm1 = vcmp.eq.s32.totalorder %v7558_v60, %v4842_v33  ;;  %v4855_v48 = vcvt.f32.s32 %v4854_v40  ;;  %5251 = vadd.xlane.f32.xlu2 %v5249_v39  ;;  %v5236_v33 = vcvt.s32.f32 %v5234_v50  ;;  %v10686_v40 = vld [vmem:[#allocation35_spill] sm:$0xff] }
 0x451   :  { %v5031_v46 = vsel %vm4999_vm10, %v10676_v27, 0  ;;  %v5032_v28 = vsel %vm5000_vm1, %v7467_v15, 0  ;;  %vm8775_vm5 = vmor %vm10678_vm4, %vm4999_vm10  ;;  %v10694_v50 = vmov 0  ;;  %v10697_v27 = vld [vmem:[#allocation20_spill] sm:$0xff] }
 0x452   :  { %v4858_v22 = vadd.s32 %v4857_v53, %v4855_v48  ;;  %v5129_v45 = vadd.s32 %v5032_v28, %v5031_v46  ;;  %v10680_v47 = vsel %vm8775_vm5, 4294967295, %v10679_v47  ;;  %vm8782_vm13 = vmor %vm10682_vm14, %vm5000_vm1  ;;  %5402 = vmax.xlane.f32.xlu1 %v8766_v41  ;;  %v10687_v46 = vld [vmem:[#allocation34_spill] sm:$0xff]  ;;  %v10689_v28 = vmov 0 }
 0x453   :  { %10681 = vst [vmem:[#allocation30_spill] sm:$0xff] %v10680_v47  ;;  %v10684_v7 = vsel %vm8782_vm13, 4294967295, %v10683_v7  ;;  %vm10688_vm10 = vcmp.eq.s32.totalorder %v7467_v15, %v10687_v46  ;;  %vm10693_vm1 = vcmp.eq.s32.totalorder %v7558_v60, %v10687_v46 }
 0x454   :  { %10685 = vst [vmem:[#allocation32_spill] sm:$0xff] %v10684_v7  ;;  %vm5001_vm0 = vcmp.eq.s32.totalorder %v7467_v15, %v4858_v22  ;;  %vm5002_vm9 = vcmp.eq.s32.totalorder %v7558_v60, %v4858_v22  ;;  %v5130_v44 = vand.u32 65535, %v5129_v45  ;;  %v8801_v22 = vsel %vm8782_vm13, -inf, %v10692_v4 }
 0x455   :  { %v5033_v53 = vsel %vm5001_vm0, %v10686_v40, 0  ;;  %v5034_v48 = vsel %vm5002_vm9, %v7467_v15, 0  ;;  %vm8794_vm14 = vmor %vm10688_vm10, %vm5001_vm0 }
 0x456   :  { %v5132_v39 = vcvt.s32.f32 %v5130_v44  ;;  %v10690_v28 = vsel %vm8794_vm14, 4294967295, %v10689_v28  ;;  %5238 = vadd.xlane.f32.xlu0 %v5236_v33  ;;  %vm8806_vm4 = vmor %vm10693_vm1, %vm5002_vm9  ;;  %v5248_v44 = vshrl.u32 %v5246_v30, 16  ;;  %v5142_v40 = vadd.s32 %v5034_v48, %v5033_v53 }
 0x457   :  { %10691 = vst [vmem:[#allocation34_spill] sm:$0xff] %v10690_v28  ;;  %v10695_v50 = vsel %vm8806_vm4, 4294967295, %v10694_v50  ;;  %v8813_v35 = vsel %vm8806_vm4, -inf, %v10697_v27  ;;  %v4872_v33 = vcvt.f32.s32 %v8530_v61  ;;  %v5131_v30 = vshrl.u32 %v5129_v45, 16 }
 0x458   :  { %10696 = vst [vmem:[#allocation52_spill] sm:$0xff] %v10695_v50  ;;  %5134 = vadd.xlane.f32.xlu2 %v5132_v39  ;;  %v5250_v4 = vcvt.s32.f32 %v5248_v44  ;;  %v5143_v24 = vand.u32 65535, %v5142_v40  ;;  %v5144_v48 = vshrl.u32 %v5142_v40, 16  ;;  %v4889_v27 = vshll.u32 %v4888_v9, 16 }
 0x459   :  { %v4873_v19 = vshll.u32 %v4872_v33, 16  ;;  %v10699_v33 = vld [vmem:[#allocation36_spill] sm:$0xff] }
 0x45a   :  { %5375 = vmax.xlane.f32.xlu1 %v8801_v22  ;;  %v5145_v53 = vcvt.s32.f32 %v5143_v24  ;;  %vm10700_vm10 = vcmp.eq.s32.totalorder %v7467_v15, %v10699_v33  ;;  %vm10703_vm4 = vcmp.eq.s32.totalorder %v7558_v60, %v10699_v33  ;;  %v5146_v24 = vcvt.s32.f32 %v5144_v48  ;;  %v10707_v33 = vld [vmem:[#allocation39_spill] sm:$0xff] }
 0x45d   :  { %v4870_v46 = vpop.xlane.xlu2 %4869 }
 0x45e   :  { %5253 = vadd.xlane.f32.xlu0 %v5250_v4  ;;  %v4871_v32 = vcvt.f32.s32 %v4870_v46  ;;  %v10698_v4 = vld [vmem:[#allocation37_spill] sm:$0xff] }
 0x460   :  { %5378 = vmax.xlane.f32.xlu2 %v8813_v35  ;;  %v4874_v39 = vadd.s32 %v4873_v19, %v4871_v32  ;;  %v10701_v32 = vmov 0  ;;  %v5133_v19 = vcvt.s32.f32 %v5131_v30  ;;  %v10706_v30 = vld [vmem:[#allocation21_spill] sm:$0xff] }
 0x462   :  { %vm5003_vm9 = vcmp.eq.s32.totalorder %v7467_v15, %v4874_v39  ;;  %vm5004_vm0 = vcmp.eq.s32.totalorder %v7558_v60, %v4874_v39  ;;  %5147 = vadd.xlane.f32.xlu1 %v5145_v53  ;;  %v4905_v39 = vshll.u32 %v4904_v1, 16  ;;  %v10708_v1 = vld [vmem:[#allocation38_spill] sm:$0xff] }
 0x463   :  { %v4886_v61 = vpop.xlane.xlu1 %4885  ;;  %v5035_v44 = vsel %vm5003_vm9, %v10698_v4, 0  ;;  %v5036_v43 = vsel %vm5004_vm0, %v7467_v15, 0  ;;  %vm8827_vm1 = vmor %vm10700_vm10, %vm5003_vm9 }
 0x464   :  { %v10702_v32 = vsel %vm8827_vm1, 4294967295, %v10701_v32  ;;  %v4887_v9 = vcvt.f32.s32 %v4886_v61  ;;  %vm8834_vm14 = vmor %vm10703_vm4, %vm5004_vm0  ;;  %v5155_v45 = vadd.s32 %v5036_v43, %v5035_v44  ;;  %vm10709_vm4 = vcmp.eq.s32.totalorder %v7467_v15, %v10708_v1 }
 0x465   :  { %v10705_v0 = vsel %vm8834_vm14, 4294967295, %v10704_v0  ;;  %v8843_v61 = vsel %vm8834_vm14, -inf, %v10706_v30  ;;  %v10710_v43 = vmov 0  ;;  %vm10713_vm1 = vcmp.eq.s32.totalorder %v7558_v60, %v10708_v1 }
 0x466   :  { %v4890_v40 = vadd.s32 %v4889_v27, %v4887_v9  ;;  %5136 = vadd.xlane.f32.xlu0 %v5133_v19  ;;  %v5157_v4 = vshrl.u32 %v5155_v45, 16  ;;  %v10714_v19 = vmov 0  ;;  %v10721_v1 = vmov 0 }
 0x467   :  { %v4902_v46 = vpop.xlane.xlu0 %4901 }
 0x468   :  { %v4903_v53 = vcvt.f32.s32 %v4902_v46  ;;  %5149 = vadd.xlane.f32.xlu2 %v5146_v24  ;;  %vm5005_vm9 = vcmp.eq.s32.totalorder %v7467_v15, %v4890_v40  ;;  %vm5006_vm10 = vcmp.eq.s32.totalorder %v7558_v60, %v4890_v40  ;;  %v5159_v44 = vcvt.s32.f32 %v5157_v4  ;;  %v10717_v24 = vld [vmem:[#allocation41_spill] sm:$0xff] }
 0x469   :  { %v5037_v16 = vsel %vm5005_vm9, %v10707_v33, 0  ;;  %v5038_v48 = vsel %vm5006_vm10, %v7467_v15, 0  ;;  %vm8850_vm0 = vmor %vm10709_vm4, %vm5005_vm9 }
 0x46a   :  { %v4906_v27 = vadd.s32 %v4905_v39, %v4903_v53  ;;  %v10711_v43 = vsel %vm8850_vm0, 4294967295, %v10710_v43  ;;  %v5168_v9 = vadd.s32 %v5038_v48, %v5037_v16  ;;  %vm8857_vm13 = vmor %vm10713_vm1, %vm5006_vm10  ;;  %5162 = vadd.xlane.f32.xlu1 %v5159_v44  ;;  %v10718_v39 = vld [vmem:[#allocation22_spill] sm:$0xff]  ;;  %v10719_v48 = vld [vmem:[#allocation40_spill] sm:$0xff]  ;;  %v5156_v44 = vand.u32 65535, %v5155_v45 }
 0x46b   :  { %10712 = vst [vmem:[#allocation36_spill] sm:$0xff] %v10711_v43  ;;  %v10715_v19 = vsel %vm8857_vm13, 4294967295, %v10714_v19  ;;  %v8869_v53 = vsel %vm8857_vm13, -inf, %v10718_v39  ;;  %vm10720_vm1 = vcmp.eq.s32.totalorder %v7467_v15, %v10719_v48  ;;  %vm10724_vm10 = vcmp.eq.s32.totalorder %v7558_v60, %v10719_v48 }
 0x46c   :  { %10716 = vst [vmem:[#allocation38_spill] sm:$0xff] %v10715_v19  ;;  %vm5007_vm14 = vcmp.eq.s32.totalorder %v7467_v15, %v4906_v27  ;;  %vm5008_vm5 = vcmp.eq.s32.totalorder %v7558_v60, %v4906_v27  ;;  %v5169_v4 = vand.u32 65535, %v5168_v9  ;;  %v10725_v27 = vmov 0 }
 0x46d   :  { %v5039_v40 = vsel %vm5007_vm14, %v10717_v24, 0  ;;  %v5040_v46 = vsel %vm5008_vm5, %v7467_v15, 0  ;;  %vm8874_vm9 = vmor %vm10720_vm1, %vm5007_vm14  ;;  %v4920_v39 = vcvt.f32.s32 %v8545_v26  ;;  %v10728_v24 = vld [vmem:[#allocation23_spill] sm:$0xff]  ;;  %v5158_v33 = vcvt.s32.f32 %v5156_v44 }
 0x46e   :  { %5381 = vmax.xlane.f32.xlu0 %v8843_v61  ;;  %v5171_v16 = vcvt.s32.f32 %v5169_v4  ;;  %v10722_v1 = vsel %vm8874_vm9, 4294967295, %v10721_v1  ;;  %vm8881_vm4 = vmor %vm10724_vm10, %vm5008_vm5  ;;  %v5181_v4 = vadd.s32 %v5040_v46, %v5039_v40  ;;  %v5170_v45 = vshrl.u32 %v5168_v9, 16 }
 0x46f   :  { %10723 = vst [vmem:[#allocation40_spill] sm:$0xff] %v10722_v1  ;;  %v10726_v27 = vsel %vm8881_vm4, 4294967295, %v10725_v27  ;;  %v8890_v30 = vsel %vm8881_vm4, -inf, %v10728_v24  ;;  %v4921_v14 = vshll.u32 %v4920_v39, 16  ;;  %vm10730_vm1 = vcmp.eq.s32.totalorder %v7467_v15, %v8092_v62 }
 0x470   :  { %10727 = vst [vmem:[#allocation53_spill] sm:$0xff] %v10726_v27  ;;  %5173 = vadd.xlane.f32.xlu2 %v5171_v16  ;;  %v5182_v29 = vand.u32 65535, %v5181_v4  ;;  %v5183_v46 = vshrl.u32 %v5181_v4, 16  ;;  %v4937_v16 = vshll.u32 %v4936_v21, 16  ;;  %vm10733_vm4 = vcmp.eq.s32.totalorder %v7558_v60, %v8092_v62 }
 0x472   :  { %5384 = vmax.xlane.f32.xlu1 %v8869_v53  ;;  %v5184_v26 = vcvt.s32.f32 %v5182_v29  ;;  %v10734_v29 = vmov 0 }
 0x475   :  { %v4918_v48 = vpop.xlane.xlu2 %4917 }
 0x476   :  { %5160 = vadd.xlane.f32.xlu0 %v5158_v33  ;;  %v4919_v25 = vcvt.f32.s32 %v4918_v48  ;;  %v10729_v33 = vld [vmem:[#allocation42_spill] sm:$0xff]  ;;  %v5185_v48 = vcvt.s32.f32 %v5183_v46  ;;  %v10740_v46 = vmov 0 }
 0x478   :  { %5387 = vmax.xlane.f32.xlu2 %v8890_v30  ;;  %v4922_v40 = vadd.s32 %v4921_v14, %v4919_v25  ;;  %v10731_v14 = vmov 0  ;;  %v5172_v25 = vcvt.s32.f32 %v5170_v45  ;;  %v10736_v45 = vld [vmem:[#allocation24_spill] sm:$0xff] }
 0x47a   :  { %vm5009_vm5 = vcmp.eq.s32.totalorder %v7467_v15, %v4922_v40  ;;  %vm5010_vm14 = vcmp.eq.s32.totalorder %v7558_v60, %v4922_v40  ;;  %5186 = vadd.xlane.f32.xlu1 %v5184_v26  ;;  %v4953_v40 = vshll.u32 %v4952_v13, 16  ;;  %v10738_v13 = vld [vmem:[#allocation43_spill] sm:$0xff] }
 0x47b   :  { %v4934_v44 = vpop.xlane.xlu1 %4933  ;;  %v5041_v39 = vsel %vm5009_vm5, %v10729_v33, 0  ;;  %v5042_v37 = vsel %vm5010_vm14, %v7467_v15, 0  ;;  %vm8902_vm10 = vmor %vm10730_vm1, %vm5009_vm5 }
 0x47c   :  { %v10732_v14 = vsel %vm8902_vm10, 4294967295, %v10731_v14  ;;  %v4935_v21 = vcvt.f32.s32 %v4934_v44  ;;  %vm8909_vm9 = vmor %vm10733_vm4, %vm5010_vm14  ;;  %v5194_v2 = vadd.s32 %v5042_v37, %v5041_v39  ;;  %v10737_v44 = vld [vmem:[#allocation44_spill] sm:$0xff]  ;;  %vm10739_vm4 = vcmp.eq.s32.totalorder %v7467_v15, %v10738_v13 }
 0x47d   :  { %v10735_v29 = vsel %vm8909_vm9, 4294967295, %v10734_v29  ;;  %v8918_v62 = vsel %vm8909_vm9, -inf, %v10736_v45  ;;  %vm10742_vm10 = vcmp.eq.s32.totalorder %v7558_v60, %v10738_v13  ;;  %v10749_v13 = vmov 0 }
 0x47e   :  { %v4938_v9 = vadd.s32 %v4937_v16, %v4935_v21  ;;  %5175 = vadd.xlane.f32.xlu0 %v5172_v25  ;;  %v5196_v33 = vshrl.u32 %v5194_v2, 16  ;;  %v10743_v25 = vmov 0 }
 0x47f   :  { %v4950_v4 = vpop.xlane.xlu0 %4949 }
 0x480   :  { %v4951_v26 = vcvt.f32.s32 %v4950_v4  ;;  %vm5011_vm5 = vcmp.eq.s32.totalorder %v7467_v15, %v4938_v9  ;;  %vm5012_vm1 = vcmp.eq.s32.totalorder %v7558_v60, %v4938_v9  ;;  %5188 = vadd.xlane.f32.xlu2 %v5185_v48  ;;  %v5198_v37 = vcvt.s32.f32 %v5196_v33  ;;  %v10745_v9 = vld [vmem:[#allocation46_spill] sm:$0xff] }
 0x481   :  { %v5043_v24 = vsel %vm5011_vm5, %v10737_v44, 0  ;;  %v5044_v16 = vsel %vm5012_vm1, %v7467_v15, 0  ;;  %vm8925_vm14 = vmor %vm10739_vm4, %vm5011_vm5 }
 0x482   :  { %v4954_v39 = vadd.s32 %v4953_v40, %v4951_v26  ;;  %v10741_v46 = vsel %vm8925_vm14, 4294967295, %v10740_v46  ;;  %v5207_v21 = vadd.s32 %v5044_v16, %v5043_v24  ;;  %vm8932_vm13 = vmor %vm10742_vm10, %vm5012_vm1  ;;  %5201 = vadd.xlane.f32.xlu1 %v5198_v37  ;;  %v10746_v40 = vld [vmem:[#allocation25_spill] sm:$0xff]  ;;  %v5195_v37 = vand.u32 65535, %v5194_v2 }
 0x483   :  { %v10744_v25 = vsel %vm8932_vm13, 4294967295, %v10743_v25  ;;  %v8944_v26 = vsel %vm8932_vm13, -inf, %v10746_v40  ;;  %v10747_v16 = vld [vmem:[#allocation45_spill] sm:$0xff]  ;;  %v10756_v40 = vld [vmem:[#allocation26_spill] sm:$0xff] }
 0x484   :  { %vm5013_vm9 = vcmp.eq.s32.totalorder %v7467_v15, %v4954_v39  ;;  %vm5014_vm0 = vcmp.eq.s32.totalorder %v7558_v60, %v4954_v39  ;;  %v5208_v33 = vand.u32 65535, %v5207_v21  ;;  %vm10748_vm10 = vcmp.eq.s32.totalorder %v7467_v15, %v10747_v16 }
 0x485   :  { %v5045_v4 = vsel %vm5013_vm9, %v10745_v9, 0  ;;  %v5046_v48 = vsel %vm5014_vm0, %v7467_v15, 0  ;;  %vm8949_vm5 = vmor %vm10748_vm10, %vm5013_vm9  ;;  %vm10752_vm1 = vcmp.eq.s32.totalorder %v7558_v60, %v10747_v16  ;;  %v10753_v39 = vmov 0 }
 0x486   :  { %5390 = vmax.xlane.f32.xlu0 %v8918_v62  ;;  %v5210_v24 = vcvt.s32.f32 %v5208_v33  ;;  %v10750_v13 = vsel %vm8949_vm5, 4294967295, %v10749_v13  ;;  %vm8956_vm4 = vmor %vm10752_vm1, %vm5014_vm0  ;;  %v5220_v33 = vadd.s32 %v5046_v48, %v5045_v4  ;;  %v5197_v45 = vcvt.s32.f32 %v5195_v37 }
 0x487   :  { %10751 = vst [vmem:[#allocation43_spill] sm:$0xff] %v10750_v13  ;;  %v10754_v39 = vsel %vm8956_vm4, 4294967295, %v10753_v39  ;;  %v8964_v9 = vsel %vm8956_vm4, -inf, %v10756_v40  ;;  %vm10502_vm9 = vcmask 23568   ;;  %vm10757_vm10 = vmmov 1  }
 0x488   :  { %10755 = vst [vmem:[#allocation45_spill] sm:$0xff] %v10754_v39  ;;  %5212 = vadd.xlane.f32.xlu2 %v5210_v24  ;;  %v5221_v44 = vand.u32 65535, %v5220_v33  ;;  %vm5436_vm0 = vmxor %vm8567_vm15, %vm10757_vm10  ;;  %v5209_v2 = vshrl.u32 %v5207_v21, 16  ;;  %v5222_v40 = vshrl.u32 %v5220_v33, 16 }
 0x489   :  { %vm5437_vm1 = vmxor %vm8578_vm7, %vm10757_vm10 }
 0x48a   :  { %5393 = vmax.xlane.f32.xlu1 %v8944_v26  ;;  %v5223_v24 = vcvt.s32.f32 %v5221_v44  ;;  %v5224_v8 = vcvt.s32.f32 %v5222_v40 }
 0x48d   :  { %v5358_v16 = vpop.xlane.xlu1 %5357 }
 0x48e   :  { %5199 = vadd.xlane.f32.xlu0 %v5197_v45  ;;  %vm7313_vm5 = vcmp.eq.f32.partialorder %v5358_v16, -inf  ;;  %vm5405_vm13 = vcmp.eq.f32.partialorder %v8585_v11, %v5358_v16  ;;  %6061 = vst.msk [vmem:[#allocation3] sm:$0xff] %vm10502_vm9, %v5358_v16  ;;  %v5211_v11 = vcvt.s32.f32 %v5209_v2 }
 0x48f   :  { %vm5468_vm4 = vmand %vm7313_vm5, %vm5436_vm0  ;;  %vm10762_vm5 = vcmask 15368  }
 0x490   :  { %5396 = vmax.xlane.f32.xlu2 %v8964_v9  ;;  %vm5469_vm14 = vmand %vm5405_vm13, %vm5437_vm1  ;;  %v5500_v37 = vsel %vm5468_vm4, %v7467_v15, 256 }
 0x491   :  { %v5059_v4 = vpop.xlane.xlu0 %5058  ;;  %v5057_v48 = vpop.xlane.xlu2 %5056  ;;  %v5501_v12 = vsel %vm5469_vm14, %v7558_v60, 256  ;;  %vm8980_vm13 = vmxor %vm8601_vm11, %vm10757_vm10 }
 0x492   :  { %v5061_v45 = vcvt.f32.s32 %v5059_v4  ;;  %5225 = vadd.xlane.f32.xlu1 %v5223_v24  ;;  %v5060_v38 = vcvt.f32.s32 %v5057_v48  ;;  %vm5532_vm7 = vcmp.lt.s32.totalorder %v5500_v37, %v5501_v12  ;;  %vm8989_vm14 = vmxor %vm8610_vm6, %vm10757_vm10  ;;  %vm10763_vm6 = vcmask 23568  }
 0x493   :  { %v8984_v21 = vsel %vm5532_vm7, %v5500_v37, %v5501_v12  ;;  %vm5440_vm4 = vmxor %vm8617_vm3, %vm10757_vm10 }
 0x494   :  { %v5062_v18 = vshll.u32 %v5061_v45, 16  ;;  %vm5441_vm7 = vmxor %vm8626_vm12, %vm10757_vm10  ;;  %v5535_v12 = vshra.s32 %v8984_v21, 16 }
 0x495   :  { %v5070_v57 = vpop.xlane.xlu1 %5069  ;;  %vm10764_vm15 = vmmov %vm10763_vm6 }
 0x496   :  { %v5063_v16 = vadd.s32 %v5062_v18, %v5060_v38  ;;  %5214 = vadd.xlane.f32.xlu0 %v5211_v11  ;;  %v9011_v2 = vcvt.s32.f32 %v5535_v12 }
 0x498   :  { %5276 = vst.msk [vmem:[#allocation4] sm:$0xff] %vm10762_vm5, %v5063_v16  ;;  %5227 = vadd.xlane.f32.xlu2 %v5224_v8 }
 0x499   :  { %v5364_v18 = vpop.xlane.xlu0 %5363  ;;  %v5361_v38 = vpop.xlane.xlu2 %5360 }
 0x49a   :  { %vm7314_vm0 = vcmp.eq.f32.partialorder %v5364_v18, -inf  ;;  %vm5409_vm1 = vcmp.eq.f32.partialorder %v8639_v59, %v5364_v18  ;;  %vm7315_vm9 = vcmp.eq.f32.partialorder %v5361_v38, -inf  ;;  %6062 = vst.msk [vmem:[#allocation3 + $0x8] sm:$0xff] %vm10763_vm6, %v5361_v38  ;;  %vm5407_vm11 = vcmp.eq.f32.partialorder %v8634_v31, %v5361_v38 }
 0x49b   :  { %vm5472_vm5 = vmand %vm7314_vm0, %vm5440_vm4  ;;  %6063 = vst.msk [vmem:[#allocation3 + $0x10] sm:$0xff] %vm10764_vm15, %v5364_v18 }
 0x49c   :  { %vm5473_vm3 = vmand %vm5409_vm1, %vm5441_vm7  ;;  %v5504_v8 = vsel %vm5472_vm5, %v7467_v15, 256  ;;  %vm10769_vm5 = vnez %v10640_v42 }
 0x49d   :  { %vm5470_vm2 = vmand %vm7315_vm9, %vm8980_vm13  ;;  %v5505_v40 = vsel %vm5473_vm3, %v7558_v60, 256  ;;  %v5085_v59 = vpop.xlane.xlu1 %5084  ;;  %vm10766_vm3 = vnez %v10637_v3 }
 0x49e   :  { %vm5471_vm12 = vmand %vm5407_vm11, %vm8989_vm14  ;;  %vm5564_vm6 = vcmp.lt.s32.totalorder %v5504_v8, %v5505_v40  ;;  %v5502_v4 = vsel %vm5470_vm2, %v7467_v15, 256  ;;  %v5087_v31 = vcvt.f32.s32 %v5085_v59  ;;  %vm10765_vm11 = vcmask 15368  }
 0x49f   :  { %v9014_v48 = vsel %vm5564_vm6, %v5504_v8, %v5505_v40  ;;  %v5503_v24 = vsel %vm5471_vm12, %v7558_v60, 256  ;;  %v5073_v8 = vcvt.f32.s32 %v5070_v57  ;;  %vm5442_vm2 = vmxor %vm8651_vm8, %vm10757_vm10  ;;  %vm10767_vm14 = vcmask 23568  }
 0x4a0   :  { %5538 = vmin.xlane.f32.xlu2 %v9011_v2  ;;  %v5567_v37 = vshra.s32 %v9014_v48, 16  ;;  %vm5548_vm15 = vcmp.lt.s32.totalorder %v5502_v4, %v5503_v24  ;;  %v5088_v45 = vshll.u32 %v5087_v31, 16  ;;  %vm5443_vm12 = vmxor %vm10766_vm3, %vm10757_vm10 }
 0x4a1   :  { %v5083_v11 = vpop.xlane.xlu0 %5082  ;;  %v5072_v16 = vpop.xlane.xlu2 %5071  ;;  %v9019_v44 = vsel %vm5548_vm15, %v5502_v4, %v5503_v24  ;;  %vm10768_vm4 = vmmov %vm10765_vm11  ;;  %vm10772_vm15 = vnez %v10644_v10 }
 0x4a2   :  { %v5086_v33 = vcvt.f32.s32 %v5083_v11  ;;  %v5074_v18 = vcvt.f32.s32 %v5072_v16  ;;  %v9021_v38 = vcvt.s32.f32 %v5567_v37  ;;  %v5551_v12 = vshra.s32 %v9019_v44, 16  ;;  %vm9046_vm6 = vmxor %vm10769_vm5, %vm10757_vm10 }
 0x4a4   :  { %v5089_v40 = vadd.s32 %v5088_v45, %v5086_v33  ;;  %v5075_v59 = vshll.u32 %v5074_v18, 16  ;;  %5570 = vmin.xlane.f32.xlu0 %v9021_v38  ;;  %v9025_v56 = vcvt.s32.f32 %v5551_v12 }
 0x4a5   :  { %v5367_v31 = vpop.xlane.xlu1 %5366 }
 0x4a6   :  { %5278 = vst.msk [vmem:[#allocation4 + $0x10] sm:$0xff] %vm10765_vm11, %v5089_v40  ;;  %v5076_v4 = vadd.s32 %v5075_v59, %v5073_v8  ;;  %5554 = vmin.xlane.f32.xlu1 %v9025_v56  ;;  %vm7316_vm9 = vcmp.eq.f32.partialorder %v5367_v31, -inf  ;;  %vm5411_vm13 = vcmp.eq.f32.partialorder %v8666_v20, %v5367_v31  ;;  %vm10775_vm11 = vmmov %vm10768_vm4 }
 0x4a7   :  { %6064 = vst.msk [vmem:[#allocation3 + $0x18] sm:$0xff] %vm10767_vm14, %v5367_v31  ;;  %vm5474_vm7 = vmand %vm7316_vm9, %vm5442_vm2 }
 0x4a8   :  { %5277 = vst.msk [vmem:[#allocation4 + $0x8] sm:$0xff] %vm10768_vm4, %v5076_v4  ;;  %vm5475_vm0 = vmand %vm5411_vm13, %vm5443_vm12  ;;  %v5506_v37 = vsel %vm5474_vm7, %v7467_v15, 256  ;;  %vm10776_vm12 = vnez %v10649_v51  ;;  %vm10777_vm13 = vnez %v10652_v23 }
 0x4a9   :  { %v5098_v57 = vpop.xlane.xlu0 %5097  ;;  %v5096_v24 = vpop.xlane.xlu2 %5095  ;;  %v5507_v11 = vsel %vm5475_vm0, %v7558_v60, 256  ;;  %vm9055_vm2 = vmxor %vm10772_vm15, %vm10757_vm10 }
 0x4aa   :  { %v5100_v45 = vcvt.f32.s32 %v5098_v57  ;;  %vm5580_vm1 = vcmp.lt.s32.totalorder %v5506_v37, %v5507_v11  ;;  %v5099_v33 = vcvt.f32.s32 %v5096_v24  ;;  %vm5446_vm9 = vmxor %vm10776_vm12, %vm10757_vm10 }
 0x4ab   :  { %v9040_v18 = vsel %vm5580_vm1, %v5506_v37, %v5507_v11  ;;  %vm5447_vm14 = vmxor %vm10777_vm13, %vm10757_vm10  ;;  %vm10778_vm1 = vcmask 23568  }
 0x4ac   :  { %v5101_v16 = vshll.u32 %v5100_v45, 16  ;;  %v5583_v20 = vshra.s32 %v9040_v18, 16  ;;  %vm10779_vm5 = vmmov %vm10778_vm1 }
 0x4ad   :  { %v5109_v8 = vpop.xlane.xlu1 %5108 }
 0x4ae   :  { %v5102_v12 = vadd.s32 %v5101_v16, %v5099_v33  ;;  %v9050_v59 = vcvt.s32.f32 %v5583_v20  ;;  %v5112_v23 = vcvt.f32.s32 %v5109_v8 }
 0x4b0   :  { %5279 = vst.msk [vmem:[#allocation4 + $0x18] sm:$0xff] %vm10775_vm11, %v5102_v12  ;;  %5586 = vmin.xlane.f32.xlu2 %v9050_v59 }
 0x4b1   :  { %v5373_v31 = vpop.xlane.xlu0 %5372  ;;  %v5370_v57 = vpop.xlane.xlu2 %5369 }
 0x4b2   :  { %vm7317_vm4 = vcmp.eq.f32.partialorder %v5373_v31, -inf  ;;  %vm5415_vm7 = vcmp.eq.f32.partialorder %v8713_v63, %v5373_v31  ;;  %vm7318_vm0 = vcmp.eq.f32.partialorder %v5370_v57, -inf  ;;  %6065 = vst.msk [vmem:[#allocation3 + $0x20] sm:$0xff] %vm10778_vm1, %v5370_v57  ;;  %vm5413_vm11 = vcmp.eq.f32.partialorder %v8708_v34, %v5370_v57 }
 0x4b3   :  { %vm5478_vm15 = vmand %vm7317_vm4, %vm5446_vm9  ;;  %6066 = vst.msk [vmem:[#allocation3 + $0x28] sm:$0xff] %vm10779_vm5, %v5373_v31 }
 0x4b4   :  { %vm5479_vm12 = vmand %vm5415_vm7, %vm5447_vm14  ;;  %v5510_v24 = vsel %vm5478_vm15, %v7467_v15, 256 }
 0x4b5   :  { %vm5476_vm3 = vmand %vm7318_vm0, %vm9046_vm6  ;;  %v5511_v37 = vsel %vm5479_vm12, %v7558_v60, 256  ;;  %v5124_v63 = vpop.xlane.xlu1 %5123  ;;  %vm10782_vm6 = vnez %v10661_v6  ;;  %vm10785_vm0 = vnez %v10670_v5  ;;  %v10879_v6 = vld [vmem:[#allocation31_spill] sm:$0xff] }
 0x4b6   :  { %vm5477_vm13 = vmand %vm5413_vm11, %vm9055_vm2  ;;  %vm5612_vm8 = vcmp.lt.s32.totalorder %v5510_v24, %v5511_v37  ;;  %v5508_v45 = vsel %vm5476_vm3, %v7467_v15, 256  ;;  %v5126_v11 = vcvt.f32.s32 %v5124_v63  ;;  %vm10783_vm2 = vnez %v10664_v36  ;;  %v10880_v36 = vld [vmem:[#allocation17_spill] sm:$0xff] }
 0x4b7   :  { %v9078_v16 = vsel %vm5612_vm8, %v5510_v24, %v5511_v37  ;;  %v5509_v34 = vsel %vm5477_vm13, %v7558_v60, 256  ;;  %vm10780_vm8 = vcmask 15368   ;;  %vm5464_vm15 = vmxor %vm10782_vm6, %vm10757_vm10 }
 0x4b8   :  { %v5615_v33 = vshra.s32 %v9078_v16, 16  ;;  %vm5596_vm5 = vcmp.lt.s32.totalorder %v5508_v45, %v5509_v34  ;;  %v5127_v20 = vshll.u32 %v5126_v11, 16  ;;  %vm10781_vm3 = vmmov %vm10780_vm8 }
 0x4b9   :  { %v5122_v12 = vpop.xlane.xlu0 %5121  ;;  %v5111_v40 = vpop.xlane.xlu2 %5110  ;;  %v9082_v31 = vsel %vm5596_vm5, %v5508_v45, %v5509_v34  ;;  %vm5465_vm12 = vmxor %vm10783_vm2, %vm10757_vm10  ;;  %vm10786_vm5 = vnez %v10673_v52 }
 0x4ba   :  { %v5125_v57 = vcvt.f32.s32 %v5122_v12  ;;  %v5113_v4 = vcvt.f32.s32 %v5111_v40  ;;  %v9084_v10 = vcvt.s32.f32 %v5615_v33  ;;  %v5599_v42 = vshra.s32 %v9082_v31, 16  ;;  %vm10784_vm14 = vmmov %vm10778_vm1 }
 0x4bb   :  { %vm5466_vm1 = vmxor %vm10785_vm0, %vm10757_vm10 }
 0x4bc   :  { %v5128_v63 = vadd.s32 %v5127_v20, %v5125_v57  ;;  %v5114_v24 = vshll.u32 %v5113_v4, 16  ;;  %5618 = vmin.xlane.f32.xlu0 %v9084_v10  ;;  %v9088_v37 = vcvt.s32.f32 %v5599_v42 }
 0x4bd   :  { %v5241_v45 = vpop.xlane.xlu1 %5240 }
 0x4be   :  { %5281 = vst.msk [vmem:[#allocation4 + $0x28] sm:$0xff] %vm10780_vm8, %v5128_v63  ;;  %v5115_v11 = vadd.s32 %v5114_v24, %v5112_v23  ;;  %5602 = vmin.xlane.f32.xlu1 %v9088_v37  ;;  %v5243_v33 = vcvt.f32.s32 %v5241_v45  ;;  %vm5467_vm8 = vmxor %vm10786_vm5, %vm10757_vm10 }
 0x4c0   :  { %5280 = vst.msk [vmem:[#allocation4 + $0x20] sm:$0xff] %vm10781_vm3, %v5115_v11  ;;  %v5244_v4 = vshll.u32 %v5243_v33, 16 }
 0x4c1   :  { %v5400_v34 = vpop.xlane.xlu0 %5399 }
 0x4c2   :  { %vm7319_vm9 = vcmp.eq.f32.partialorder %v5400_v34, -inf  ;;  %vm5433_vm13 = vcmp.eq.f32.partialorder %v8745_v17, %v5400_v34  ;;  %6075 = vst.msk [vmem:[#allocation3 + $0x70] sm:$0xff] %vm10784_vm14, %v5400_v34 }
 0x4c3   :  { %v5252_v42 = vpop.xlane.xlu2 %5251  ;;  %vm5496_vm4 = vmand %vm7319_vm9, %vm5464_vm15  ;;  %vm10787_vm15 = vcmask 23568  }
 0x4c4   :  { %vm5497_vm7 = vmand %vm5433_vm13, %vm5465_vm12  ;;  %v5528_v23 = vsel %vm5496_vm4, %v7467_v15, 256  ;;  %vm10788_vm4 = vcmask 15368  }
 0x4c5   :  { %v5529_v8 = vsel %vm5497_vm7, %v7558_v60, 256  ;;  %v5403_v20 = vpop.xlane.xlu1 %5402  ;;  %vm10789_vm7 = vnez %v10680_v47 }
 0x4c6   :  { %vm5756_vm11 = vcmp.lt.s32.totalorder %v5528_v23, %v5529_v8  ;;  %vm7320_vm3 = vcmp.eq.f32.partialorder %v5403_v20, -inf  ;;  %vm5435_vm14 = vcmp.eq.f32.partialorder %v8766_v41, %v5403_v20  ;;  %6076 = vst.msk [vmem:[#allocation3 + $0x78] sm:$0xff] %vm10787_vm15, %v5403_v20 }
 0x4c7   :  { %v9110_v17 = vsel %vm5756_vm11, %v5528_v23, %v5529_v8  ;;  %vm5498_vm12 = vmand %vm7320_vm3, %vm5466_vm1  ;;  %vm10790_vm11 = vnez %v10684_v7 }
 0x4c8   :  { %v5759_v12 = vshra.s32 %v9110_v17, 16  ;;  %vm5499_vm9 = vmand %vm5435_vm14, %vm5467_vm8  ;;  %v5530_v57 = vsel %vm5498_vm12, %v7467_v15, 256 }
 0x4c9   :  { %v5239_v40 = vpop.xlane.xlu0 %5238  ;;  %v5531_v45 = vsel %vm5499_vm9, %v7558_v60, 256  ;;  %vm5448_vm1 = vmxor %vm10789_vm7, %vm10757_vm10 }
 0x4ca   :  { %v5242_v63 = vcvt.f32.s32 %v5239_v40  ;;  %v9115_v11 = vcvt.s32.f32 %v5759_v12  ;;  %vm5772_vm13 = vcmp.lt.s32.totalorder %v5530_v57, %v5531_v45  ;;  %vm5449_vm8 = vmxor %vm10790_vm11, %vm10757_vm10  ;;  %vm10792_vm11 = vnez %v10695_v50 }
 0x4cb   :  { %v5135_v24 = vpop.xlane.xlu2 %5134  ;;  %v9119_v34 = vsel %vm5772_vm13, %v5530_v57, %v5531_v45  ;;  %vm10791_vm13 = vnez %v10690_v28  ;;  %vm5451_vm7 = vmxor %vm10792_vm11, %vm10757_vm10  ;;  %vm10794_vm11 = vcmask 15368  }
 0x4cc   :  { %v5245_v41 = vadd.s32 %v5244_v4, %v5242_v63  ;;  %5762 = vmin.xlane.f32.xlu0 %v9115_v11  ;;  %v5775_v23 = vshra.s32 %v9119_v34, 16 }
 0x4cd   :  { %v5376_v8 = vpop.xlane.xlu1 %5375 }
 0x4ce   :  { %5290 = vst.msk [vmem:[#allocation4 + $0x70] sm:$0xff] %vm10788_vm4, %v5245_v41  ;;  %vm7321_vm3 = vcmp.eq.f32.partialorder %v5376_v8, -inf  ;;  %vm5417_vm14 = vcmp.eq.f32.partialorder %v8801_v22, %v5376_v8  ;;  %v9130_v33 = vcvt.s32.f32 %v5775_v23  ;;  %vm5450_vm4 = vmxor %vm10791_vm13, %vm10757_vm10  ;;  %v5255_v22 = vcvt.f32.s32 %v5252_v42 }
 0x4cf   :  { %6067 = vst.msk [vmem:[#allocation3 + $0x30] sm:$0xff] %vm10787_vm15, %v5376_v8  ;;  %vm5480_vm12 = vmand %vm7321_vm3, %vm5448_vm1  ;;  %vm10793_vm3 = vcmask 23568  }
 0x4d0   :  { %vm5481_vm9 = vmand %vm5417_vm14, %vm5449_vm8  ;;  %5778 = vmin.xlane.f32.xlu2 %v9130_v33  ;;  %v5512_v12 = vsel %vm5480_vm12, %v7467_v15, 256 }
 0x4d1   :  { %v5254_v20 = vpop.xlane.xlu0 %5253  ;;  %v5513_v4 = vsel %vm5481_vm9, %v7558_v60, 256 }
 0x4d2   :  { %v5256_v40 = vcvt.f32.s32 %v5254_v20  ;;  %vm5628_vm8 = vcmp.lt.s32.totalorder %v5512_v12, %v5513_v4 }
 0x4d3   :  { %v5379_v57 = vpop.xlane.xlu2 %5378  ;;  %v9144_v45 = vsel %vm5628_vm8, %v5512_v12, %v5513_v4 }
 0x4d4   :  { %vm7322_vm15 = vcmp.eq.f32.partialorder %v5379_v57, -inf  ;;  %vm5419_vm1 = vcmp.eq.f32.partialorder %v8813_v35, %v5379_v57  ;;  %6068 = vst.msk [vmem:[#allocation3 + $0x38] sm:$0xff] %vm10793_vm3, %v5379_v57  ;;  %v5257_v63 = vshll.u32 %v5256_v40, 16  ;;  %v5631_v41 = vshra.s32 %v9144_v45, 16 }
 0x4d5   :  { %vm5482_vm14 = vmand %vm7322_vm15, %vm5450_vm4  ;;  %v5148_v20 = vpop.xlane.xlu1 %5147  ;;  %vm10797_vm4 = vnez %v10702_v32 }
 0x4d6   :  { %vm5483_vm12 = vmand %vm5419_vm1, %vm5451_vm7  ;;  %v5514_v23 = vsel %vm5482_vm14, %v7467_v15, 256  ;;  %v5258_v8 = vadd.s32 %v5257_v63, %v5255_v22  ;;  %v9149_v28 = vcvt.s32.f32 %v5631_v41  ;;  %v5138_v22 = vcvt.f32.s32 %v5135_v24 }
 0x4d7   :  { %v5515_v50 = vsel %vm5483_vm12, %v7558_v60, 256  ;;  %v5151_v47 = vcvt.f32.s32 %v5148_v20  ;;  %vm10795_vm7 = vmmov %vm10794_vm11  ;;  %vm10798_vm1 = vnez %v10705_v0  ;;  %vm10799_vm12 = vcmask 23568  }
 0x4d8   :  { %vm5644_vm9 = vcmp.lt.s32.totalorder %v5514_v23, %v5515_v50  ;;  %5291 = vst.msk [vmem:[#allocation4 + $0x78] sm:$0xff] %vm10794_vm11, %v5258_v8  ;;  %5634 = vmin.xlane.f32.xlu2 %v9149_v28  ;;  %vm10796_vm11 = vmmov %vm10795_vm7 }
 0x4d9   :  { %v9152_v35 = vsel %vm5644_vm9, %v5514_v23, %v5515_v50  ;;  %v5137_v42 = vpop.xlane.xlu0 %5136  ;;  %vm5452_vm15 = vmxor %vm10797_vm4, %vm10757_vm10 }
 0x4da   :  { %v5647_v12 = vshra.s32 %v9152_v35, 16  ;;  %v5139_v40 = vcvt.f32.s32 %v5137_v42  ;;  %vm5453_vm8 = vmxor %vm10798_vm1, %vm10757_vm10  ;;  %vm10801_vm1 = vnez %v10715_v19 }
 0x4db   :  { %v5150_v57 = vpop.xlane.xlu2 %5149  ;;  %vm5455_vm5 = vmxor %vm10801_vm1, %vm10757_vm10 }
 0x4dc   :  { %v5152_v4 = vcvt.f32.s32 %v5150_v57  ;;  %v9156_v7 = vcvt.s32.f32 %v5647_v12  ;;  %v5140_v63 = vshll.u32 %v5139_v40, 16 }
 0x4dd   :  { %v5163_v8 = vpop.xlane.xlu1 %5162 }
 0x4de   :  { %v5153_v41 = vshll.u32 %v5152_v4, 16  ;;  %5650 = vmin.xlane.f32.xlu1 %v9156_v7  ;;  %v5141_v52 = vadd.s32 %v5140_v63, %v5138_v22  ;;  %v5165_v20 = vcvt.f32.s32 %v5163_v8 }
 0x4e0   :  { %v5154_v50 = vadd.s32 %v5153_v41, %v5151_v47  ;;  %5282 = vst.msk [vmem:[#allocation4 + $0x30] sm:$0xff] %vm10795_vm7, %v5141_v52  ;;  %vm10800_vm7 = vnez %v10711_v43  ;;  %v5166_v4 = vshll.u32 %v5165_v20, 16 }
 0x4e1   :  { %v5382_v23 = vpop.xlane.xlu0 %5381 }
 0x4e2   :  { %5283 = vst.msk [vmem:[#allocation4 + $0x38] sm:$0xff] %vm10796_vm11, %v5154_v50  ;;  %vm7323_vm3 = vcmp.eq.f32.partialorder %v5382_v23, -inf  ;;  %vm5421_vm14 = vcmp.eq.f32.partialorder %v8843_v61, %v5382_v23  ;;  %vm5454_vm11 = vmxor %vm10800_vm7, %vm10757_vm10 }
 0x4e3   :  { %6069 = vst.msk [vmem:[#allocation3 + $0x40] sm:$0xff] %vm10799_vm12, %v5382_v23  ;;  %vm5484_vm9 = vmand %vm7323_vm3, %vm5452_vm15  ;;  %v5174_v47 = vpop.xlane.xlu2 %5173 }
 0x4e4   :  { %vm5485_vm13 = vmand %vm5421_vm14, %vm5453_vm8  ;;  %v5516_v52 = vsel %vm5484_vm9, %v7467_v15, 256  ;;  %vm10803_vm14 = vnez %v10722_v1 }
 0x4e5   :  { %v5517_v24 = vsel %vm5485_vm13, %v7558_v60, 256  ;;  %v5385_v42 = vpop.xlane.xlu1 %5384  ;;  %vm10802_vm8 = vmmov %vm10799_vm12 }
 0x4e6   :  { %vm5660_vm4 = vcmp.lt.s32.totalorder %v5516_v52, %v5517_v24  ;;  %vm7324_vm0 = vcmp.eq.f32.partialorder %v5385_v42, -inf  ;;  %vm5423_vm15 = vcmp.eq.f32.partialorder %v8869_v53, %v5385_v42  ;;  %6070 = vst.msk [vmem:[#allocation3 + $0x48] sm:$0xff] %vm10802_vm8, %v5385_v42 }
 0x4e7   :  { %v9178_v61 = vsel %vm5660_vm4, %v5516_v52, %v5517_v24  ;;  %vm5486_vm3 = vmand %vm7324_vm0, %vm5454_vm11  ;;  %vm10804_vm0 = vnez %v10726_v27 }
 0x4e8   :  { %v5663_v12 = vshra.s32 %v9178_v61, 16  ;;  %vm5487_vm13 = vmand %vm5423_vm15, %vm5455_vm5  ;;  %v5518_v57 = vsel %vm5486_vm3, %v7467_v15, 256  ;;  %vm10805_vm3 = vcmask 15368  }
 0x4e9   :  { %v5161_v40 = vpop.xlane.xlu0 %5160  ;;  %v5519_v41 = vsel %vm5487_vm13, %v7558_v60, 256  ;;  %vm5456_vm4 = vmxor %vm10803_vm14, %vm10757_vm10 }
 0x4ea   :  { %v5164_v22 = vcvt.f32.s32 %v5161_v40  ;;  %v9183_v63 = vcvt.s32.f32 %v5663_v12  ;;  %vm5676_vm12 = vcmp.lt.s32.totalorder %v5518_v57, %v5519_v41  ;;  %vm5457_vm5 = vmxor %vm10804_vm0, %vm10757_vm10 }
 0x4eb   :  { %v5388_v53 = vpop.xlane.xlu2 %5387  ;;  %v9194_v50 = vsel %vm5676_vm12, %v5518_v57, %v5519_v41  ;;  %vm10807_vm12 = vnez %v10732_v14 }
 0x4ec   :  { %v5167_v8 = vadd.s32 %v5166_v4, %v5164_v22  ;;  %vm7325_vm9 = vcmp.eq.f32.partialorder %v5388_v53, -inf  ;;  %vm5425_vm11 = vcmp.eq.f32.partialorder %v8890_v30, %v5388_v53  ;;  %5666 = vmin.xlane.f32.xlu0 %v9183_v63  ;;  %v5679_v23 = vshra.s32 %v9194_v50, 16  ;;  %6071 = vst.msk [vmem:[#allocation3 + $0x50] sm:$0xff] %vm10802_vm8, %v5388_v53 }
 0x4ed   :  { %vm5488_vm15 = vmand %vm7325_vm9, %vm5456_vm4  ;;  %v5187_v52 = vpop.xlane.xlu1 %5186  ;;  %v5177_v22 = vcvt.f32.s32 %v5174_v47  ;;  %vm10809_vm9 = vnez %v10735_v29 }
 0x4ee   :  { %5284 = vst.msk [vmem:[#allocation4 + $0x40] sm:$0xff] %vm10805_vm3, %v5167_v8  ;;  %vm5489_vm13 = vmand %vm5425_vm11, %vm5457_vm5  ;;  %v5520_v24 = vsel %vm5488_vm15, %v7467_v15, 256  ;;  %v9200_v20 = vcvt.s32.f32 %v5679_v23  ;;  %v5190_v27 = vcvt.f32.s32 %v5187_v52 }
 0x4ef   :  { %v5521_v42 = vsel %vm5489_vm13, %v7558_v60, 256  ;;  %vm10806_vm4 = vmmov %vm10805_vm3  ;;  %vm10810_vm13 = vcmask 23568  }
 0x4f0   :  { %vm5692_vm0 = vcmp.lt.s32.totalorder %v5520_v24, %v5521_v42  ;;  %5682 = vmin.xlane.f32.xlu2 %v9200_v20  ;;  %vm10808_vm5 = vmmov %vm10805_vm3 }
 0x4f1   :  { %v5176_v30 = vpop.xlane.xlu0 %5175  ;;  %v9204_v12 = vsel %vm5692_vm0, %v5520_v24, %v5521_v42  ;;  %vm5458_vm0 = vmxor %vm10807_vm12, %vm10757_vm10 }
 0x4f2   :  { %v5178_v40 = vcvt.f32.s32 %v5176_v30  ;;  %v5695_v57 = vshra.s32 %v9204_v12, 16  ;;  %vm5459_vm11 = vmxor %vm10809_vm9, %vm10757_vm10  ;;  %vm10812_vm9 = vnez %v10744_v25 }
 0x4f3   :  { %v5189_v4 = vpop.xlane.xlu2 %5188  ;;  %vm5461_vm1 = vmxor %vm10812_vm9, %vm10757_vm10 }
 0x4f4   :  { %v5179_v41 = vshll.u32 %v5178_v40, 16  ;;  %v5191_v53 = vcvt.f32.s32 %v5189_v4  ;;  %v9207_v8 = vcvt.s32.f32 %v5695_v57 }
 0x4f5   :  { %v5202_v19 = vpop.xlane.xlu1 %5201 }
 0x4f6   :  { %v5180_v23 = vadd.s32 %v5179_v41, %v5177_v22  ;;  %v5192_v1 = vshll.u32 %v5191_v53, 16  ;;  %5698 = vmin.xlane.f32.xlu1 %v9207_v8  ;;  %v5204_v52 = vcvt.f32.s32 %v5202_v19 }
 0x4f8   :  { %5285 = vst.msk [vmem:[#allocation4 + $0x48] sm:$0xff] %vm10806_vm4, %v5180_v23  ;;  %v5193_v43 = vadd.s32 %v5192_v1, %v5190_v27  ;;  %v5205_v40 = vshll.u32 %v5204_v52, 16 }
 0x4f9   :  { %v5391_v24 = vpop.xlane.xlu0 %5390 }
 0x4fa   :  { %5286 = vst.msk [vmem:[#allocation4 + $0x50] sm:$0xff] %vm10808_vm5, %v5193_v43  ;;  %vm7326_vm15 = vcmp.eq.f32.partialorder %v5391_v24, -inf  ;;  %vm5427_vm8 = vcmp.eq.f32.partialorder %v8918_v62, %v5391_v24  ;;  %vm10811_vm5 = vnez %v10741_v46  ;;  %v10951_v46 = vmov 0 }
 0x4fb   :  { %vm5490_vm3 = vmand %vm7326_vm15, %vm5458_vm0  ;;  %v5213_v47 = vpop.xlane.xlu2 %5212  ;;  %6072 = vst.msk [vmem:[#allocation3 + $0x58] sm:$0xff] %vm10810_vm13, %v5391_v24 }
 0x4fc   :  { %vm5491_vm4 = vmand %vm5427_vm8, %vm5459_vm11  ;;  %v5522_v1 = vsel %vm5490_vm3, %v7467_v15, 256 }
 0x4fd   :  { %v5523_v27 = vsel %vm5491_vm4, %v7558_v60, 256  ;;  %vm5460_vm12 = vmxor %vm10811_vm5, %vm10757_vm10  ;;  %v5394_v43 = vpop.xlane.xlu1 %5393 }
 0x4fe   :  { %vm5708_vm14 = vcmp.lt.s32.totalorder %v5522_v1, %v5523_v27  ;;  %vm7327_vm0 = vcmp.eq.f32.partialorder %v5394_v43, -inf  ;;  %vm5429_vm15 = vcmp.eq.f32.partialorder %v8944_v26, %v5394_v43  ;;  %vm10813_vm11 = vmmov %vm10810_vm13  ;;  %vm10814_vm13 = vnez %v10750_v13 }
 0x4ff   :  { %v9229_v62 = vsel %vm5708_vm14, %v5522_v1, %v5523_v27  ;;  %6073 = vst.msk [vmem:[#allocation3 + $0x60] sm:$0xff] %vm10813_vm11, %v5394_v43  ;;  %vm5492_vm8 = vmand %vm7327_vm0, %vm5460_vm12  ;;  %vm10815_vm12 = vnez %v10754_v39  ;;  %v5534_v13 = vand.u32 65535, %v8984_v21 }
 0x500   :  { %v5711_v19 = vshra.s32 %v9229_v62, 16  ;;  %vm5493_vm3 = vmand %vm5429_vm15, %vm5461_vm1  ;;  %v5524_v30 = vsel %vm5492_vm8, %v7467_v15, 256  ;;  %vm10816_vm8 = vcmask 23568  }
 0x501   :  { %v5200_v42 = vpop.xlane.xlu0 %5199  ;;  %v5525_v22 = vsel %vm5493_vm3, %v7558_v60, 256  ;;  %vm5462_vm14 = vmxor %vm10814_vm13, %vm10757_vm10  ;;  %vm10817_vm3 = vcmask 15368  }
 0x502   :  { %v5203_v57 = vcvt.f32.s32 %v5200_v42  ;;  %v9234_v4 = vcvt.s32.f32 %v5711_v19  ;;  %vm5724_vm4 = vcmp.lt.s32.totalorder %v5524_v30, %v5525_v22  ;;  %vm5463_vm1 = vmxor %vm10815_vm12, %vm10757_vm10 }
 0x503   :  { %v5397_v26 = vpop.xlane.xlu2 %5396  ;;  %v9245_v53 = vsel %vm5724_vm4, %v5524_v30, %v5525_v22 }
 0x504   :  { %v5206_v41 = vadd.s32 %v5205_v40, %v5203_v57  ;;  %vm7328_vm0 = vcmp.eq.f32.partialorder %v5397_v26, -inf  ;;  %vm5431_vm15 = vcmp.eq.f32.partialorder %v8964_v9, %v5397_v26  ;;  %5714 = vmin.xlane.f32.xlu0 %v9234_v4  ;;  %v5727_v23 = vshra.s32 %v9245_v53, 16  ;;  %6074 = vst.msk [vmem:[#allocation3 + $0x68] sm:$0xff] %vm10816_vm8, %v5397_v26 }
 0x505   :  { %vm5494_vm11 = vmand %vm7328_vm0, %vm5462_vm14  ;;  %v5226_v42 = vpop.xlane.xlu1 %5225  ;;  %v5216_v40 = vcvt.f32.s32 %v5213_v47  ;;  %v5566_v47 = vand.u32 65535, %v9014_v48 }
 0x506   :  { %5287 = vst.msk [vmem:[#allocation4 + $0x58] sm:$0xff] %vm10817_vm3, %v5206_v41  ;;  %vm5495_vm13 = vmand %vm5431_vm15, %vm5463_vm1  ;;  %v5526_v24 = vsel %vm5494_vm11, %v7467_v15, 256  ;;  %v9251_v1 = vcvt.s32.f32 %v5727_v23  ;;  %v5229_v41 = vcvt.f32.s32 %v5226_v42 }
 0x507   :  { %v5527_v27 = vsel %vm5495_vm13, %v7558_v60, 256  ;;  %vm10818_vm13 = vmmov %vm10817_vm3  ;;  %v5568_v21 = vcvt.s32.f32 %v5566_v47 }
 0x508   :  { %vm5740_vm10 = vcmp.lt.s32.totalorder %v5526_v24, %v5527_v27  ;;  %5730 = vmin.xlane.f32.xlu2 %v9251_v1 }
 0x509   :  { %v5215_v9 = vpop.xlane.xlu0 %5214  ;;  %v9255_v52 = vsel %vm5740_vm10, %v5526_v24, %v5527_v27  ;;  %vm10819_vm10 = vmmov %vm10817_vm3 }
 0x50a   :  { %v5217_v43 = vcvt.f32.s32 %v5215_v9  ;;  %v5743_v19 = vshra.s32 %v9255_v52, 16  ;;  %v5536_v9 = vcvt.s32.f32 %v5534_v13 }
 0x50b   :  { %v5228_v30 = vpop.xlane.xlu2 %5227 }
 0x50c   :  { %v5218_v57 = vshll.u32 %v5217_v43, 16  ;;  %v5230_v22 = vcvt.f32.s32 %v5228_v30  ;;  %v9258_v26 = vcvt.s32.f32 %v5743_v19  ;;  %v5550_v19 = vand.u32 65535, %v9019_v44 }
 0x50e   :  { %v5219_v23 = vadd.s32 %v5218_v57, %v5216_v40  ;;  %v5231_v39 = vshll.u32 %v5230_v22, 16  ;;  %5746 = vmin.xlane.f32.xlu1 %v9258_v26  ;;  %v5552_v30 = vcvt.s32.f32 %v5550_v19  ;;  %v5598_v22 = vand.u32 65535, %v9082_v31 }
 0x510   :  { %5288 = vst.msk [vmem:[#allocation4 + $0x60] sm:$0xff] %vm10818_vm13, %v5219_v23  ;;  %v5232_v24 = vadd.s32 %v5231_v39, %v5229_v41 }
 0x512   :  { %5289 = vst.msk [vmem:[#allocation4 + $0x68] sm:$0xff] %vm10819_vm10, %v5232_v24 }
 0x513   :  { %v9264_v27 = vpop.xlane.xlu2 %5538 }
 0x514   :  { %vm5540_vm14 = vcmp.eq.f32.partialorder %v9011_v2, %v9264_v27  ;;  %v5582_v2 = vand.u32 65535, %v9040_v18  ;;  %v5600_v18 = vcvt.s32.f32 %v5598_v22 }
 0x515   :  { %v5541_v43 = vsel %vm5540_vm14, %v5536_v9, inf }
 0x516   :  { %5542 = vmin.xlane.f32.xlu0 %v5541_v43  ;;  %v5584_v44 = vcvt.s32.f32 %v5582_v2 }
 0x517   :  { %v9270_v42 = vpop.xlane.xlu0 %5570 }
 0x518   :  { %vm5572_vm4 = vcmp.eq.f32.partialorder %v9021_v38, %v9270_v42  ;;  %v5614_v38 = vand.u32 65535, %v9078_v16  ;;  %v5758_v16 = vand.u32 65535, %v9110_v17  ;;  %v5630_v17 = vand.u32 65535, %v9144_v45 }
 0x519   :  { %v9274_v39 = vpop.xlane.xlu1 %5554  ;;  %v5573_v40 = vsel %vm5572_vm4, %v5568_v21, inf  ;;  %v5662_v45 = vand.u32 65535, %v9178_v61 }
 0x51a   :  { %vm5556_vm1 = vcmp.eq.f32.partialorder %v9025_v56, %v9274_v39  ;;  %5574 = vmin.xlane.f32.xlu1 %v5573_v40  ;;  %v5616_v56 = vcvt.s32.f32 %v5614_v38  ;;  %v5760_v31 = vcvt.s32.f32 %v5758_v16  ;;  %v5646_v40 = vand.u32 65535, %v9152_v35 }
 0x51b   :  { %v5557_v13 = vsel %vm5556_vm1, %v5552_v30, inf  ;;  %v5632_v30 = vcvt.s32.f32 %v5630_v17 }
 0x51c   :  { %5558 = vmin.xlane.f32.xlu2 %v5557_v13  ;;  %v5648_v13 = vcvt.s32.f32 %v5646_v40 }
 0x523   :  { %v9279_v48 = vpop.xlane.xlu2 %5586 }
 0x524   :  { %vm5588_vm0 = vcmp.eq.f32.partialorder %v9050_v59, %v9279_v48 }
 0x525   :  { %v5589_v57 = vsel %vm5588_vm0, %v5584_v44, inf  ;;  %v5664_v44 = vcvt.s32.f32 %v5662_v45  ;;  %v10821_v45 = vld [vmem:[#allocation47_spill] sm:$0xff] }
 0x526   :  { %5590 = vmin.xlane.f32.xlu0 %v5589_v57 }
 0x52f   :  { %v9285_v41 = vpop.xlane.xlu0 %5618 }
 0x530   :  { %vm5620_vm15 = vcmp.eq.f32.partialorder %v9084_v10, %v9285_v41  ;;  %v5774_v10 = vand.u32 65535, %v9119_v34 }
 0x531   :  { %v9289_v23 = vpop.xlane.xlu1 %5602  ;;  %v5621_v24 = vsel %vm5620_vm15, %v5616_v56, inf }
 0x532   :  { %vm5604_vm11 = vcmp.eq.f32.partialorder %v9088_v37, %v9289_v23  ;;  %5622 = vmin.xlane.f32.xlu1 %v5621_v24  ;;  %v5776_v19 = vcvt.s32.f32 %v5774_v10 }
 0x533   :  { %v5605_v59 = vsel %vm5604_vm11, %v5600_v18, inf }
 0x534   :  { %5606 = vmin.xlane.f32.xlu2 %v5605_v59 }
 0x53f   :  { %v9294_v9 = vpop.xlane.xlu0 %5762 }
 0x540   :  { %vm5764_vm8 = vcmp.eq.f32.partialorder %v9115_v11, %v9294_v9 }
 0x541   :  { %v5765_v47 = vsel %vm5764_vm8, %v5760_v31, inf }
 0x542   :  { %5766 = vmin.xlane.f32.xlu1 %v5765_v47 }
 0x543   :  { %v9299_v43 = vpop.xlane.xlu2 %5778 }
 0x544   :  { %vm5780_vm3 = vcmp.eq.f32.partialorder %v9130_v33, %v9299_v43 }
 0x545   :  { %v5781_v37 = vsel %vm5780_vm3, %v5776_v19, inf }
 0x546   :  { %5782 = vmin.xlane.f32.xlu0 %v5781_v37  ;;  %v5577_v37 = vcvt.f32.s32 %v9270_v42 }
 0x548   :  { %v5578_v40 = vshll.u32 %v5577_v37, 16  ;;  %v5593_v37 = vcvt.f32.s32 %v9279_v48 }
 0x54b   :  { %v9304_v21 = vpop.xlane.xlu2 %5634 }
 0x54c   :  { %vm5636_vm13 = vcmp.eq.f32.partialorder %v9149_v28, %v9304_v21  ;;  %v5678_v28 = vand.u32 65535, %v9194_v50  ;;  %v5710_v50 = vand.u32 65535, %v9229_v62 }
 0x54d   :  { %v5637_v11 = vsel %vm5636_vm13, %v5632_v30, inf  ;;  %vm10822_vm13 = vnez %v10821_v45 }
 0x54e   :  { %5638 = vmin.xlane.f32.xlu0 %v5637_v11  ;;  %v5680_v38 = vcvt.s32.f32 %v5678_v28  ;;  %v5712_v24 = vcvt.s32.f32 %v5710_v50  ;;  %v10827_v28 = vmov 0 }
 0x551   :  { %v9309_v34 = vpop.xlane.xlu1 %5650 }
 0x552   :  { %vm5652_vm10 = vcmp.eq.f32.partialorder %v9156_v7, %v9309_v34  ;;  %v5694_v7 = vand.u32 65535, %v9204_v12 }
 0x553   :  { %v5653_v33 = vsel %vm5652_vm10, %v5648_v13, inf  ;;  %v10820_v13 = vld [vmem:[#allocation5_spill] sm:$0xff] }
 0x554   :  { %5654 = vmin.xlane.f32.xlu2 %v5653_v33  ;;  %v5696_v56 = vcvt.s32.f32 %v5694_v7 }
 0x55f   :  { %v9314_v2 = vpop.xlane.xlu0 %5666 }
 0x560   :  { %vm5668_vm14 = vcmp.eq.f32.partialorder %v9183_v63, %v9314_v2 }
 0x561   :  { %v5669_v35 = vsel %vm5668_vm14, %v5664_v44, inf  ;;  %v10825_v44 = vld [vmem:[#allocation48_spill] sm:$0xff] }
 0x562   :  { %5670 = vmin.xlane.f32.xlu1 %v5669_v35  ;;  %vm10826_vm14 = vnez %v10825_v44 }
 0x563   :  { %v9319_v57 = vpop.xlane.xlu2 %5682 }
 0x564   :  { %vm5684_vm4 = vcmp.eq.f32.partialorder %v9200_v20, %v9319_v57  ;;  %v5726_v20 = vand.u32 65535, %v9245_v53  ;;  %v5545_v53 = vcvt.f32.s32 %v9264_v27 }
 0x565   :  { %v5685_v22 = vsel %vm5684_vm4, %v5680_v38, inf }
 0x566   :  { %5686 = vmin.xlane.f32.xlu0 %v5685_v22  ;;  %v5728_v16 = vcvt.s32.f32 %v5726_v20  ;;  %v5546_v19 = vshll.u32 %v5545_v53, 16  ;;  %v10829_v22 = vld [vmem:[#allocation10_spill] sm:$0xff]  ;;  %v10831_v20 = vmov 0 }
 0x569   :  { %v9324_v61 = vpop.xlane.xlu1 %5698 }
 0x56a   :  { %vm5700_vm1 = vcmp.eq.f32.partialorder %v9207_v8, %v9324_v61  ;;  %v5742_v8 = vand.u32 65535, %v9255_v52 }
 0x56b   :  { %v5701_v63 = vsel %vm5700_vm1, %v5696_v56, inf }
 0x56c   :  { %5702 = vmin.xlane.f32.xlu2 %v5701_v63  ;;  %v5744_v10 = vcvt.s32.f32 %v5742_v8 }
 0x577   :  { %v9329_v18 = vpop.xlane.xlu0 %5714 }
 0x578   :  { %vm5716_vm0 = vcmp.eq.f32.partialorder %v9234_v4, %v9329_v18 }
 0x579   :  { %v5717_v12 = vsel %vm5716_vm0, %v5712_v24, inf }
 0x57a   :  { %5718 = vmin.xlane.f32.xlu1 %v5717_v12  ;;  %v10834_v12 = vmov 0 }
 0x57b   :  { %v9334_v59 = vpop.xlane.xlu2 %5730 }
 0x57c   :  { %vm5732_vm15 = vcmp.eq.f32.partialorder %v9251_v1, %v9334_v59  ;;  %v5561_v1 = vcvt.f32.s32 %v9274_v39 }
 0x57d   :  { %v5733_v31 = vsel %vm5732_vm15, %v5728_v16, inf  ;;  %vm10830_vm15 = vnez %v10628_v58  ;;  %v10836_v16 = vld [vmem:[#allocation6_spill] sm:$0xff] }
 0x57e   :  { %5734 = vmin.xlane.f32.xlu0 %v5733_v31 }
 0x581   :  { %v9339_v62 = vpop.xlane.xlu1 %5746 }
 0x582   :  { %vm5748_vm11 = vcmp.eq.f32.partialorder %v9258_v26, %v9339_v62  ;;  %v5562_v26 = vshll.u32 %v5561_v1, 16  ;;  %v10843_v1 = vmov 0 }
 0x583   :  { %v5749_v4 = vsel %vm5748_vm11, %v5744_v10, inf }
 0x584   :  { %5750 = vmin.xlane.f32.xlu2 %v5749_v4  ;;  %v10837_v4 = vld [vmem:[#allocation7_spill] sm:$0xff] }
 0x589   :  { %v5543_v47 = vpop.xlane.xlu0 %5542 }
 0x58a   :  { %v5544_v17 = vcvt.f32.s32 %v5543_v47 }
 0x58c   :  { %v5547_v52 = vadd.s32 %v5546_v19, %v5544_v17  ;;  %v10839_v19 = vmov 0  ;;  %v10841_v17 = vld [vmem:[#allocation49_spill] sm:$0xff] }
 0x58d   :  { %v5575_v30 = vpop.xlane.xlu1 %5574 }
 0x58e   :  { %vm5788_vm8 = vcmp.eq.s32.totalorder %v7467_v15, %v5547_v52  ;;  %vm5789_vm3 = vcmp.eq.s32.totalorder %v7558_v60, %v5547_v52  ;;  %v5576_v11 = vcvt.f32.s32 %v5575_v30 }
 0x58f   :  { %v5820_v33 = vsel %vm5788_vm8, %v10820_v13, 0  ;;  %v5821_v27 = vsel %vm5789_vm3, %v7467_v15, 0  ;;  %vm9352_vm10 = vmor %vm10822_vm13, %vm5788_vm8  ;;  %v5559_v39 = vpop.xlane.xlu2 %5558  ;;  %vm10833_vm13 = vnez %v10631_v49 }
 0x590   :  { %vm9358_vm4 = vmor %vm10826_vm14, %vm5789_vm3  ;;  %v5579_v35 = vadd.s32 %v5578_v40, %v5576_v11  ;;  %v5560_v38 = vcvt.f32.s32 %v5559_v39  ;;  %v5852_v7 = vadd.s32 %v5821_v27, %v5820_v33  ;;  %v10846_v33 = vld [vmem:[#allocation12_spill] sm:$0xff]  ;;  %v5594_v27 = vshll.u32 %v5593_v37, 16 }
 0x591   :  { %v10828_v28 = vsel %vm9358_vm4, 4294967295, %v10827_v28  ;;  %v9365_v56 = vsel %vm9358_vm4, -inf, %v10829_v22  ;;  %v10847_v22 = vld [vmem:[#allocation8_spill] sm:$0xff] }
 0x592   :  { %vm5792_vm1 = vcmp.eq.s32.totalorder %v7467_v15, %v5579_v35  ;;  %vm5793_vm0 = vcmp.eq.s32.totalorder %v7558_v60, %v5579_v35  ;;  %v5563_v63 = vadd.s32 %v5562_v26, %v5560_v38  ;;  %v5854_v50 = vshrl.u32 %v5852_v7, 16  ;;  %6158 = vmax.xlane.f32.xlu0 %v9365_v56 }
 0x593   :  { %v5853_v24 = vand.u32 65535, %v5852_v7  ;;  %vm9371_vm11 = vmor %vm10830_vm15, %vm5792_vm1  ;;  %v5824_v53 = vsel %vm5792_vm1, %v10837_v4, 0  ;;  %v5825_v47 = vsel %vm5793_vm0, %v7467_v15, 0  ;;  %vm10838_vm15 = vnez %v10622_v54  ;;  %v10845_v54 = vld [vmem:[#allocation13_spill] sm:$0xff] }
 0x594   :  { %v10832_v20 = vsel %vm9371_vm11, 4294967295, %v10831_v20  ;;  %vm5790_vm8 = vcmp.eq.s32.totalorder %v7467_v15, %v5563_v63  ;;  %vm5791_vm3 = vcmp.eq.s32.totalorder %v7558_v60, %v5563_v63  ;;  %vm9380_vm14 = vmor %vm10833_vm13, %vm5793_vm0  ;;  %v5856_v31 = vcvt.s32.f32 %v5854_v50 }
 0x595   :  { %v10835_v12 = vsel %vm9380_vm14, 4294967295, %v10834_v12  ;;  %v5822_v8 = vsel %vm5790_vm8, %v10836_v16, 0  ;;  %v5823_v58 = vsel %vm5791_vm3, %v7467_v15, 0  ;;  %v5855_v10 = vcvt.s32.f32 %v5853_v24  ;;  %vm9390_vm11 = vmor %vm10838_vm15, %vm5790_vm8 }
 0x596   :  { %v10840_v19 = vsel %vm9390_vm11, 4294967295, %v10839_v19  ;;  %v5865_v49 = vadd.s32 %v5823_v58, %v5822_v8  ;;  %vm10842_vm13 = vnez %v10841_v17  ;;  %5859 = vadd.xlane.f32.xlu2 %v5856_v31  ;;  %v5878_v30 = vadd.s32 %v5825_v47, %v5824_v53  ;;  %v10854_v17 = vld [vmem:[#allocation14_spill] sm:$0xff] }
 0x597   :  { %vm9397_vm4 = vmor %vm10842_vm13, %vm5791_vm3  ;;  %5857 = vadd.xlane.f32.xlu1 %v5855_v10  ;;  %v9404_v26 = vsel %vm9380_vm14, -inf, %v10845_v54  ;;  %v5625_v7 = vcvt.f32.s32 %v9285_v41  ;;  %vm10848_vm8 = vnez %v10634_v55  ;;  %v10849_v8 = vmov 0 }
 0x598   :  { %v10844_v1 = vsel %vm9397_vm4, 4294967295, %v10843_v1  ;;  %v5866_v52 = vand.u32 65535, %v5865_v49  ;;  %v9409_v48 = vsel %vm9397_vm4, -inf, %v10846_v33  ;;  %v5880_v44 = vshrl.u32 %v5878_v30, 16 }
 0x599   :  { %v5591_v40 = vpop.xlane.xlu0 %5590  ;;  %v5879_v35 = vand.u32 65535, %v5878_v30  ;;  %v5867_v38 = vshrl.u32 %v5865_v49, 16  ;;  %v5609_v58 = vcvt.f32.s32 %v9289_v23  ;;  %vm10851_vm15 = vnez %v10637_v3 }
 0x59a   :  { %v5868_v11 = vcvt.s32.f32 %v5866_v52  ;;  %v5592_v45 = vcvt.f32.s32 %v5591_v40  ;;  %v5882_v24 = vcvt.s32.f32 %v5880_v44  ;;  %v10852_v31 = vmov 0 }
 0x59b   :  { %v5881_v10 = vcvt.s32.f32 %v5879_v35  ;;  %v5869_v53 = vcvt.s32.f32 %v5867_v38  ;;  %v5626_v49 = vshll.u32 %v5625_v7, 16  ;;  %v5610_v3 = vshll.u32 %v5609_v58, 16  ;;  %v10863_v7 = vld [vmem:[#allocation11_spill] sm:$0xff] }
 0x59c   :  { %5870 = vadd.xlane.f32.xlu0 %v5868_v11  ;;  %v5595_v39 = vadd.s32 %v5594_v27, %v5592_v45  ;;  %v10856_v33 = vmov 0  ;;  %v10858_v27 = vld [vmem:[#allocation27_spill] sm:$0xff]  ;;  %v10860_v45 = vmov 0  ;;  %v10866_v58 = vmov 0 }
 0x59d   :  { %vm10859_vm14 = vnez %v10858_v27 }
 0x59e   :  { %vm5794_vm1 = vcmp.eq.s32.totalorder %v7467_v15, %v5595_v39  ;;  %vm5795_vm0 = vcmp.eq.s32.totalorder %v7558_v60, %v5595_v39  ;;  %6164 = vmax.xlane.f32.xlu2 %v9404_v26  ;;  %v10862_v39 = vld [vmem:[#allocation9_spill] sm:$0xff] }
 0x59f   :  { %6161 = vmax.xlane.f32.xlu1 %v9409_v48  ;;  %v5826_v63 = vsel %vm5794_vm1, %v10847_v22, 0  ;;  %v5827_v50 = vsel %vm5795_vm0, %v7467_v15, 0  ;;  %vm9420_vm3 = vmor %vm10848_vm8, %vm5794_vm1  ;;  %vm10855_vm8 = vnez %v10649_v51 }
 0x5a0   :  { %v10850_v8 = vsel %vm9420_vm3, 4294967295, %v10849_v8  ;;  %vm9427_vm13 = vmor %vm10851_vm15, %vm5795_vm0  ;;  %v5891_v47 = vadd.s32 %v5827_v50, %v5826_v63 }
 0x5a1   :  { %v10853_v31 = vsel %vm9427_vm13, 4294967295, %v10852_v31  ;;  %v9434_v23 = vsel %vm9427_vm13, -inf, %v10854_v17  ;;  %v10872_v17 = vld [vmem:[#allocation16_spill] sm:$0xff] }
 0x5a2   :  { %v5893_v40 = vshrl.u32 %v5891_v47, 16  ;;  %v5892_v11 = vand.u32 65535, %v5891_v47 }
 0x5a4   :  { %5885 = vadd.xlane.f32.xlu0 %v5882_v24  ;;  %v5895_v35 = vcvt.s32.f32 %v5893_v40  ;;  %v5894_v38 = vcvt.s32.f32 %v5892_v11  ;;  %v10864_v24 = vld [vmem:[#allocation50_spill] sm:$0xff] }
 0x5a5   :  { %v5623_v41 = vpop.xlane.xlu1 %5622 }
 0x5a6   :  { %v5624_v37 = vcvt.f32.s32 %v5623_v41  ;;  %5883 = vadd.xlane.f32.xlu2 %v5881_v10  ;;  %v10868_v10 = vld [vmem:[#allocation51_spill] sm:$0xff] }
 0x5a7   :  { %v5607_v55 = vpop.xlane.xlu2 %5606  ;;  %5872 = vadd.xlane.f32.xlu1 %v5869_v53  ;;  %v10870_v53 = vmov 0 }
 0x5a8   :  { %v5627_v52 = vadd.s32 %v5626_v49, %v5624_v37  ;;  %v5608_v30 = vcvt.f32.s32 %v5607_v55  ;;  %v5769_v49 = vcvt.f32.s32 %v9294_v9 }
 0x5aa   :  { %vm5798_vm1 = vcmp.eq.s32.totalorder %v7467_v15, %v5627_v52  ;;  %vm5799_vm0 = vcmp.eq.s32.totalorder %v7558_v60, %v5627_v52  ;;  %v5611_v54 = vadd.s32 %v5610_v3, %v5608_v30  ;;  %v10873_v52 = vld [vmem:[#allocation15_spill] sm:$0xff]  ;;  %v5770_v11 = vshll.u32 %v5769_v49, 16 }
 0x5ab   :  { %vm9440_vm15 = vmor %vm10855_vm8, %vm5798_vm1  ;;  %v5830_v63 = vsel %vm5798_vm1, %v10863_v7, 0  ;;  %v5831_v50 = vsel %vm5799_vm0, %v7467_v15, 0  ;;  %vm10865_vm8 = vnez %v10864_v24  ;;  %v10874_v24 = vld [vmem:[#allocation29_spill] sm:$0xff] }
 0x5ac   :  { %v10857_v33 = vsel %vm9440_vm15, 4294967295, %v10856_v33  ;;  %vm5796_vm3 = vcmp.eq.s32.totalorder %v7467_v15, %v5611_v54  ;;  %vm5797_vm13 = vcmp.eq.s32.totalorder %v7558_v60, %v5611_v54  ;;  %6167 = vmax.xlane.f32.xlu0 %v9434_v23  ;;  %vm9449_vm4 = vmor %vm10859_vm14, %vm5799_vm0  ;;  %vm10869_vm14 = vnez %v10868_v10 }
 0x5ad   :  { %v10861_v45 = vsel %vm9449_vm4, 4294967295, %v10860_v45  ;;  %v5828_v44 = vsel %vm5796_vm3, %v10862_v39, 0  ;;  %v5829_v51 = vsel %vm5797_vm13, %v7467_v15, 0  ;;  %vm9459_vm15 = vmor %vm10865_vm8, %vm5796_vm3  ;;  %v5917_v37 = vadd.s32 %v5831_v50, %v5830_v63 }
 0x5ae   :  { %v10867_v58 = vsel %vm9459_vm15, 4294967295, %v10866_v58  ;;  %v5904_v41 = vadd.s32 %v5829_v51, %v5828_v44  ;;  %vm9465_vm11 = vmor %vm10869_vm14, %vm5797_vm13  ;;  %5898 = vadd.xlane.f32.xlu2 %v5895_v35  ;;  %v9473_v3 = vsel %vm9449_vm4, -inf, %v10872_v17  ;;  %v5785_v44 = vcvt.f32.s32 %v9299_v43 }
 0x5af   :  { %v10871_v53 = vsel %vm9465_vm11, 4294967295, %v10870_v53  ;;  %5896 = vadd.xlane.f32.xlu1 %v5894_v38  ;;  %v9478_v30 = vsel %vm9465_vm11, -inf, %v10873_v52  ;;  %v5919_v27 = vshrl.u32 %v5917_v37, 16  ;;  %v5918_v51 = vand.u32 65535, %v5917_v37 }
 0x5b0   :  { %v5905_v47 = vand.u32 65535, %v5904_v41  ;;  %v5906_v35 = vshrl.u32 %v5904_v41, 16  ;;  %v5786_v50 = vshll.u32 %v5785_v44, 16  ;;  %v10875_v41 = vmov 0 }
 0x5b1   :  { %v5921_v63 = vcvt.s32.f32 %v5919_v27  ;;  %v5920_v17 = vcvt.s32.f32 %v5918_v51 }
 0x5b2   :  { %v5907_v55 = vcvt.s32.f32 %v5905_v47  ;;  %v5908_v37 = vcvt.s32.f32 %v5906_v35 }
 0x5b4   :  { %5909 = vadd.xlane.f32.xlu0 %v5907_v55 }
 0x5b5   :  { %v5767_v40 = vpop.xlane.xlu1 %5766 }
 0x5b6   :  { %v5768_v54 = vcvt.f32.s32 %v5767_v40  ;;  %6173 = vmax.xlane.f32.xlu2 %v9473_v3  ;;  %v5641_v40 = vcvt.f32.s32 %v9304_v21 }
 0x5b7   :  { %6170 = vmax.xlane.f32.xlu1 %v9478_v30 }
 0x5b8   :  { %v5771_v9 = vadd.s32 %v5770_v11, %v5768_v54  ;;  %v10877_v11 = vmov 0 }
 0x5b9   :  { %v5783_v38 = vpop.xlane.xlu0 %5782 }
 0x5ba   :  { %vm5816_vm3 = vcmp.eq.s32.totalorder %v7467_v15, %v5771_v9  ;;  %vm5817_vm13 = vcmp.eq.s32.totalorder %v7558_v60, %v5771_v9  ;;  %v5784_v47 = vcvt.f32.s32 %v5783_v38  ;;  %v5657_v9 = vcvt.f32.s32 %v9309_v34 }
 0x5bb   :  { %v5848_v10 = vsel %vm5816_vm3, %v10874_v24, 0  ;;  %v5849_v43 = vsel %vm5817_vm13, %v7467_v15, 0  ;;  %vm9491_vm1 = vmor %vm10782_vm6, %vm5816_vm3  ;;  %v5642_v38 = vshll.u32 %v5641_v40, 16  ;;  %vm10881_vm6 = vnez %v10670_v5 }
 0x5bc   :  { %5924 = vadd.xlane.f32.xlu0 %v5921_v63  ;;  %v6034_v49 = vadd.s32 %v5849_v43, %v5848_v10  ;;  %v5787_v55 = vadd.s32 %v5786_v50, %v5784_v47  ;;  %v10876_v41 = vsel %vm9491_vm1, 4294967295, %v10875_v41  ;;  %vm9500_vm0 = vmor %vm10783_vm2, %vm5817_vm13  ;;  %v10882_v63 = vmov 0  ;;  %v10884_v43 = vld [vmem:[#allocation28_spill] sm:$0xff] }
 0x5bd   :  { %v10878_v11 = vsel %vm9500_vm0, 4294967295, %v10877_v11  ;;  %v9512_v35 = vsel %vm9500_vm0, -inf, %v10880_v36  ;;  %vm10885_vm3 = vnez %v10884_v43  ;;  %v10886_v47 = vmov 0  ;;  %v10894_v43 = vld [vmem:[#allocation32_spill] sm:$0xff] }
 0x5be   :  { %v6036_v52 = vshrl.u32 %v6034_v49, 16  ;;  %vm5818_vm8 = vcmp.eq.s32.totalorder %v7467_v15, %v5787_v55  ;;  %vm5819_vm14 = vcmp.eq.s32.totalorder %v7558_v60, %v5787_v55  ;;  %5922 = vadd.xlane.f32.xlu2 %v5920_v17  ;;  %v5658_v17 = vshll.u32 %v5657_v9, 16 }
 0x5bf   :  { %5911 = vadd.xlane.f32.xlu1 %v5908_v37  ;;  %v5850_v54 = vsel %vm5818_vm8, %v10879_v6, 0  ;;  %v5851_v27 = vsel %vm5819_vm14, %v7467_v15, 0  ;;  %vm9516_vm2 = vmor %vm10881_vm6, %vm5818_vm8  ;;  %v6035_v9 = vand.u32 65535, %v6034_v49 }
 0x5c0   :  { %v6038_v44 = vcvt.s32.f32 %v6036_v52  ;;  %v6047_v21 = vadd.s32 %v5851_v27, %v5850_v54  ;;  %v10883_v63 = vsel %vm9516_vm2, 4294967295, %v10882_v63  ;;  %vm9522_vm13 = vmor %vm10885_vm3, %vm5819_vm14  ;;  %v10888_v52 = vld [vmem:[#allocation18_spill] sm:$0xff]  ;;  %v10889_v54 = vld [vmem:[#allocation33_spill] sm:$0xff]  ;;  %vm10895_vm2 = vnez %v10894_v43 }
 0x5c1   :  { %v5639_v51 = vpop.xlane.xlu0 %5638  ;;  %v10887_v47 = vsel %vm9522_vm13, 4294967295, %v10886_v47  ;;  %v9532_v40 = vsel %vm9522_vm13, -inf, %v10888_v52  ;;  %v6037_v49 = vcvt.s32.f32 %v6035_v9 }
 0x5c2   :  { %v5640_v50 = vcvt.f32.s32 %v5639_v51  ;;  %v6048_v10 = vand.u32 65535, %v6047_v21  ;;  %v6049_v43 = vshrl.u32 %v6047_v21, 16 }
 0x5c4   :  { %6041 = vadd.xlane.f32.xlu0 %v6038_v44  ;;  %v5643_v34 = vadd.s32 %v5642_v38, %v5640_v50  ;;  %v6050_v55 = vcvt.s32.f32 %v6048_v10  ;;  %v10890_v38 = vld [vmem:[#allocation30_spill] sm:$0xff]  ;;  %v10892_v50 = vmov 0  ;;  %v6051_v6 = vcvt.s32.f32 %v6049_v43 }
 0x5c5   :  { %vm10891_vm14 = vnez %v10890_v38  ;;  %v10905_v38 = vmov 0  ;;  %v5705_v43 = vcvt.f32.s32 %v9324_v61 }
 0x5c6   :  { %vm5800_vm0 = vcmp.eq.s32.totalorder %v7467_v15, %v5643_v34  ;;  %vm5801_vm8 = vcmp.eq.s32.totalorder %v7558_v60, %v5643_v34  ;;  %6200 = vmax.xlane.f32.xlu2 %v9512_v35  ;;  %v10896_v34 = vmov 0 }
 0x5c7   :  { %v5655_v37 = vpop.xlane.xlu2 %5654  ;;  %6052 = vadd.xlane.f32.xlu1 %v6050_v55  ;;  %v5832_v27 = vsel %vm5800_vm0, %v10889_v54, 0  ;;  %v5833_v44 = vsel %vm5801_vm8, %v7467_v15, 0  ;;  %vm9538_vm6 = vmor %vm10891_vm14, %vm5800_vm0  ;;  %v5706_v61 = vshll.u32 %v5705_v43, 16 }
 0x5c8   :  { %v5656_v5 = vcvt.f32.s32 %v5655_v37  ;;  %v5930_v36 = vadd.s32 %v5833_v44, %v5832_v27  ;;  %v10893_v50 = vsel %vm9538_vm6, 4294967295, %v10892_v50  ;;  %vm9545_vm13 = vmor %vm10895_vm2, %vm5801_vm8  ;;  %v10900_v37 = vmov 0  ;;  %v10903_v44 = vld [vmem:[#allocation52_spill] sm:$0xff] }
 0x5c9   :  { %v10897_v34 = vsel %vm9545_vm13, 4294967295, %v10896_v34  ;;  %vm10904_vm2 = vnez %v10903_v44 }
 0x5ca   :  { %v5659_v51 = vadd.s32 %v5658_v17, %v5656_v5  ;;  %v5931_v10 = vand.u32 65535, %v5930_v36  ;;  %v10898_v17 = vld [vmem:[#allocation34_spill] sm:$0xff]  ;;  %v10902_v5 = vld [vmem:[#allocation35_spill] sm:$0xff]  ;;  %v5932_v21 = vshrl.u32 %v5930_v36, 16 }
 0x5cb   :  { %vm10899_vm0 = vnez %v10898_v17  ;;  %v10908_v17 = vld [vmem:[#allocation20_spill] sm:$0xff] }
 0x5cc   :  { %vm5802_vm3 = vcmp.eq.s32.totalorder %v7467_v15, %v5659_v51  ;;  %vm5803_vm1 = vcmp.eq.s32.totalorder %v7558_v60, %v5659_v51  ;;  %6203 = vmax.xlane.f32.xlu0 %v9532_v40  ;;  %v5933_v55 = vcvt.s32.f32 %v5931_v10  ;;  %v10907_v51 = vld [vmem:[#allocation19_spill] sm:$0xff]  ;;  %v5673_v10 = vcvt.f32.s32 %v9314_v2 }
 0x5cd   :  { %vm9553_vm14 = vmor %vm10899_vm0, %vm5802_vm3  ;;  %v5834_v52 = vsel %vm5802_vm3, %v10902_v5, 0  ;;  %v5835_v27 = vsel %vm5803_vm1, %v7467_v15, 0  ;;  %v9568_v9 = vsel %vm9545_vm13, -inf, %v10907_v51  ;;  %v5934_v36 = vcvt.s32.f32 %v5932_v21 }
 0x5ce   :  { %v10901_v37 = vsel %vm9553_vm14, 4294967295, %v10900_v37  ;;  %vm9561_vm8 = vmor %vm10904_vm2, %vm5803_vm1  ;;  %6039 = vadd.xlane.f32.xlu2 %v6037_v49  ;;  %v5943_v44 = vadd.s32 %v5835_v27, %v5834_v52  ;;  %v5674_v49 = vshll.u32 %v5673_v10, 16  ;;  %v10909_v10 = vld [vmem:[#allocation37_spill] sm:$0xff]  ;;  %vm10910_vm0 = vnez %v10702_v32 }
 0x5cf   :  { %v10906_v38 = vsel %vm9561_vm8, 4294967295, %v10905_v38  ;;  %5935 = vadd.xlane.f32.xlu1 %v5933_v55  ;;  %v9574_v5 = vsel %vm9561_vm8, -inf, %v10908_v17  ;;  %v5689_v55 = vcvt.f32.s32 %v9319_v57  ;;  %vm10913_vm8 = vnez %v10705_v0  ;;  %v10917_v0 = vld [vmem:[#allocation21_spill] sm:$0xff] }
 0x5d0   :  { %v5944_v7 = vand.u32 65535, %v5943_v44  ;;  %v5945_v51 = vshrl.u32 %v5943_v44, 16 }
 0x5d1   :  { %v5690_v39 = vshll.u32 %v5689_v55, 16  ;;  %v10914_v55 = vmov 0 }
 0x5d2   :  { %v5946_v27 = vcvt.s32.f32 %v5944_v7  ;;  %v5947_v44 = vcvt.s32.f32 %v5945_v51 }
 0x5d4   :  { %6176 = vmax.xlane.f32.xlu0 %v9568_v9 }
 0x5d5   :  { %v5671_v54 = vpop.xlane.xlu1 %5670 }
 0x5d6   :  { %v5672_v24 = vcvt.f32.s32 %v5671_v54  ;;  %6054 = vadd.xlane.f32.xlu2 %v6051_v6 }
 0x5d7   :  { %6179 = vmax.xlane.f32.xlu1 %v9574_v5 }
 0x5d8   :  { %v5675_v2 = vadd.s32 %v5674_v49, %v5672_v24  ;;  %v10911_v49 = vmov 0 }
 0x5d9   :  { %v5687_v52 = vpop.xlane.xlu0 %5686 }
 0x5da   :  { %vm5804_vm1 = vcmp.eq.s32.totalorder %v7467_v15, %v5675_v2  ;;  %vm5805_vm3 = vcmp.eq.s32.totalorder %v7558_v60, %v5675_v2  ;;  %v5688_v6 = vcvt.f32.s32 %v5687_v52 }
 0x5db   :  { %v5836_v17 = vsel %vm5804_vm1, %v10909_v10, 0  ;;  %v5837_v57 = vsel %vm5805_vm3, %v7467_v15, 0  ;;  %vm9588_vm2 = vmor %vm10910_vm0, %vm5804_vm1 }
 0x5dc   :  { %5948 = vadd.xlane.f32.xlu0 %v5946_v27  ;;  %v5956_v24 = vadd.s32 %v5837_v57, %v5836_v17  ;;  %v5691_v54 = vadd.s32 %v5690_v39, %v5688_v6  ;;  %v10912_v49 = vsel %vm9588_vm2, 4294967295, %v10911_v49  ;;  %vm9596_vm14 = vmor %vm10913_vm8, %vm5805_vm3  ;;  %v10916_v39 = vld [vmem:[#allocation39_spill] sm:$0xff]  ;;  %v10919_v6 = vmov 0 }
 0x5dd   :  { %v10915_v55 = vsel %vm9596_vm14, 4294967295, %v10914_v55  ;;  %v9607_v17 = vsel %vm9596_vm14, -inf, %v10917_v0  ;;  %v10930_v0 = vld [vmem:[#allocation53_spill] sm:$0xff]  ;;  %v10932_v57 = vmov 0 }
 0x5de   :  { %v5958_v7 = vshrl.u32 %v5956_v24, 16  ;;  %vm5806_vm13 = vcmp.eq.s32.totalorder %v7467_v15, %v5691_v54  ;;  %vm5807_vm6 = vcmp.eq.s32.totalorder %v7558_v60, %v5691_v54  ;;  %5937 = vadd.xlane.f32.xlu2 %v5934_v36  ;;  %v10921_v36 = vld [vmem:[#allocation38_spill] sm:$0xff] }
 0x5df   :  { %v5703_v32 = vpop.xlane.xlu2 %5702  ;;  %5950 = vadd.xlane.f32.xlu1 %v5947_v44  ;;  %v5838_v21 = vsel %vm5806_vm13, %v10916_v39, 0  ;;  %v5839_v51 = vsel %vm5807_vm6, %v7467_v15, 0  ;;  %vm9611_vm8 = vmor %vm10800_vm7, %vm5806_vm13  ;;  %vm10922_vm1 = vnez %v10921_v36  ;;  %v10923_v44 = vmov 0 }
 0x5e0   :  { %v5704_v52 = vcvt.f32.s32 %v5703_v32  ;;  %v5960_v27 = vcvt.s32.f32 %v5958_v7  ;;  %v5969_v2 = vadd.s32 %v5839_v51, %v5838_v21  ;;  %v10920_v6 = vsel %vm9611_vm8, 4294967295, %v10919_v6  ;;  %vm9617_vm3 = vmor %vm10922_vm1, %vm5807_vm6  ;;  %v10929_v21 = vld [vmem:[#allocation41_spill] sm:$0xff] }
 0x5e1   :  { %v10924_v44 = vsel %vm9617_vm3, 4294967295, %v10923_v44  ;;  %v10927_v32 = vmov 0  ;;  %vm10931_vm7 = vnez %v10930_v0  ;;  %v5957_v36 = vand.u32 65535, %v5956_v24 }
 0x5e2   :  { %v5707_v43 = vadd.s32 %v5706_v61, %v5704_v52  ;;  %v5970_v54 = vand.u32 65535, %v5969_v2  ;;  %v10925_v61 = vld [vmem:[#allocation40_spill] sm:$0xff]  ;;  %v5971_v24 = vshrl.u32 %v5969_v2, 16 }
 0x5e3   :  { %vm10926_vm14 = vnez %v10925_v61  ;;  %v10935_v61 = vld [vmem:[#allocation23_spill] sm:$0xff]  ;;  %v5959_v10 = vcvt.s32.f32 %v5957_v36  ;;  %v5753_v36 = vcvt.f32.s32 %v9339_v62 }
 0x5e4   :  { %vm5808_vm0 = vcmp.eq.s32.totalorder %v7467_v15, %v5707_v43  ;;  %vm5809_vm2 = vcmp.eq.s32.totalorder %v7558_v60, %v5707_v43  ;;  %5963 = vadd.xlane.f32.xlu0 %v5960_v27  ;;  %v5972_v7 = vcvt.s32.f32 %v5970_v54  ;;  %v10934_v27 = vld [vmem:[#allocation22_spill] sm:$0xff]  ;;  %v5721_v54 = vcvt.f32.s32 %v9329_v18 }
 0x5e5   :  { %vm9625_vm4 = vmor %vm10926_vm14, %vm5808_vm0  ;;  %v5840_v51 = vsel %vm5808_vm0, %v10929_v21, 0  ;;  %v5841_v52 = vsel %vm5809_vm2, %v7467_v15, 0  ;;  %v9641_v43 = vsel %vm9617_vm3, -inf, %v10934_v27  ;;  %v5754_v62 = vshll.u32 %v5753_v36, 16 }
 0x5e6   :  { %v10928_v32 = vsel %vm9625_vm4, 4294967295, %v10927_v32  ;;  %vm9633_vm13 = vmor %vm10931_vm7, %vm5809_vm2  ;;  %6182 = vmax.xlane.f32.xlu2 %v9607_v17  ;;  %v5982_v0 = vadd.s32 %v5841_v52, %v5840_v51  ;;  %v5722_v22 = vshll.u32 %v5721_v54, 16  ;;  %v10936_v54 = vld [vmem:[#allocation42_spill] sm:$0xff]  ;;  %vm10937_vm2 = vnez %v10732_v14 }
 0x5e7   :  { %v10933_v57 = vsel %vm9633_vm13, 4294967295, %v10932_v57  ;;  %5974 = vadd.xlane.f32.xlu1 %v5972_v7  ;;  %v9647_v21 = vsel %vm9633_vm13, -inf, %v10935_v61  ;;  %v5737_v7 = vcvt.f32.s32 %v9334_v59  ;;  %vm10940_vm0 = vnez %v10735_v29  ;;  %v10944_v29 = vld [vmem:[#allocation24_spill] sm:$0xff] }
 0x5e8   :  { %v5983_v16 = vand.u32 65535, %v5982_v0  ;;  %v5984_v27 = vshrl.u32 %v5982_v0, 16  ;;  %v10938_v0 = vmov 0 }
 0x5e9   :  { %v5738_v13 = vshll.u32 %v5737_v7, 16  ;;  %v10941_v7 = vmov 0 }
 0x5ea   :  { %v5985_v52 = vcvt.s32.f32 %v5983_v16  ;;  %v5986_v2 = vcvt.s32.f32 %v5984_v27 }
 0x5ec   :  { %6185 = vmax.xlane.f32.xlu0 %v9641_v43 }
 0x5ed   :  { %v5719_v39 = vpop.xlane.xlu1 %5718 }
 0x5ee   :  { %v5720_v4 = vcvt.f32.s32 %v5719_v39  ;;  %5961 = vadd.xlane.f32.xlu2 %v5959_v10  ;;  %v5973_v39 = vcvt.s32.f32 %v5971_v24 }
 0x5ef   :  { %6188 = vmax.xlane.f32.xlu1 %v9647_v21 }
 0x5f0   :  { %v5723_v18 = vadd.s32 %v5722_v22, %v5720_v4 }
 0x5f1   :  { %v5735_v51 = vpop.xlane.xlu0 %5734 }
 0x5f2   :  { %vm5810_vm6 = vcmp.eq.s32.totalorder %v7467_v15, %v5723_v18  ;;  %vm5811_vm14 = vcmp.eq.s32.totalorder %v7558_v60, %v5723_v18  ;;  %v5736_v10 = vcvt.f32.s32 %v5735_v51 }
 0x5f3   :  { %v5842_v61 = vsel %vm5810_vm6, %v10936_v54, 0  ;;  %v5843_v59 = vsel %vm5811_vm14, %v7467_v15, 0  ;;  %vm9661_vm1 = vmor %vm10937_vm2, %vm5810_vm6 }
 0x5f4   :  { %5987 = vadd.xlane.f32.xlu0 %v5985_v52  ;;  %v5995_v4 = vadd.s32 %v5843_v59, %v5842_v61  ;;  %v5739_v22 = vadd.s32 %v5738_v13, %v5736_v10  ;;  %v10939_v0 = vsel %vm9661_vm1, 4294967295, %v10938_v0  ;;  %vm9669_vm7 = vmor %vm10940_vm0, %vm5811_vm14  ;;  %v10943_v13 = vld [vmem:[#allocation44_spill] sm:$0xff]  ;;  %v10945_v59 = vmov 0 }
 0x5f5   :  { %v10942_v7 = vsel %vm9669_vm7, 4294967295, %v10941_v7  ;;  %v9680_v61 = vsel %vm9669_vm7, -inf, %v10944_v29 }
 0x5f6   :  { %v5997_v16 = vshrl.u32 %v5995_v4, 16  ;;  %vm5812_vm13 = vcmp.eq.s32.totalorder %v7467_v15, %v5739_v22  ;;  %vm5813_vm4 = vcmp.eq.s32.totalorder %v7558_v60, %v5739_v22  ;;  %5976 = vadd.xlane.f32.xlu2 %v5973_v39  ;;  %v10947_v22 = vmov 0 }
 0x5f7   :  { %v5751_v14 = vpop.xlane.xlu2 %5750  ;;  %5989 = vadd.xlane.f32.xlu1 %v5986_v2  ;;  %v5844_v24 = vsel %vm5812_vm13, %v10943_v13, 0  ;;  %v5845_v27 = vsel %vm5813_vm4, %v7467_v15, 0  ;;  %vm9684_vm6 = vmor %vm10811_vm5, %vm5812_vm13  ;;  %v10949_v2 = vld [vmem:[#allocation43_spill] sm:$0xff]  ;;  %vm6861_vm5 = vcmask 31768   ;;  %vm10960_vm13 = vnez %v10828_v28 }
 0x5f8   :  { %v5752_v51 = vcvt.f32.s32 %v5751_v14  ;;  %v5999_v52 = vcvt.s32.f32 %v5997_v16  ;;  %v6008_v18 = vadd.s32 %v5845_v27, %v5844_v24  ;;  %v10946_v59 = vsel %vm9684_vm6, 4294967295, %v10945_v59  ;;  %vm9690_vm14 = vmor %vm10812_vm9, %vm5813_vm4  ;;  %v10953_v16 = vld [vmem:[#allocation46_spill] sm:$0xff]  ;;  %v10957_v27 = vld [vmem:[#allocation25_spill] sm:$0xff] }
 0x5f9   :  { %v10948_v22 = vsel %vm9690_vm14, 4294967295, %v10947_v22  ;;  %vm10950_vm7 = vnez %v10949_v2  ;;  %v10955_v24 = vmov 0 }
 0x5fa   :  { %v5755_v36 = vadd.s32 %v5754_v62, %v5752_v51  ;;  %v6009_v10 = vand.u32 65535, %v6008_v18  ;;  %v9714_v51 = vsel %vm9690_vm14, -inf, %v10957_v27 }
 0x5fc   :  { %vm5814_vm2 = vcmp.eq.s32.totalorder %v7467_v15, %v5755_v36  ;;  %vm5815_vm0 = vcmp.eq.s32.totalorder %v7558_v60, %v5755_v36  ;;  %6002 = vadd.xlane.f32.xlu0 %v5999_v52  ;;  %v6011_v39 = vcvt.s32.f32 %v6009_v10  ;;  %v5996_v52 = vand.u32 65535, %v5995_v4  ;;  %v10958_v36 = vld [vmem:[#allocation26_spill] sm:$0xff] }
 0x5fd   :  { %vm9698_vm1 = vmor %vm10950_vm7, %vm5814_vm2  ;;  %v5846_v62 = vsel %vm5814_vm2, %v10953_v16, 0  ;;  %v5847_v25 = vsel %vm5815_vm0, %v7467_v15, 0  ;;  %v6010_v4 = vshrl.u32 %v6008_v18, 16 }
 0x5fe   :  { %v10952_v46 = vsel %vm9698_vm1, 4294967295, %v10951_v46  ;;  %vm9706_vm9 = vmor %vm10815_vm12, %vm5815_vm0  ;;  %6191 = vmax.xlane.f32.xlu2 %v9680_v61  ;;  %v6021_v10 = vadd.s32 %v5847_v25, %v5846_v62  ;;  %v5998_v2 = vcvt.s32.f32 %v5996_v52  ;;  %vm10959_vm12 = vmmov 1  }
 0x5ff   :  { %v10956_v24 = vsel %vm9706_vm9, 4294967295, %v10955_v24  ;;  %6013 = vadd.xlane.f32.xlu1 %v6011_v39  ;;  %v9719_v29 = vsel %vm9706_vm9, -inf, %v10958_v36  ;;  %vm6237_vm4 = vmxor %vm9352_vm10, %vm10959_vm12  ;;  %vm10541_vm10 = vcmask 31744   ;;  %v6012_v28 = vcvt.s32.f32 %v6010_v4 }
 0x600   :  { %v6022_v14 = vand.u32 65535, %v6021_v10  ;;  %vm6238_vm7 = vmxor %vm10960_vm13, %vm10959_vm12  ;;  %v6023_v62 = vshrl.u32 %v6021_v10, 16 }
 0x602   :  { %v6024_v52 = vcvt.s32.f32 %v6022_v14  ;;  %v6025_v13 = vcvt.s32.f32 %v6023_v62 }
 0x604   :  { %6194 = vmax.xlane.f32.xlu0 %v9714_v51 }
 0x605   :  { %v6159_v39 = vpop.xlane.xlu0 %6158 }
 0x606   :  { %6000 = vadd.xlane.f32.xlu2 %v5998_v2  ;;  %vm7329_vm2 = vcmp.eq.f32.partialorder %v6159_v39, -inf  ;;  %vm6206_vm0 = vcmp.eq.f32.partialorder %v9365_v56, %v6159_v39  ;;  %6862 = vst.msk [vmem:[#allocation3] sm:$0xff] %vm6861_vm5, %v6159_v39 }
 0x607   :  { %6197 = vmax.xlane.f32.xlu1 %v9719_v29  ;;  %vm6269_vm9 = vmand %vm7329_vm2, %vm6237_vm4  ;;  %vm10962_vm4 = vcmask 23568  }
 0x608   :  { %vm6270_vm1 = vmand %vm6206_vm0, %vm6238_vm7  ;;  %v6301_v25 = vsel %vm6269_vm9, %v7467_v15, 256  ;;  %vm10964_vm7 = vnez %v10832_v20 }
 0x609   :  { %v5860_v27 = vpop.xlane.xlu2 %5859  ;;  %v6302_v36 = vsel %vm6270_vm1, %v7558_v60, 256  ;;  %vm10961_vm1 = vnez %v10840_v19  ;;  %vm6241_vm2 = vmxor %vm10964_vm7, %vm10959_vm12 }
 0x60a   :  { %v5858_v42 = vpop.xlane.xlu1 %5857  ;;  %v5862_v2 = vcvt.f32.s32 %v5860_v27  ;;  %vm6333_vm14 = vcmp.lt.s32.totalorder %v6301_v25, %v6302_v36  ;;  %vm6239_vm9 = vmxor %vm10961_vm1, %vm10959_vm12  ;;  %vm10965_vm1 = vnez %v10835_v12 }
 0x60b   :  { %v5861_v16 = vcvt.f32.s32 %v5858_v42  ;;  %v9733_v39 = vsel %vm6333_vm14, %v6301_v25, %v6302_v36  ;;  %vm10963_vm14 = vnez %v10844_v1 }
 0x60c   :  { %6026 = vadd.xlane.f32.xlu0 %v6024_v52  ;;  %v5863_v56 = vshll.u32 %v5862_v2, 16  ;;  %vm6240_vm13 = vmxor %vm10963_vm14, %vm10959_vm12 }
 0x60d   :  { %v6894_v18 = vld [vmem:[#allocation3] sm:$0xff] }
 0x60e   :  { %v5864_v10 = vadd.s32 %v5863_v56, %v5861_v16  ;;  %6015 = vadd.xlane.f32.xlu2 %v6012_v28  ;;  %6911 = vst.msk [vmem:[%s10347_s4] sm:$0xff] %vm10541_vm10, %v6894_v18  ;;  %v6336_v16 = vshra.s32 %v9733_v39, 16 }
 0x60f   :  { %v5871_v54 = vpop.xlane.xlu0 %5870  ;;  %6028 = vadd.xlane.f32.xlu1 %v6025_v13 }
 0x610   :  { %6077 = vst.msk [vmem:[#allocation4] sm:$0xff] %vm10962_vm4, %v5864_v10  ;;  %vm6242_vm4 = vmxor %vm10965_vm1, %vm10959_vm12  ;;  %v9758_v19 = vcvt.s32.f32 %v6336_v16 }
 0x611   :  { %v6165_v13 = vpop.xlane.xlu2 %6164 }
 0x612   :  { %v6162_v14 = vpop.xlane.xlu1 %6161  ;;  %vm7331_vm6 = vcmp.eq.f32.partialorder %v6165_v13, -inf  ;;  %vm6210_vm14 = vcmp.eq.f32.partialorder %v9404_v26, %v6165_v13  ;;  %6864 = vst.msk [vmem:[#allocation3 + $0x10] sm:$0xff] %vm6861_vm5, %v6165_v13 }
 0x613   :  { %vm7330_vm0 = vcmp.eq.f32.partialorder %v6162_v14, -inf  ;;  %vm6208_vm10 = vcmp.eq.f32.partialorder %v9409_v48, %v6162_v14  ;;  %6863 = vst.msk [vmem:[#allocation3 + $0x8] sm:$0xff] %vm6861_vm5, %v6162_v14  ;;  %vm6273_vm7 = vmand %vm7331_vm6, %vm6241_vm2  ;;  %v5874_v14 = vcvt.f32.s32 %v5871_v54 }
 0x614   :  { %vm6271_vm3 = vmand %vm7330_vm0, %vm6239_vm9  ;;  %v6305_v48 = vsel %vm6273_vm7, %v7467_v15, 256  ;;  %vm10970_vm9 = vnez %v10853_v31 }
 0x615   :  { %vm6272_vm8 = vmand %vm6208_vm10, %vm6240_vm13  ;;  %v6303_v20 = vsel %vm6271_vm3, %v7467_v15, 256  ;;  %vm10969_vm3 = vnez %v10850_v8 }
 0x616   :  { %v6304_v1 = vsel %vm6272_vm8, %v7558_v60, 256  ;;  %vm6274_vm15 = vmand %vm6210_vm14, %vm6242_vm4  ;;  %vm10966_vm8 = vcmask 31744  }
 0x617   :  { %vm6349_vm11 = vcmp.lt.s32.totalorder %v6303_v20, %v6304_v1  ;;  %v5886_v12 = vpop.xlane.xlu0 %5885  ;;  %6339 = vmin.xlane.f32.xlu1 %v9758_v19  ;;  %v6306_v4 = vsel %vm6274_vm15, %v7558_v60, 256  ;;  %vm10968_vm15 = vcmask 23568   ;;  %vm6243_vm6 = vmxor %vm10969_vm3, %vm10959_vm12  ;;  %vm10975_vm3 = vnez %v10871_v53 }
 0x618   :  { %v5888_v26 = vcvt.f32.s32 %v5886_v12  ;;  %v9764_v62 = vsel %vm6349_vm11, %v6303_v20, %v6304_v1  ;;  %vm6365_vm10 = vcmp.lt.s32.totalorder %v6305_v48, %v6306_v4  ;;  %vm10967_vm11 = vmmov %vm10966_vm8 }
 0x619   :  { %v6352_v25 = vshra.s32 %v9764_v62, 16  ;;  %v5884_v36 = vpop.xlane.xlu2 %5883  ;;  %v9767_v2 = vsel %vm6365_vm10, %v6305_v48, %v6306_v4  ;;  %v6896_v28 = vld [vmem:[#allocation3 + $0x10] sm:$0xff]  ;;  %vm6244_vm13 = vmxor %vm10970_vm9, %vm10959_vm12  ;;  %vm10976_vm9 = vnez %v10857_v33 }
 0x61a   :  { %v6895_v42 = vld [vmem:[#allocation3 + $0x8] sm:$0xff]  ;;  %v5889_v27 = vshll.u32 %v5888_v26, 16  ;;  %v5873_v52 = vpop.xlane.xlu1 %5872  ;;  %v5887_v18 = vcvt.f32.s32 %v5884_v36  ;;  %v6368_v16 = vshra.s32 %v9767_v2, 16  ;;  %6913 = vst.msk [vmem:[%s10347_s4 + $0x10] sm:$0xff] %vm10967_vm11, %v6896_v28  ;;  %vm10971_vm1 = vmmov %vm10968_vm15 }
 0x61b   :  { %6912 = vst.msk [vmem:[%s10347_s4 + $0x8] sm:$0xff] %vm10966_vm8, %v6895_v42  ;;  %v5875_v56 = vcvt.f32.s32 %v5873_v52  ;;  %v9773_v10 = vcvt.s32.f32 %v6352_v25  ;;  %vm10972_vm10 = vmmov %vm10966_vm8  ;;  %vm10973_vm8 = vnez %v10867_v58 }
 0x61c   :  { %v5890_v20 = vadd.s32 %v5889_v27, %v5887_v18  ;;  %v9781_v1 = vcvt.s32.f32 %v6368_v16  ;;  %vm6245_vm11 = vmxor %vm10973_vm8, %vm10959_vm12 }
 0x61d   :  { %v5876_v13 = vshll.u32 %v5875_v56, 16  ;;  %6355 = vmin.xlane.f32.xlu0 %v9773_v10 }
 0x61e   :  { %6079 = vst.msk [vmem:[#allocation4 + $0x10] sm:$0xff] %vm10968_vm15, %v5890_v20  ;;  %6371 = vmin.xlane.f32.xlu2 %v9781_v1  ;;  %vm10974_vm15 = vmmov %vm10971_vm1 }
 0x61f   :  { %v5877_v48 = vadd.s32 %v5876_v13, %v5874_v14  ;;  %v6168_v12 = vpop.xlane.xlu0 %6167 }
 0x620   :  { %vm7332_vm2 = vcmp.eq.f32.partialorder %v6168_v12, -inf  ;;  %vm6212_vm0 = vcmp.eq.f32.partialorder %v9434_v23, %v6168_v12  ;;  %6865 = vst.msk [vmem:[#allocation3 + $0x18] sm:$0xff] %vm6861_vm5, %v6168_v12 }
 0x621   :  { %6078 = vst.msk [vmem:[#allocation4 + $0x8] sm:$0xff] %vm10971_vm1, %v5877_v48  ;;  %vm6275_vm4 = vmand %vm7332_vm2, %vm6243_vm6  ;;  %v5899_v26 = vpop.xlane.xlu2 %5898  ;;  %vm10977_vm1 = vnez %v10861_v45 }
 0x622   :  { %vm6276_vm14 = vmand %vm6212_vm0, %vm6244_vm13  ;;  %v6307_v54 = vsel %vm6275_vm4, %v7467_v15, 256  ;;  %v5897_v4 = vpop.xlane.xlu1 %5896  ;;  %v5901_v25 = vcvt.f32.s32 %v5899_v26 }
 0x623   :  { %v6308_v8 = vsel %vm6276_vm14, %v7558_v60, 256  ;;  %v5900_v42 = vcvt.f32.s32 %v5897_v4  ;;  %vm6246_vm6 = vmxor %vm10975_vm3, %vm10959_vm12 }
 0x624   :  { %vm6381_vm7 = vcmp.lt.s32.totalorder %v6307_v54, %v6308_v8  ;;  %v5902_v31 = vshll.u32 %v5901_v25, 16  ;;  %vm6247_vm13 = vmxor %vm10976_vm9, %vm10959_vm12 }
 0x625   :  { %v9796_v27 = vsel %vm6381_vm7, %v6307_v54, %v6308_v8  ;;  %vm6248_vm4 = vmxor %vm10977_vm1, %vm10959_vm12  ;;  %vm10982_vm1 = vnez %v10876_v41 }
 0x626   :  { %v6384_v23 = vshra.s32 %v9796_v27, 16  ;;  %v5903_v36 = vadd.s32 %v5902_v31, %v5900_v42 }
 0x627   :  { %v6897_v52 = vld [vmem:[#allocation3 + $0x18] sm:$0xff]  ;;  %v5910_v28 = vpop.xlane.xlu0 %5909 }
 0x628   :  { %6914 = vst.msk [vmem:[%s10347_s4 + $0x18] sm:$0xff] %vm10972_vm10, %v6897_v52  ;;  %v9803_v56 = vcvt.s32.f32 %v6384_v23  ;;  %v5913_v23 = vcvt.f32.s32 %v5910_v28 }
 0x629   :  { %6080 = vst.msk [vmem:[#allocation4 + $0x18] sm:$0xff] %vm10974_vm15, %v5903_v36  ;;  %v6174_v16 = vpop.xlane.xlu2 %6173 }
 0x62a   :  { %6387 = vmin.xlane.f32.xlu1 %v9803_v56  ;;  %v6171_v18 = vpop.xlane.xlu1 %6170  ;;  %vm7334_vm14 = vcmp.eq.f32.partialorder %v6174_v16, -inf  ;;  %vm6216_vm10 = vcmp.eq.f32.partialorder %v9473_v3, %v6174_v16  ;;  %6867 = vst.msk [vmem:[#allocation3 + $0x28] sm:$0xff] %vm6861_vm5, %v6174_v16 }
 0x62b   :  { %vm7333_vm2 = vcmp.eq.f32.partialorder %v6171_v18, -inf  ;;  %vm6214_vm0 = vcmp.eq.f32.partialorder %v9478_v30, %v6171_v18  ;;  %6866 = vst.msk [vmem:[#allocation3 + $0x20] sm:$0xff] %vm6861_vm5, %v6171_v18  ;;  %vm6279_vm15 = vmand %vm7334_vm14, %vm6247_vm13  ;;  %vm10983_vm14 = vnez %v10878_v11 }
 0x62c   :  { %vm6277_vm7 = vmand %vm7333_vm2, %vm6245_vm11  ;;  %v6311_v53 = vsel %vm6279_vm15, %v7467_v15, 256  ;;  %vm10980_vm2 = vcmask 23568  }
 0x62d   :  { %vm6278_vm8 = vmand %vm6214_vm0, %vm6246_vm6  ;;  %v6309_v33 = vsel %vm6277_vm7, %v7467_v15, 256  ;;  %vm10978_vm6 = vcmask 31744  }
 0x62e   :  { %v6310_v58 = vsel %vm6278_vm8, %v7558_v60, 256  ;;  %vm6280_vm9 = vmand %vm6216_vm10, %vm6248_vm4 }
 0x62f   :  { %vm6397_vm3 = vcmp.lt.s32.totalorder %v6309_v33, %v6310_v58  ;;  %v5925_v30 = vpop.xlane.xlu0 %5924  ;;  %v6312_v45 = vsel %vm6280_vm9, %v7558_v60, 256  ;;  %vm10979_vm13 = vmmov %vm10978_vm6 }
 0x630   :  { %v5927_v14 = vcvt.f32.s32 %v5925_v30  ;;  %v9827_v13 = vsel %vm6397_vm3, %v6309_v33, %v6310_v58  ;;  %vm6413_vm11 = vcmp.lt.s32.totalorder %v6311_v53, %v6312_v45  ;;  %vm10981_vm0 = vmmov %vm10980_vm2 }
 0x631   :  { %v6400_v3 = vshra.s32 %v9827_v13, 16  ;;  %v5923_v54 = vpop.xlane.xlu2 %5922  ;;  %v9830_v4 = vsel %vm6413_vm11, %v6311_v53, %v6312_v45  ;;  %v6899_v26 = vld [vmem:[#allocation3 + $0x28] sm:$0xff]  ;;  %vm6265_vm4 = vmxor %vm10982_vm1, %vm10959_vm12  ;;  %vm10984_vm11 = vnez %v10883_v63 }
 0x632   :  { %v6898_v20 = vld [vmem:[#allocation3 + $0x20] sm:$0xff]  ;;  %v5928_v48 = vshll.u32 %v5927_v14, 16  ;;  %v5912_v12 = vpop.xlane.xlu1 %5911  ;;  %v5926_v25 = vcvt.f32.s32 %v5923_v54  ;;  %v6416_v31 = vshra.s32 %v9830_v4, 16  ;;  %6916 = vst.msk [vmem:[%s10347_s4 + $0x28] sm:$0xff] %vm10979_vm13, %v6899_v26  ;;  %vm6266_vm7 = vmxor %vm10983_vm14, %vm10959_vm12  ;;  %vm10985_vm13 = vnez %v10887_v47 }
 0x633   :  { %6915 = vst.msk [vmem:[%s10347_s4 + $0x20] sm:$0xff] %vm10978_vm6, %v6898_v20  ;;  %v5914_v8 = vcvt.f32.s32 %v5912_v12  ;;  %v9836_v42 = vcvt.s32.f32 %v6400_v3  ;;  %vm6267_vm6 = vmxor %vm10984_vm11, %vm10959_vm12 }
 0x634   :  { %v5929_v36 = vadd.s32 %v5928_v48, %v5926_v25  ;;  %v9844_v18 = vcvt.s32.f32 %v6416_v31 }
 0x635   :  { %v5915_v52 = vshll.u32 %v5914_v8, 16  ;;  %6403 = vmin.xlane.f32.xlu0 %v9836_v42 }
 0x636   :  { %6082 = vst.msk [vmem:[#allocation4 + $0x28] sm:$0xff] %vm10980_vm2, %v5929_v36  ;;  %6419 = vmin.xlane.f32.xlu2 %v9844_v18  ;;  %vm6268_vm2 = vmxor %vm10985_vm13, %vm10959_vm12 }
 0x637   :  { %v5916_v16 = vadd.s32 %v5915_v52, %v5913_v23  ;;  %v6042_v33 = vpop.xlane.xlu0 %6041 }
 0x638   :  { %v6044_v41 = vcvt.f32.s32 %v6042_v33 }
 0x639   :  { %6081 = vst.msk [vmem:[#allocation4 + $0x20] sm:$0xff] %vm10981_vm0, %v5916_v16  ;;  %v6201_v58 = vpop.xlane.xlu2 %6200 }
 0x63a   :  { %v9852_v28 = vpop.xlane.xlu1 %6052  ;;  %vm7335_vm10 = vcmp.eq.f32.partialorder %v6201_v58, -inf  ;;  %vm6234_vm8 = vcmp.eq.f32.partialorder %v9512_v35, %v6201_v58  ;;  %6876 = vst.msk [vmem:[#allocation3 + $0x70] sm:$0xff] %vm6861_vm5, %v6201_v58  ;;  %v6045_v48 = vshll.u32 %v6044_v41, 16 }
 0x63b   :  { %vm6297_vm15 = vmand %vm7335_vm10, %vm6265_vm4 }
 0x63c   :  { %vm6298_vm3 = vmand %vm6234_vm8, %vm6266_vm7  ;;  %v6329_v53 = vsel %vm6297_vm15, %v7467_v15, 256  ;;  %vm10986_vm7 = vcmask 31744   ;;  %vm10987_vm8 = vnez %v10893_v50 }
 0x63d   :  { %v6330_v30 = vsel %vm6298_vm3, %v7558_v60, 256  ;;  %vm6249_vm15 = vmxor %vm10987_vm8, %vm10959_vm12  ;;  %vm10988_vm3 = vcmask 23568  }
 0x63e   :  { %vm6557_vm9 = vcmp.lt.s32.totalorder %v6329_v53, %v6330_v30 }
 0x63f   :  { %v6204_v45 = vpop.xlane.xlu0 %6203  ;;  %v9869_v11 = vsel %vm6557_vm9, %v6329_v53, %v6330_v30  ;;  %vm10989_vm9 = vnez %v10897_v34 }
 0x640   :  { %vm7336_vm0 = vcmp.eq.f32.partialorder %v6204_v45, -inf  ;;  %vm6236_vm1 = vcmp.eq.f32.partialorder %v9532_v40, %v6204_v45  ;;  %6877 = vst.msk [vmem:[#allocation3 + $0x78] sm:$0xff] %vm6861_vm5, %v6204_v45  ;;  %v6560_v35 = vshra.s32 %v9869_v11, 16  ;;  %vm6250_vm11 = vmxor %vm10989_vm9, %vm10959_vm12 }
 0x641   :  { %vm6299_vm4 = vmand %vm7336_vm0, %vm6267_vm6  ;;  %v6908_v14 = vld [vmem:[#allocation3 + $0x70] sm:$0xff]  ;;  %v6040_v3 = vpop.xlane.xlu2 %6039  ;;  %vm10991_vm0 = vnez %v10901_v37  ;;  %v6056_v37 = vcvt.f32.s32 %v9852_v28 }
 0x642   :  { %vm6300_vm14 = vmand %vm6236_vm1, %vm6268_vm2  ;;  %v6331_v63 = vsel %vm6299_vm4, %v7467_v15, 256  ;;  %v9873_v20 = vpop.xlane.xlu1 %5935  ;;  %6925 = vst.msk [vmem:[%s10347_s4 + $0x70] sm:$0xff] %vm10986_vm7, %v6908_v14  ;;  %v6043_v40 = vcvt.f32.s32 %v6040_v3  ;;  %v9880_v12 = vcvt.s32.f32 %v6560_v35 }
 0x643   :  { %v6332_v47 = vsel %vm6300_vm14, %v7558_v60, 256  ;;  %vm10990_vm6 = vmmov %vm10986_vm7  ;;  %vm10994_vm7 = vnez %v10906_v38 }
 0x644   :  { %vm6573_vm10 = vcmp.lt.s32.totalorder %v6331_v63, %v6332_v47  ;;  %v6046_v54 = vadd.s32 %v6045_v48, %v6043_v40  ;;  %6563 = vmin.xlane.f32.xlu1 %v9880_v12  ;;  %vm9903_vm1 = vmxor %vm10991_vm0, %vm10959_vm12 }
 0x645   :  { %v9883_v26 = vsel %vm6573_vm10, %v6331_v63, %v6332_v47  ;;  %vm6252_vm10 = vmxor %vm10994_vm7, %vm10959_vm12 }
 0x646   :  { %v6576_v8 = vshra.s32 %v9883_v26, 16  ;;  %6091 = vst.msk [vmem:[#allocation4 + $0x70] sm:$0xff] %vm10988_vm3, %v6046_v54 }
 0x647   :  { %v6909_v25 = vld [vmem:[#allocation3 + $0x78] sm:$0xff]  ;;  %v6177_v31 = vpop.xlane.xlu0 %6176 }
 0x648   :  { %6926 = vst.msk [vmem:[%s10347_s4 + $0x78] sm:$0xff] %vm10990_vm6, %v6909_v25  ;;  %vm7337_vm13 = vcmp.eq.f32.partialorder %v6177_v31, -inf  ;;  %vm6218_vm2 = vcmp.eq.f32.partialorder %v9568_v9, %v6177_v31  ;;  %v9898_v50 = vcvt.s32.f32 %v6576_v8  ;;  %v5939_v8 = vcvt.f32.s32 %v9873_v20 }
 0x649   :  { %vm6281_vm4 = vmand %vm7337_vm13, %vm6249_vm15  ;;  %6868 = vst.msk [vmem:[#allocation3 + $0x30] sm:$0xff] %vm6861_vm5, %v6177_v31  ;;  %v6055_v52 = vpop.xlane.xlu2 %6054  ;;  %vm10995_vm13 = vcmask 31744  }
 0x64a   :  { %vm6282_vm14 = vmand %vm6218_vm2, %vm6250_vm11  ;;  %v6313_v34 = vsel %vm6281_vm4, %v7467_v15, 256  ;;  %6579 = vmin.xlane.f32.xlu2 %v9898_v50  ;;  %v6180_v36 = vpop.xlane.xlu1 %6179  ;;  %v6057_v16 = vcvt.f32.s32 %v6055_v52  ;;  %vm10996_vm2 = vcmask 23568  }
 0x64b   :  { %v6314_v9 = vsel %vm6282_vm14, %v7558_v60, 256  ;;  %vm7338_vm8 = vcmp.eq.f32.partialorder %v6180_v36, -inf  ;;  %vm6220_vm3 = vcmp.eq.f32.partialorder %v9574_v5, %v6180_v36  ;;  %6869 = vst.msk [vmem:[#allocation3 + $0x38] sm:$0xff] %vm6861_vm5, %v6180_v36  ;;  %vm10997_vm0 = vmmov %vm10995_vm13  ;;  %vm11000_vm14 = vnez %v10912_v49 }
 0x64c   :  { %vm6429_vm15 = vcmp.lt.s32.totalorder %v6313_v34, %v6314_v9  ;;  %vm6283_vm9 = vmand %vm7338_vm8, %vm9903_vm1  ;;  %v6058_v33 = vshll.u32 %v6057_v16, 16 }
 0x64d   :  { %vm6284_vm11 = vmand %vm6220_vm3, %vm6252_vm10  ;;  %v6315_v58 = vsel %vm6283_vm9, %v7467_v15, 256  ;;  %v9920_v53 = vsel %vm6429_vm15, %v6313_v34, %v6314_v9  ;;  %vm11001_vm10 = vnez %v10915_v55 }
 0x64e   :  { %v6316_v38 = vsel %vm6284_vm11, %v7558_v60, 256  ;;  %v6432_v30 = vshra.s32 %v9920_v53, 16  ;;  %v6059_v41 = vadd.s32 %v6058_v33, %v6056_v37  ;;  %vm10998_vm1 = vmmov %vm10996_vm2 }
 0x64f   :  { %vm6445_vm6 = vcmp.lt.s32.totalorder %v6315_v58, %v6316_v38  ;;  %v5949_v5 = vpop.xlane.xlu0 %5948  ;;  %vm10999_vm4 = vmmov %vm10998_vm1 }
 0x650   :  { %v6900_v45 = vld [vmem:[#allocation3 + $0x30] sm:$0xff]  ;;  %v9924_v35 = vcvt.s32.f32 %v6432_v30  ;;  %v9926_v14 = vsel %vm6445_vm6, %v6315_v58, %v6316_v38  ;;  %6092 = vst.msk [vmem:[#allocation4 + $0x78] sm:$0xff] %vm10996_vm2, %v6059_v41  ;;  %v5952_v25 = vcvt.f32.s32 %v5949_v5  ;;  %vm6253_vm7 = vmxor %vm11000_vm14, %vm10959_vm12  ;;  %vm11002_vm6 = vnez %v10920_v6 }
 0x651   :  { %6917 = vst.msk [vmem:[%s10347_s4 + $0x30] sm:$0xff] %vm10995_vm13, %v6900_v45  ;;  %v6448_v28 = vshra.s32 %v9926_v14, 16  ;;  %v5938_v3 = vpop.xlane.xlu2 %5937  ;;  %vm6254_vm8 = vmxor %vm11001_vm10, %vm10959_vm12 }
 0x652   :  { %v6901_v63 = vld [vmem:[#allocation3 + $0x38] sm:$0xff]  ;;  %6435 = vmin.xlane.f32.xlu1 %v9924_v35  ;;  %v5951_v48 = vpop.xlane.xlu1 %5950  ;;  %v5940_v47 = vcvt.f32.s32 %v5938_v3  ;;  %vm6255_vm13 = vmxor %vm11002_vm6, %vm10959_vm12 }
 0x653   :  { %6918 = vst.msk [vmem:[%s10347_s4 + $0x38] sm:$0xff] %vm10997_vm0, %v6901_v63  ;;  %v5953_v40 = vcvt.f32.s32 %v5951_v48  ;;  %v9939_v54 = vcvt.s32.f32 %v6448_v28  ;;  %vm11003_vm0 = vnez %v10924_v44 }
 0x654   :  { %v5941_v31 = vshll.u32 %v5940_v47, 16 }
 0x655   :  { %v5954_v23 = vshll.u32 %v5953_v40, 16  ;;  %6451 = vmin.xlane.f32.xlu0 %v9939_v54 }
 0x656   :  { %v5942_v34 = vadd.s32 %v5941_v31, %v5939_v8 }
 0x657   :  { %v5955_v52 = vadd.s32 %v5954_v23, %v5952_v25  ;;  %v5964_v36 = vpop.xlane.xlu0 %5963 }
 0x658   :  { %6083 = vst.msk [vmem:[#allocation4 + $0x30] sm:$0xff] %vm10998_vm1, %v5942_v34  ;;  %v5966_v37 = vcvt.f32.s32 %v5964_v36  ;;  %vm6256_vm1 = vmxor %vm11003_vm0, %vm10959_vm12 }
 0x659   :  { %6084 = vst.msk [vmem:[#allocation4 + $0x38] sm:$0xff] %vm10999_vm4, %v5955_v52  ;;  %v6183_v9 = vpop.xlane.xlu2 %6182 }
 0x65a   :  { %v9948_v16 = vpop.xlane.xlu1 %5974  ;;  %vm7339_vm3 = vcmp.eq.f32.partialorder %v6183_v9, -inf  ;;  %vm6222_vm15 = vcmp.eq.f32.partialorder %v9607_v17, %v6183_v9  ;;  %6870 = vst.msk [vmem:[#allocation3 + $0x40] sm:$0xff] %vm6861_vm5, %v6183_v9  ;;  %v5967_v44 = vshll.u32 %v5966_v37, 16 }
 0x65b   :  { %vm6285_vm9 = vmand %vm7339_vm3, %vm6253_vm7  ;;  %vm11004_vm7 = vnez %v10928_v32  ;;  %v5978_v9 = vcvt.f32.s32 %v9948_v16 }
 0x65c   :  { %vm6286_vm11 = vmand %vm6222_vm15, %vm6254_vm8  ;;  %v6317_v20 = vsel %vm6285_vm9, %v7467_v15, 256  ;;  %vm11007_vm15 = vcmask 31744   ;;  %vm11008_vm9 = vnez %v10933_v57 }
 0x65d   :  { %v6318_v49 = vsel %vm6286_vm11, %v7558_v60, 256  ;;  %vm9968_vm10 = vmxor %vm11004_vm7, %vm10959_vm12 }
 0x65e   :  { %vm6461_vm2 = vcmp.lt.s32.totalorder %v6317_v20, %v6318_v49  ;;  %vm6258_vm11 = vmxor %vm11008_vm9, %vm10959_vm12 }
 0x65f   :  { %v6186_v55 = vpop.xlane.xlu0 %6185  ;;  %v9972_v6 = vsel %vm6461_vm2, %v6317_v20, %v6318_v49  ;;  %vm11010_vm7 = vmmov %vm11007_vm15 }
 0x660   :  { %vm7340_vm4 = vcmp.eq.f32.partialorder %v6186_v55, -inf  ;;  %vm6224_vm14 = vcmp.eq.f32.partialorder %v9641_v43, %v6186_v55  ;;  %6871 = vst.msk [vmem:[#allocation3 + $0x48] sm:$0xff] %vm6861_vm5, %v6186_v55  ;;  %v6464_v33 = vshra.s32 %v9972_v6, 16 }
 0x661   :  { %vm6287_vm8 = vmand %vm7340_vm4, %vm6255_vm13  ;;  %v6902_v58 = vld [vmem:[#allocation3 + $0x40] sm:$0xff]  ;;  %v5962_v43 = vpop.xlane.xlu2 %5961  ;;  %vm11009_vm4 = vcmask 23568  }
 0x662   :  { %vm6288_vm3 = vmand %vm6224_vm14, %vm6256_vm1  ;;  %v6319_v38 = vsel %vm6287_vm8, %v7467_v15, 256  ;;  %v6189_v30 = vpop.xlane.xlu1 %6188  ;;  %6919 = vst.msk [vmem:[%s10347_s4 + $0x40] sm:$0xff] %vm11007_vm15, %v6902_v58  ;;  %v5965_v41 = vcvt.f32.s32 %v5962_v43  ;;  %v9988_v5 = vcvt.s32.f32 %v6464_v33  ;;  %vm11014_vm15 = vnez %v10939_v0 }
 0x663   :  { %v6320_v32 = vsel %vm6288_vm3, %v7558_v60, 256  ;;  %vm7341_vm6 = vcmp.eq.f32.partialorder %v6189_v30, -inf  ;;  %vm6226_vm13 = vcmp.eq.f32.partialorder %v9647_v21, %v6189_v30  ;;  %6872 = vst.msk [vmem:[#allocation3 + $0x50] sm:$0xff] %vm6861_vm5, %v6189_v30  ;;  %vm11012_vm8 = vmmov %vm11009_vm4 }
 0x664   :  { %vm6477_vm2 = vcmp.lt.s32.totalorder %v6319_v38, %v6320_v32  ;;  %vm6289_vm0 = vmand %vm7341_vm6, %vm9968_vm10  ;;  %v5968_v45 = vadd.s32 %v5967_v44, %v5965_v41  ;;  %6467 = vmin.xlane.f32.xlu1 %v9988_v5 }
 0x665   :  { %vm6290_vm1 = vmand %vm6226_vm13, %vm6258_vm11  ;;  %v6321_v28 = vsel %vm6289_vm0, %v7467_v15, 256  ;;  %v9991_v63 = vsel %vm6477_vm2, %v6319_v38, %v6320_v32  ;;  %vm11015_vm11 = vnez %v10942_v7 }
 0x666   :  { %v6322_v57 = vsel %vm6290_vm1, %v7558_v60, 256  ;;  %v6480_v21 = vshra.s32 %v9991_v63, 16  ;;  %6085 = vst.msk [vmem:[#allocation4 + $0x40] sm:$0xff] %vm11009_vm4, %v5968_v45  ;;  %vm11011_vm10 = vmmov %vm11010_vm7 }
 0x667   :  { %v6903_v3 = vld [vmem:[#allocation3 + $0x48] sm:$0xff]  ;;  %vm6493_vm14 = vcmp.lt.s32.totalorder %v6321_v28, %v6322_v57  ;;  %v5988_v48 = vpop.xlane.xlu0 %5987  ;;  %vm11013_vm3 = vmmov %vm11009_vm4  ;;  %vm11016_vm4 = vnez %v10946_v59 }
 0x668   :  { %6920 = vst.msk [vmem:[%s10347_s4 + $0x48] sm:$0xff] %vm11010_vm7, %v6903_v3  ;;  %v10001_v47 = vcvt.s32.f32 %v6480_v21  ;;  %v10003_v40 = vsel %vm6493_vm14, %v6321_v28, %v6322_v57  ;;  %v5991_v20 = vcvt.f32.s32 %v5988_v48  ;;  %vm6259_vm9 = vmxor %vm11014_vm15, %vm10959_vm12 }
 0x669   :  { %v6496_v8 = vshra.s32 %v10003_v40, 16  ;;  %v5977_v25 = vpop.xlane.xlu2 %5976  ;;  %vm6260_vm6 = vmxor %vm11015_vm11, %vm10959_vm12 }
 0x66a   :  { %6483 = vmin.xlane.f32.xlu2 %v10001_v47  ;;  %v5990_v31 = vpop.xlane.xlu1 %5989  ;;  %v6904_v23 = vld [vmem:[#allocation3 + $0x50] sm:$0xff]  ;;  %v5979_v34 = vcvt.f32.s32 %v5977_v25  ;;  %vm6261_vm14 = vmxor %vm11016_vm4, %vm10959_vm12 }
 0x66b   :  { %v5992_v52 = vcvt.f32.s32 %v5990_v31  ;;  %v10007_v36 = vcvt.s32.f32 %v6496_v8  ;;  %6921 = vst.msk [vmem:[%s10347_s4 + $0x50] sm:$0xff] %vm11011_vm10, %v6904_v23  ;;  %vm11017_vm10 = vnez %v10948_v22 }
 0x66c   :  { %v5980_v37 = vshll.u32 %v5979_v34, 16 }
 0x66d   :  { %v5993_v49 = vshll.u32 %v5992_v52, 16  ;;  %6499 = vmin.xlane.f32.xlu0 %v10007_v36 }
 0x66e   :  { %v5981_v55 = vadd.s32 %v5980_v37, %v5978_v9 }
 0x66f   :  { %v5994_v17 = vadd.s32 %v5993_v49, %v5991_v20  ;;  %v6003_v33 = vpop.xlane.xlu0 %6002 }
 0x670   :  { %6086 = vst.msk [vmem:[#allocation4 + $0x48] sm:$0xff] %vm11012_vm8, %v5981_v55  ;;  %v6005_v38 = vcvt.f32.s32 %v6003_v33  ;;  %vm6262_vm8 = vmxor %vm11017_vm10, %vm10959_vm12 }
 0x671   :  { %6087 = vst.msk [vmem:[#allocation4 + $0x50] sm:$0xff] %vm11013_vm3, %v5994_v17  ;;  %v6192_v44 = vpop.xlane.xlu2 %6191 }
 0x672   :  { %v10020_v58 = vpop.xlane.xlu1 %6013  ;;  %vm7342_vm13 = vcmp.eq.f32.partialorder %v6192_v44, -inf  ;;  %vm6228_vm2 = vcmp.eq.f32.partialorder %v9680_v61, %v6192_v44  ;;  %6873 = vst.msk [vmem:[#allocation3 + $0x58] sm:$0xff] %vm6861_vm5, %v6192_v44  ;;  %v6006_v22 = vshll.u32 %v6005_v38, 16 }
 0x673   :  { %vm6291_vm0 = vmand %vm7342_vm13, %vm6259_vm9  ;;  %vm11018_vm9 = vnez %v10952_v46  ;;  %v6017_v55 = vcvt.f32.s32 %v10020_v58 }
 0x674   :  { %vm6292_vm1 = vmand %vm6228_vm2, %vm6260_vm6  ;;  %v6323_v16 = vsel %vm6291_vm0, %v7467_v15, 256  ;;  %vm11021_vm2 = vcmask 31744   ;;  %vm11022_vm0 = vnez %v10956_v24 }
 0x675   :  { %v6324_v0 = vsel %vm6292_vm1, %v7558_v60, 256  ;;  %vm10040_vm11 = vmxor %vm11018_vm9, %vm10959_vm12 }
 0x676   :  { %vm6509_vm7 = vcmp.lt.s32.totalorder %v6323_v16, %v6324_v0  ;;  %vm6264_vm1 = vmxor %vm11022_vm0, %vm10959_vm12  ;;  %vm11023_vm12 = vcmask 23568  }
 0x677   :  { %v6195_v7 = vpop.xlane.xlu0 %6194  ;;  %v10044_v59 = vsel %vm6509_vm7, %v6323_v16, %v6324_v0  ;;  %vm11025_vm9 = vmmov %vm11021_vm2  ;;  %v6335_v16 = vand.u32 65535, %v9733_v39 }
 0x678   :  { %vm7343_vm3 = vcmp.eq.f32.partialorder %v6195_v7, -inf  ;;  %vm6230_vm15 = vcmp.eq.f32.partialorder %v9714_v51, %v6195_v7  ;;  %6874 = vst.msk [vmem:[#allocation3 + $0x60] sm:$0xff] %vm6861_vm5, %v6195_v7  ;;  %v6512_v43 = vshra.s32 %v10044_v59, 16 }
 0x679   :  { %vm6293_vm6 = vmand %vm7343_vm3, %vm6261_vm14  ;;  %v6905_v30 = vld [vmem:[#allocation3 + $0x58] sm:$0xff]  ;;  %v6001_v51 = vpop.xlane.xlu2 %6000  ;;  %v6337_v61 = vcvt.s32.f32 %v6335_v16 }
 0x67a   :  { %vm6294_vm13 = vmand %vm6230_vm15, %vm6262_vm8  ;;  %v6325_v32 = vsel %vm6293_vm6, %v7467_v15, 256  ;;  %v6198_v41 = vpop.xlane.xlu1 %6197  ;;  %6922 = vst.msk [vmem:[%s10347_s4 + $0x58] sm:$0xff] %vm11021_vm2, %v6905_v30  ;;  %v6004_v45 = vcvt.f32.s32 %v6001_v51  ;;  %v10060_v28 = vcvt.s32.f32 %v6512_v43  ;;  %v6351_v43 = vand.u32 65535, %v9764_v62 }
 0x67b   :  { %v6326_v46 = vsel %vm6294_vm13, %v7558_v60, 256  ;;  %vm7344_vm4 = vcmp.eq.f32.partialorder %v6198_v41, -inf  ;;  %vm6232_vm14 = vcmp.eq.f32.partialorder %v9719_v29, %v6198_v41  ;;  %6875 = vst.msk [vmem:[#allocation3 + $0x68] sm:$0xff] %vm6861_vm5, %v6198_v41  ;;  %vm11024_vm15 = vmmov %vm11021_vm2  ;;  %v6383_v62 = vand.u32 65535, %v9796_v27 }
 0x67c   :  { %vm6525_vm7 = vcmp.lt.s32.totalorder %v6325_v32, %v6326_v46  ;;  %vm6295_vm10 = vmand %vm7344_vm4, %vm10040_vm11  ;;  %v6007_v57 = vadd.s32 %v6006_v22, %v6004_v45  ;;  %6515 = vmin.xlane.f32.xlu1 %v10060_v28  ;;  %v6367_v22 = vand.u32 65535, %v9767_v2  ;;  %v6353_v39 = vcvt.s32.f32 %v6351_v43 }
 0x67d   :  { %vm6296_vm8 = vmand %vm6232_vm14, %vm6264_vm1  ;;  %v6327_v21 = vsel %vm6295_vm10, %v7467_v15, 256  ;;  %v10063_v3 = vsel %vm6525_vm7, %v6325_v32, %v6326_v46  ;;  %v6385_v2 = vcvt.s32.f32 %v6383_v62 }
 0x67e   :  { %v6328_v24 = vsel %vm6296_vm8, %v7558_v60, 256  ;;  %v6528_v29 = vshra.s32 %v10063_v3, 16  ;;  %6088 = vst.msk [vmem:[#allocation4 + $0x58] sm:$0xff] %vm11023_vm12, %v6007_v57  ;;  %vm11026_vm11 = vmmov %vm11023_vm12  ;;  %v6369_v41 = vcvt.s32.f32 %v6367_v22  ;;  %v6415_v57 = vand.u32 65535, %v9830_v4 }
 0x67f   :  { %v6906_v48 = vld [vmem:[#allocation3 + $0x60] sm:$0xff]  ;;  %vm6541_vm3 = vcmp.lt.s32.totalorder %v6327_v21, %v6328_v24  ;;  %v6027_v31 = vpop.xlane.xlu0 %6026  ;;  %vm11027_vm6 = vmmov %vm11026_vm11 }
 0x680   :  { %6923 = vst.msk [vmem:[%s10347_s4 + $0x60] sm:$0xff] %vm11024_vm15, %v6906_v48  ;;  %v10073_v8 = vcvt.s32.f32 %v6528_v29  ;;  %v10075_v25 = vsel %vm6541_vm3, %v6327_v21, %v6328_v24  ;;  %v6030_v17 = vcvt.f32.s32 %v6027_v31  ;;  %v6417_v29 = vcvt.s32.f32 %v6415_v57 }
 0x681   :  { %v6544_v23 = vshra.s32 %v10075_v25, 16  ;;  %v6016_v34 = vpop.xlane.xlu2 %6015 }
 0x682   :  { %6531 = vmin.xlane.f32.xlu2 %v10073_v8  ;;  %v6029_v52 = vpop.xlane.xlu1 %6028  ;;  %v6907_v9 = vld [vmem:[#allocation3 + $0x68] sm:$0xff]  ;;  %v6018_v20 = vcvt.f32.s32 %v6016_v34 }
 0x683   :  { %v6031_v37 = vcvt.f32.s32 %v6029_v52  ;;  %v10079_v49 = vcvt.s32.f32 %v6544_v23  ;;  %6924 = vst.msk [vmem:[%s10347_s4 + $0x68] sm:$0xff] %vm11025_vm9, %v6907_v9  ;;  %v6447_v52 = vand.u32 65535, %v9926_v14 }
 0x684   :  { %v6019_v33 = vshll.u32 %v6018_v20, 16 }
 0x685   :  { %v6032_v44 = vshll.u32 %v6031_v37, 16  ;;  %6547 = vmin.xlane.f32.xlu0 %v10079_v49  ;;  %v6449_v37 = vcvt.s32.f32 %v6447_v52 }
 0x686   :  { %v6020_v38 = vadd.s32 %v6019_v33, %v6017_v55  ;;  %v6495_v33 = vand.u32 65535, %v10003_v40 }
 0x687   :  { %v6033_v0 = vadd.s32 %v6032_v44, %v6030_v17  ;;  %v6479_v17 = vand.u32 65535, %v9991_v63 }
 0x688   :  { %6089 = vst.msk [vmem:[#allocation4 + $0x60] sm:$0xff] %vm11026_vm11, %v6020_v38  ;;  %v6497_v38 = vcvt.s32.f32 %v6495_v33 }
 0x689   :  { %6090 = vst.msk [vmem:[#allocation4 + $0x68] sm:$0xff] %vm11027_vm6, %v6033_v0  ;;  %v6481_v16 = vcvt.s32.f32 %v6479_v17 }
 0x68a   :  { %v10090_v7 = vpop.xlane.xlu1 %6339 }
 0x68b   :  { %vm6341_vm13 = vcmp.eq.f32.partialorder %v9758_v19, %v10090_v7 }
 0x68c   :  { %v6342_v58 = vsel %vm6341_vm13, %v6337_v61, inf  ;;  %v6527_v61 = vand.u32 65535, %v10063_v3 }
 0x68d   :  { %6343 = vmin.xlane.f32.xlu2 %v6342_v58  ;;  %v6543_v58 = vand.u32 65535, %v10075_v25 }
 0x68e   :  { %v6529_v22 = vcvt.s32.f32 %v6527_v61 }
 0x690   :  { %v10096_v30 = vpop.xlane.xlu0 %6355 }
 0x691   :  { %vm6357_vm2 = vcmp.eq.f32.partialorder %v9773_v10, %v10096_v30  ;;  %v10100_v32 = vpop.xlane.xlu2 %6371  ;;  %v6399_v10 = vand.u32 65535, %v9827_v13  ;;  %v6559_v13 = vand.u32 65535, %v9869_v11  ;;  %v6431_v11 = vand.u32 65535, %v9920_v53 }
 0x692   :  { %v6358_v51 = vsel %vm6357_vm2, %v6353_v39, inf  ;;  %vm6373_vm0 = vcmp.eq.f32.partialorder %v9781_v1, %v10100_v32  ;;  %v6463_v53 = vand.u32 65535, %v9972_v6  ;;  %v6545_v39 = vcvt.s32.f32 %v6543_v58 }
 0x693   :  { %6359 = vmin.xlane.f32.xlu1 %v6358_v51  ;;  %v6374_v19 = vsel %vm6373_vm0, %v6369_v41, inf  ;;  %v6401_v1 = vcvt.s32.f32 %v6399_v10  ;;  %v6561_v4 = vcvt.s32.f32 %v6559_v13  ;;  %v6433_v20 = vcvt.s32.f32 %v6431_v11 }
 0x694   :  { %6375 = vmin.xlane.f32.xlu0 %v6374_v19  ;;  %v6465_v14 = vcvt.s32.f32 %v6463_v53  ;;  %v6362_v19 = vcvt.f32.s32 %v10096_v30 }
 0x696   :  { %v6363_v57 = vshll.u32 %v6362_v19, 16 }
 0x69d   :  { %v10105_v46 = vpop.xlane.xlu1 %6387 }
 0x69e   :  { %vm6389_vm1 = vcmp.eq.f32.partialorder %v9803_v56, %v10105_v46 }
 0x69f   :  { %v6390_v45 = vsel %vm6389_vm1, %v6385_v2, inf  ;;  %v11028_v2 = vld [vmem:[#allocation5_spill] sm:$0xff] }
 0x6a0   :  { %6391 = vmin.xlane.f32.xlu2 %v6390_v45 }
 0x6a8   :  { %v10111_v21 = vpop.xlane.xlu0 %6403 }
 0x6a9   :  { %vm6405_vm4 = vcmp.eq.f32.partialorder %v9836_v42, %v10111_v21  ;;  %v10115_v24 = vpop.xlane.xlu2 %6419  ;;  %v6575_v42 = vand.u32 65535, %v9883_v26 }
 0x6aa   :  { %v6406_v27 = vsel %vm6405_vm4, %v6401_v1, inf  ;;  %vm6421_vm14 = vcmp.eq.f32.partialorder %v9844_v18, %v10115_v24 }
 0x6ab   :  { %6407 = vmin.xlane.f32.xlu1 %v6406_v27  ;;  %v6422_v56 = vsel %vm6421_vm14, %v6417_v29, inf  ;;  %v6577_v34 = vcvt.s32.f32 %v6575_v42 }
 0x6ac   :  { %6423 = vmin.xlane.f32.xlu0 %v6422_v56 }
 0x6b7   :  { %v10120_v48 = vpop.xlane.xlu1 %6563 }
 0x6b8   :  { %vm6565_vm7 = vcmp.eq.f32.partialorder %v9880_v12, %v10120_v48 }
 0x6b9   :  { %v6566_v31 = vsel %vm6565_vm7, %v6561_v4, inf }
 0x6ba   :  { %6567 = vmin.xlane.f32.xlu1 %v6566_v31  ;;  %v11029_v31 = vld [vmem:[#allocation6_spill] sm:$0xff] }
 0x6bd   :  { %v10125_v23 = vpop.xlane.xlu2 %6579 }
 0x6be   :  { %vm6581_vm10 = vcmp.eq.f32.partialorder %v9898_v50, %v10125_v23 }
 0x6bf   :  { %v6582_v18 = vsel %vm6581_vm10, %v6577_v34, inf }
 0x6c0   :  { %6583 = vmin.xlane.f32.xlu2 %v6582_v18 }
 0x6c5   :  { %v10131_v9 = vpop.xlane.xlu1 %6435 }
 0x6c6   :  { %vm6437_vm8 = vcmp.eq.f32.partialorder %v9924_v35, %v10131_v9 }
 0x6c7   :  { %v6438_v12 = vsel %vm6437_vm8, %v6433_v20, inf  ;;  %v11030_v20 = vld [vmem:[#allocation7_spill] sm:$0xff] }
 0x6c8   :  { %6439 = vmin.xlane.f32.xlu2 %v6438_v12  ;;  %v10135_v26 = vpop.xlane.xlu0 %6451 }
 0x6c9   :  { %vm6453_vm12 = vcmp.eq.f32.partialorder %v9939_v54, %v10135_v26 }
 0x6ca   :  { %v6454_v50 = vsel %vm6453_vm12, %v6449_v37, inf }
 0x6cb   :  { %6455 = vmin.xlane.f32.xlu0 %v6454_v50 }
 0x6d7   :  { %v10140_v55 = vpop.xlane.xlu1 %6467 }
 0x6d8   :  { %vm6469_vm3 = vcmp.eq.f32.partialorder %v9988_v5, %v10140_v55  ;;  %v6511_v5 = vand.u32 65535, %v10044_v59 }
 0x6d9   :  { %v6470_v35 = vsel %vm6469_vm3, %v6465_v14, inf  ;;  %v6394_v14 = vcvt.f32.s32 %v10105_v46 }
 0x6da   :  { %6471 = vmin.xlane.f32.xlu1 %v6470_v35  ;;  %v6513_v40 = vcvt.s32.f32 %v6511_v5 }
 0x6dd   :  { %v10146_v44 = vpop.xlane.xlu2 %6483 }
 0x6de   :  { %vm6485_vm15 = vcmp.eq.f32.partialorder %v10001_v47, %v10146_v44 }
 0x6df   :  { %v6486_v54 = vsel %vm6485_vm15, %v6481_v16, inf }
 0x6e0   :  { %6487 = vmin.xlane.f32.xlu2 %v6486_v54  ;;  %v10150_v6 = vpop.xlane.xlu0 %6499 }
 0x6e1   :  { %vm6501_vm9 = vcmp.eq.f32.partialorder %v10007_v36, %v10150_v6 }
 0x6e2   :  { %v6502_v63 = vsel %vm6501_vm9, %v6497_v38, inf  ;;  %v6395_v38 = vshll.u32 %v6394_v14, 16 }
 0x6e3   :  { %6503 = vmin.xlane.f32.xlu0 %v6502_v63 }
 0x6ef   :  { %v10155_v0 = vpop.xlane.xlu1 %6515 }
 0x6f0   :  { %vm6517_vm11 = vcmp.eq.f32.partialorder %v10060_v28, %v10155_v0  ;;  %v6346_v28 = vcvt.f32.s32 %v10090_v7 }
 0x6f1   :  { %v6518_v47 = vsel %vm6517_vm11, %v6513_v40, inf }
 0x6f2   :  { %6519 = vmin.xlane.f32.xlu1 %v6518_v47  ;;  %v6347_v25 = vshll.u32 %v6346_v28, 16  ;;  %v11031_v47 = vld [vmem:[#allocation8_spill] sm:$0xff] }
 0x6f5   :  { %v10161_v43 = vpop.xlane.xlu2 %6531 }
 0x6f6   :  { %vm6533_vm6 = vcmp.eq.f32.partialorder %v10073_v8, %v10161_v43  ;;  %v6378_v8 = vcvt.f32.s32 %v10100_v32 }
 0x6f7   :  { %v6534_v36 = vsel %vm6533_vm6, %v6529_v22, inf }
 0x6f8   :  { %6535 = vmin.xlane.f32.xlu2 %v6534_v36  ;;  %v10165_v59 = vpop.xlane.xlu0 %6547  ;;  %v6379_v27 = vshll.u32 %v6378_v8, 16 }
 0x6f9   :  { %vm6549_vm13 = vcmp.eq.f32.partialorder %v10079_v49, %v10165_v59 }
 0x6fa   :  { %v6550_v3 = vsel %vm6549_vm13, %v6545_v39, inf  ;;  %v6410_v39 = vcvt.f32.s32 %v10111_v21 }
 0x6fb   :  { %6551 = vmin.xlane.f32.xlu0 %v6550_v3 }
 0x700   :  { %v6344_v51 = vpop.xlane.xlu2 %6343 }
 0x701   :  { %v6345_v41 = vcvt.f32.s32 %v6344_v51  ;;  %v6426_v51 = vcvt.f32.s32 %v10115_v24 }
 0x703   :  { %v6348_v62 = vadd.s32 %v6347_v25, %v6345_v41 }
 0x705   :  { %vm6589_vm2 = vcmp.eq.s32.totalorder %v7467_v15, %v6348_v62  ;;  %vm6590_vm0 = vcmp.eq.s32.totalorder %v7558_v60, %v6348_v62  ;;  %v6411_v62 = vshll.u32 %v6410_v39, 16 }
 0x706   :  { %v6621_v45 = vsel %vm6589_vm2, %v11028_v2, 0  ;;  %v6622_v49 = vsel %vm6590_vm0, %v7467_v15, 0  ;;  %v6360_v10 = vpop.xlane.xlu1 %6359 }
 0x707   :  { %v6361_v1 = vcvt.f32.s32 %v6360_v10  ;;  %v6653_v7 = vadd.s32 %v6622_v49, %v6621_v45  ;;  %v6376_v29 = vpop.xlane.xlu0 %6375  ;;  %v6427_v45 = vshll.u32 %v6426_v51, 16 }
 0x708   :  { %v6377_v13 = vcvt.f32.s32 %v6376_v29 }
 0x709   :  { %v6364_v56 = vadd.s32 %v6363_v57, %v6361_v1  ;;  %v6655_v30 = vshrl.u32 %v6653_v7, 16  ;;  %v6654_v4 = vand.u32 65535, %v6653_v7  ;;  %v11032_v57 = vld [vmem:[#allocation9_spill] sm:$0xff] }
 0x70a   :  { %v6380_v32 = vadd.s32 %v6379_v27, %v6377_v13  ;;  %v11033_v27 = vld [vmem:[#allocation11_spill] sm:$0xff] }
 0x70b   :  { %vm6591_vm1 = vcmp.eq.s32.totalorder %v7467_v15, %v6364_v56  ;;  %vm6592_vm4 = vcmp.eq.s32.totalorder %v7558_v60, %v6364_v56  ;;  %v6657_v42 = vcvt.s32.f32 %v6655_v30  ;;  %v6656_v11 = vcvt.s32.f32 %v6654_v4 }
 0x70c   :  { %v6623_v34 = vsel %vm6591_vm1, %v11029_v31, 0  ;;  %v6624_v18 = vsel %vm6592_vm4, %v7467_v15, 0  ;;  %vm6593_vm14 = vcmp.eq.s32.totalorder %v7467_v15, %v6380_v32  ;;  %vm6594_vm7 = vcmp.eq.s32.totalorder %v7558_v60, %v6380_v32 }
 0x70d   :  { %6660 = vadd.xlane.f32.xlu1 %v6657_v42  ;;  %v6666_v52 = vadd.s32 %v6624_v18, %v6623_v34  ;;  %v6625_v12 = vsel %vm6593_vm14, %v11030_v20, 0  ;;  %v6626_v37 = vsel %vm6594_vm7, %v7467_v15, 0  ;;  %6658 = vadd.xlane.f32.xlu0 %v6656_v11  ;;  %v6570_v34 = vcvt.f32.s32 %v10120_v48  ;;  %v11034_v48 = vld [vmem:[#allocation29_spill] sm:$0xff] }
 0x70e   :  { %v6679_v53 = vadd.s32 %v6626_v37, %v6625_v12  ;;  %v6586_v37 = vcvt.f32.s32 %v10125_v23  ;;  %v6442_v23 = vcvt.f32.s32 %v10131_v9 }
 0x70f   :  { %v6667_v50 = vand.u32 65535, %v6666_v52  ;;  %v6668_v17 = vshrl.u32 %v6666_v52, 16  ;;  %v6571_v20 = vshll.u32 %v6570_v34, 16 }
 0x710   :  { %v6680_v33 = vand.u32 65535, %v6679_v53  ;;  %v6681_v40 = vshrl.u32 %v6679_v53, 16 }
 0x711   :  { %v6669_v35 = vcvt.s32.f32 %v6667_v50  ;;  %v6670_v5 = vcvt.s32.f32 %v6668_v17  ;;  %v6587_v17 = vshll.u32 %v6586_v37, 16 }
 0x712   :  { %v6682_v54 = vcvt.s32.f32 %v6680_v33  ;;  %v6683_v22 = vcvt.s32.f32 %v6681_v40 }
 0x713   :  { %6671 = vadd.xlane.f32.xlu2 %v6669_v35  ;;  %v6392_v16 = vpop.xlane.xlu2 %6391 }
 0x714   :  { %v6393_v63 = vcvt.f32.s32 %v6392_v16 }
 0x715   :  { %6684 = vadd.xlane.f32.xlu1 %v6682_v54  ;;  %6673 = vadd.xlane.f32.xlu0 %v6670_v5  ;;  %v11035_v5 = vld [vmem:[#allocation31_spill] sm:$0xff] }
 0x716   :  { %v6396_v61 = vadd.s32 %v6395_v38, %v6393_v63 }
 0x718   :  { %vm6595_vm10 = vcmp.eq.s32.totalorder %v7467_v15, %v6396_v61  ;;  %vm6596_vm8 = vcmp.eq.s32.totalorder %v7558_v60, %v6396_v61 }
 0x719   :  { %v6627_v58 = vsel %vm6595_vm10, %v11031_v47, 0  ;;  %v6628_v46 = vsel %vm6596_vm8, %v7467_v15, 0 }
 0x71a   :  { %v6692_v36 = vadd.s32 %v6628_v46, %v6627_v58  ;;  %v6458_v46 = vcvt.f32.s32 %v10135_v26 }
 0x71b   :  { %6686 = vadd.xlane.f32.xlu2 %v6683_v22 }
 0x71c   :  { %v6694_v3 = vshrl.u32 %v6692_v36, 16  ;;  %v6693_v28 = vand.u32 65535, %v6692_v36  ;;  %v6443_v36 = vshll.u32 %v6442_v23, 16  ;;  %v11040_v23 = vld [vmem:[#allocation41_spill] sm:$0xff] }
 0x71e   :  { %v6408_v25 = vpop.xlane.xlu1 %6407  ;;  %v6696_v41 = vcvt.s32.f32 %v6694_v3  ;;  %v6695_v19 = vcvt.s32.f32 %v6693_v28 }
 0x71f   :  { %v6409_v8 = vcvt.f32.s32 %v6408_v25  ;;  %v6424_v2 = vpop.xlane.xlu0 %6423  ;;  %v6459_v25 = vshll.u32 %v6458_v46, 16 }
 0x720   :  { %6699 = vadd.xlane.f32.xlu1 %v6696_v41  ;;  %6697 = vadd.xlane.f32.xlu0 %v6695_v19  ;;  %v6425_v10 = vcvt.f32.s32 %v6424_v2  ;;  %v11036_v19 = vld [vmem:[#allocation33_spill] sm:$0xff] }
 0x721   :  { %v6412_v49 = vadd.s32 %v6411_v62, %v6409_v8 }
 0x722   :  { %v6428_v21 = vadd.s32 %v6427_v45, %v6425_v10  ;;  %v11037_v45 = vld [vmem:[#allocation35_spill] sm:$0xff] }
 0x723   :  { %vm6597_vm12 = vcmp.eq.s32.totalorder %v7467_v15, %v6412_v49  ;;  %vm6598_vm3 = vcmp.eq.s32.totalorder %v7558_v60, %v6412_v49 }
 0x724   :  { %v6629_v1 = vsel %vm6597_vm12, %v11032_v57, 0  ;;  %v6630_v24 = vsel %vm6598_vm3, %v7467_v15, 0  ;;  %vm6599_vm15 = vcmp.eq.s32.totalorder %v7467_v15, %v6428_v21  ;;  %vm6600_vm9 = vcmp.eq.s32.totalorder %v7558_v60, %v6428_v21 }
 0x725   :  { %v6705_v7 = vadd.s32 %v6630_v24, %v6629_v1  ;;  %v6631_v29 = vsel %vm6599_vm15, %v11033_v27, 0  ;;  %v6632_v56 = vsel %vm6600_vm9, %v7467_v15, 0 }
 0x726   :  { %v6718_v30 = vadd.s32 %v6632_v56, %v6631_v29  ;;  %v6474_v56 = vcvt.f32.s32 %v10140_v55 }
 0x727   :  { %v6706_v13 = vand.u32 65535, %v6705_v7  ;;  %v6707_v4 = vshrl.u32 %v6705_v7, 16 }
 0x728   :  { %v6719_v42 = vand.u32 65535, %v6718_v30  ;;  %v6720_v11 = vshrl.u32 %v6718_v30, 16 }
 0x729   :  { %v6708_v32 = vcvt.s32.f32 %v6706_v13  ;;  %v6709_v31 = vcvt.s32.f32 %v6707_v4  ;;  %v6475_v4 = vshll.u32 %v6474_v56, 16  ;;  %v11042_v56 = vld [vmem:[#allocation44_spill] sm:$0xff] }
 0x72a   :  { %v6721_v18 = vcvt.s32.f32 %v6719_v42  ;;  %v6722_v53 = vcvt.s32.f32 %v6720_v11 }
 0x72b   :  { %6710 = vadd.xlane.f32.xlu2 %v6708_v32  ;;  %6712 = vadd.xlane.f32.xlu0 %v6709_v31  ;;  %v6490_v32 = vcvt.f32.s32 %v10146_v44 }
 0x72c   :  { %6723 = vadd.xlane.f32.xlu1 %v6721_v18  ;;  %v6506_v18 = vcvt.f32.s32 %v10150_v6 }
 0x72d   :  { %v6568_v52 = vpop.xlane.xlu1 %6567 }
 0x72e   :  { %v6569_v12 = vcvt.f32.s32 %v6568_v52  ;;  %v6491_v52 = vshll.u32 %v6490_v32, 16 }
 0x730   :  { %v6572_v50 = vadd.s32 %v6571_v20, %v6569_v12  ;;  %v11038_v12 = vld [vmem:[#allocation37_spill] sm:$0xff] }
 0x732   :  { %vm6617_vm11 = vcmp.eq.s32.totalorder %v7467_v15, %v6572_v50  ;;  %vm6618_vm6 = vcmp.eq.s32.totalorder %v7558_v60, %v6572_v50 }
 0x733   :  { %6725 = vadd.xlane.f32.xlu2 %v6722_v53  ;;  %v6584_v14 = vpop.xlane.xlu2 %6583  ;;  %v6649_v35 = vsel %vm6617_vm11, %v11034_v48, 0  ;;  %v6650_v33 = vsel %vm6618_vm6, %v7467_v15, 0  ;;  %v11039_v48 = vld [vmem:[#allocation39_spill] sm:$0xff] }
 0x734   :  { %v6585_v16 = vcvt.f32.s32 %v6584_v14  ;;  %v10205_v54 = vadd.s32 %v6650_v33, %v6649_v35  ;;  %v6507_v14 = vshll.u32 %v6506_v18, 16 }
 0x736   :  { %v6588_v38 = vadd.s32 %v6587_v17, %v6585_v16  ;;  %v6837_v63 = vshrl.u32 %v10205_v54, 16 }
 0x738   :  { %vm6619_vm13 = vcmp.eq.s32.totalorder %v7467_v15, %v6588_v38  ;;  %vm6620_vm2 = vcmp.eq.s32.totalorder %v7558_v60, %v6588_v38  ;;  %v6839_v47 = vcvt.s32.f32 %v6837_v63 }
 0x739   :  { %v6651_v40 = vsel %vm6619_vm13, %v11035_v5, 0  ;;  %v6652_v61 = vsel %vm6620_vm2, %v7467_v15, 0 }
 0x73a   :  { %v10213_v58 = vadd.s32 %v6652_v61, %v6651_v40  ;;  %6842 = vadd.xlane.f32.xlu0 %v6839_v47 }
 0x73b   :  { %v6440_v22 = vpop.xlane.xlu2 %6439 }
 0x73c   :  { %v6441_v39 = vcvt.f32.s32 %v6440_v22  ;;  %v6850_v3 = vshrl.u32 %v10213_v58, 16 }
 0x73e   :  { %v6444_v9 = vadd.s32 %v6443_v36, %v6441_v39  ;;  %v6456_v28 = vpop.xlane.xlu0 %6455  ;;  %v6852_v51 = vcvt.s32.f32 %v6850_v3 }
 0x73f   :  { %v6457_v41 = vcvt.f32.s32 %v6456_v28  ;;  %v6522_v28 = vcvt.f32.s32 %v10155_v0 }
 0x740   :  { %vm6601_vm0 = vcmp.eq.s32.totalorder %v7467_v15, %v6444_v9  ;;  %vm6602_vm1 = vcmp.eq.s32.totalorder %v7558_v60, %v6444_v9  ;;  %6855 = vadd.xlane.f32.xlu1 %v6852_v51 }
 0x741   :  { %v6633_v62 = vsel %vm6601_vm0, %v11036_v19, 0  ;;  %v6634_v26 = vsel %vm6602_vm1, %v7467_v15, 0  ;;  %v6460_v8 = vadd.s32 %v6459_v25, %v6457_v41  ;;  %v6523_v19 = vshll.u32 %v6522_v28, 16 }
 0x742   :  { %v6731_v2 = vadd.s32 %v6634_v26, %v6633_v62  ;;  %v6538_v62 = vcvt.f32.s32 %v10161_v43  ;;  %vm11044_vm1 = vcmask 31744  }
 0x743   :  { %vm6603_vm4 = vcmp.eq.s32.totalorder %v7467_v15, %v6460_v8  ;;  %vm6604_vm14 = vcmp.eq.s32.totalorder %v7558_v60, %v6460_v8 }
 0x744   :  { %v6635_v49 = vsel %vm6603_vm4, %v11037_v45, 0  ;;  %v6636_v10 = vsel %vm6604_vm14, %v7467_v15, 0  ;;  %v6733_v21 = vshrl.u32 %v6731_v2, 16  ;;  %v6732_v57 = vand.u32 65535, %v6731_v2  ;;  %vm11045_vm4 = vmmov %vm11044_vm1 }
 0x745   :  { %v6744_v1 = vadd.s32 %v6636_v10, %v6635_v49  ;;  %v6554_v45 = vcvt.f32.s32 %v10165_v59  ;;  %v6539_v10 = vshll.u32 %v6538_v62, 16  ;;  %vm11046_vm14 = vmmov %vm11044_vm1 }
 0x746   :  { %v6735_v24 = vcvt.s32.f32 %v6733_v21  ;;  %v6734_v7 = vcvt.s32.f32 %v6732_v57  ;;  %v11041_v21 = vld [vmem:[#allocation42_spill] sm:$0xff] }
 0x747   :  { %v6746_v27 = vshrl.u32 %v6744_v1, 16  ;;  %v6745_v13 = vand.u32 65535, %v6744_v1 }
 0x748   :  { %6738 = vadd.xlane.f32.xlu1 %v6735_v24  ;;  %6736 = vadd.xlane.f32.xlu0 %v6734_v7 }
 0x749   :  { %v6748_v29 = vcvt.s32.f32 %v6746_v27  ;;  %v6747_v31 = vcvt.s32.f32 %v6745_v13  ;;  %v6555_v27 = vshll.u32 %v6554_v45, 16 }
 0x74b   :  { %6751 = vadd.xlane.f32.xlu2 %v6748_v29 }
 0x74d   :  { %v6472_v30 = vpop.xlane.xlu1 %6471 }
 0x74e   :  { %v6473_v42 = vcvt.f32.s32 %v6472_v30 }
 0x750   :  { %v6476_v34 = vadd.s32 %v6475_v4, %v6473_v42 }
 0x752   :  { %vm6605_vm7 = vcmp.eq.s32.totalorder %v7467_v15, %v6476_v34  ;;  %vm6606_vm10 = vcmp.eq.s32.totalorder %v7558_v60, %v6476_v34 }
 0x753   :  { %v6488_v11 = vpop.xlane.xlu2 %6487  ;;  %6749 = vadd.xlane.f32.xlu2 %v6747_v31  ;;  %v6637_v55 = vsel %vm6605_vm7, %v11038_v12, 0  ;;  %v6638_v37 = vsel %vm6606_vm10, %v7467_v15, 0  ;;  %v11043_v31 = vld [vmem:[#allocation46_spill] sm:$0xff]  ;;  %vm11047_vm7 = vmmov %vm11044_vm1 }
 0x754   :  { %v6489_v20 = vcvt.f32.s32 %v6488_v11  ;;  %v6757_v44 = vadd.s32 %v6638_v37, %v6637_v55  ;;  %vm11048_vm10 = vmmov %vm11044_vm1 }
 0x756   :  { %v6492_v50 = vadd.s32 %v6491_v52, %v6489_v20  ;;  %v6504_v53 = vpop.xlane.xlu0 %6503  ;;  %v6759_v6 = vshrl.u32 %v6757_v44, 16  ;;  %v6758_v22 = vand.u32 65535, %v6757_v44 }
 0x757   :  { %v6505_v17 = vcvt.f32.s32 %v6504_v53 }
 0x758   :  { %vm6607_vm8 = vcmp.eq.s32.totalorder %v7467_v15, %v6492_v50  ;;  %vm6608_vm12 = vcmp.eq.s32.totalorder %v7558_v60, %v6492_v50  ;;  %v6761_v38 = vcvt.s32.f32 %v6759_v6  ;;  %v6760_v3 = vcvt.s32.f32 %v6758_v22 }
 0x759   :  { %v6639_v35 = vsel %vm6607_vm8, %v11039_v48, 0  ;;  %v6640_v33 = vsel %vm6608_vm12, %v7467_v15, 0  ;;  %v6508_v16 = vadd.s32 %v6507_v14, %v6505_v17  ;;  %vm11049_vm8 = vmmov %vm11044_vm1 }
 0x75a   :  { %v6770_v63 = vadd.s32 %v6640_v33, %v6639_v35  ;;  %6764 = vadd.xlane.f32.xlu0 %v6761_v38  ;;  %v6849_v33 = vand.u32 65535, %v10213_v58  ;;  %vm11050_vm12 = vmmov %vm11044_vm1 }
 0x75b   :  { %vm6609_vm3 = vcmp.eq.s32.totalorder %v7467_v15, %v6508_v16  ;;  %vm6610_vm15 = vcmp.eq.s32.totalorder %v7558_v60, %v6508_v16 }
 0x75c   :  { %v6641_v5 = vsel %vm6609_vm3, %v11040_v23, 0  ;;  %v6642_v40 = vsel %vm6610_vm15, %v7467_v15, 0  ;;  %v6772_v61 = vshrl.u32 %v6770_v63, 16  ;;  %v6771_v9 = vand.u32 65535, %v6770_v63  ;;  %vm11051_vm3 = vmmov %vm11044_vm1 }
 0x75d   :  { %v6783_v47 = vadd.s32 %v6642_v40, %v6641_v5  ;;  %v6851_v5 = vcvt.s32.f32 %v6849_v33  ;;  %vm11052_vm15 = vmmov %vm11044_vm1 }
 0x75e   :  { %v6774_v46 = vcvt.s32.f32 %v6772_v61  ;;  %v6773_v25 = vcvt.s32.f32 %v6771_v9 }
 0x75f   :  { %v6785_v36 = vshrl.u32 %v6783_v47, 16  ;;  %v6784_v51 = vand.u32 65535, %v6783_v47 }
 0x760   :  { %6777 = vadd.xlane.f32.xlu1 %v6774_v46 }
 0x761   :  { %v6787_v39 = vcvt.s32.f32 %v6785_v36  ;;  %v6786_v8 = vcvt.s32.f32 %v6784_v51 }
 0x762   :  { %6762 = vadd.xlane.f32.xlu0 %v6760_v3 }
 0x763   :  { %6790 = vadd.xlane.f32.xlu2 %v6787_v39 }
 0x765   :  { %v6520_v41 = vpop.xlane.xlu1 %6519 }
 0x766   :  { %v6521_v26 = vcvt.f32.s32 %v6520_v41 }
 0x768   :  { %6775 = vadd.xlane.f32.xlu1 %v6773_v25  ;;  %v6524_v2 = vadd.s32 %v6523_v19, %v6521_v26 }
 0x76a   :  { %vm6611_vm9 = vcmp.eq.s32.totalorder %v7467_v15, %v6524_v2  ;;  %vm6612_vm11 = vcmp.eq.s32.totalorder %v7558_v60, %v6524_v2 }
 0x76b   :  { %v6536_v49 = vpop.xlane.xlu2 %6535  ;;  %6788 = vadd.xlane.f32.xlu2 %v6786_v8  ;;  %v6643_v57 = vsel %vm6611_vm9, %v11041_v21, 0  ;;  %v6644_v1 = vsel %vm6612_vm11, %v7467_v15, 0  ;;  %vm11053_vm9 = vmmov %vm11044_vm1 }
 0x76c   :  { %v6537_v0 = vcvt.f32.s32 %v6536_v49  ;;  %v6796_v7 = vadd.s32 %v6644_v1, %v6643_v57  ;;  %vm11054_vm11 = vmmov %vm11044_vm1 }
 0x76e   :  { %v6540_v24 = vadd.s32 %v6539_v10, %v6537_v0  ;;  %v6552_v43 = vpop.xlane.xlu0 %6551  ;;  %v6798_v59 = vshrl.u32 %v6796_v7, 16  ;;  %v6797_v12 = vand.u32 65535, %v6796_v7 }
 0x76f   :  { %v6553_v29 = vcvt.f32.s32 %v6552_v43 }
 0x770   :  { %vm6613_vm6 = vcmp.eq.s32.totalorder %v7467_v15, %v6540_v24  ;;  %vm6614_vm13 = vcmp.eq.s32.totalorder %v7558_v60, %v6540_v24  ;;  %v6800_v32 = vcvt.s32.f32 %v6798_v59  ;;  %v6799_v50 = vcvt.s32.f32 %v6797_v12 }
 0x771   :  { %v6645_v13 = vsel %vm6613_vm6, %v11042_v56, 0  ;;  %v6646_v30 = vsel %vm6614_vm13, %v7467_v15, 0  ;;  %v6556_v4 = vadd.s32 %v6555_v27, %v6553_v29  ;;  %vm11055_vm6 = vmmov %vm11044_vm1 }
 0x772   :  { %v6809_v42 = vadd.s32 %v6646_v30, %v6645_v13  ;;  %6803 = vadd.xlane.f32.xlu0 %v6800_v32  ;;  %vm11056_vm13 = vmmov %vm11044_vm1 }
 0x773   :  { %vm6615_vm2 = vcmp.eq.s32.totalorder %v7467_v15, %v6556_v4  ;;  %vm6616_vm0 = vcmp.eq.s32.totalorder %v7558_v60, %v6556_v4  ;;  %v6836_v60 = vand.u32 65535, %v10205_v54 }
 0x774   :  { %v6647_v34 = vsel %vm6615_vm2, %v11043_v31, 0  ;;  %v6648_v18 = vsel %vm6616_vm0, %v7467_v15, 0  ;;  %v6811_v11 = vshrl.u32 %v6809_v42, 16  ;;  %v6810_v53 = vand.u32 65535, %v6809_v42  ;;  %vm11057_vm2 = vmmov %vm11044_vm1 }
 0x775   :  { %v6822_v52 = vadd.s32 %v6648_v18, %v6647_v34  ;;  %v6838_v35 = vcvt.s32.f32 %v6836_v60  ;;  %vm11058_vm0 = vmmov %vm11044_vm1 }
 0x776   :  { %v6813_v20 = vcvt.s32.f32 %v6811_v11  ;;  %v6812_v14 = vcvt.s32.f32 %v6810_v53 }
 0x777   :  { %v6824_v55 = vshrl.u32 %v6822_v52, 16  ;;  %v6823_v44 = vand.u32 65535, %v6822_v52 }
 0x778   :  { %6816 = vadd.xlane.f32.xlu1 %v6813_v20 }
 0x779   :  { %v6826_v37 = vcvt.s32.f32 %v6824_v55  ;;  %v6825_v48 = vcvt.s32.f32 %v6823_v44 }
 0x77a   :  { %6801 = vadd.xlane.f32.xlu0 %v6799_v50 }
 0x77b   :  { %6829 = vadd.xlane.f32.xlu2 %v6826_v37 }
 0x780   :  { %6814 = vadd.xlane.f32.xlu1 %v6812_v14  ;;  %v6661_v17 = vpop.xlane.xlu1 %6660  ;;  %v6659_v15 = vpop.xlane.xlu0 %6658 }
 0x781   :  { %v6663_v6 = vcvt.f32.s32 %v6661_v17  ;;  %v6662_v38 = vcvt.f32.s32 %v6659_v15 }
 0x782   :  { %6840 = vadd.xlane.f32.xlu0 %v6838_v35 }
 0x783   :  { %v6664_v16 = vshll.u32 %v6663_v6, 16  ;;  %6827 = vadd.xlane.f32.xlu2 %v6825_v48 }
 0x785   :  { %v6665_v63 = vadd.s32 %v6664_v16, %v6662_v38 }
 0x786   :  { %v6672_v23 = vpop.xlane.xlu2 %6671 }
 0x787   :  { %6878 = vst.msk [vmem:[#allocation4] sm:$0xff] %vm6861_vm5, %v6665_v63  ;;  %v6675_v47 = vcvt.f32.s32 %v6672_v23 }
 0x788   :  { %6853 = vadd.xlane.f32.xlu1 %v6851_v5  ;;  %v6685_v40 = vpop.xlane.xlu1 %6684  ;;  %v6674_v54 = vpop.xlane.xlu0 %6673 }
 0x789   :  { %v6676_v61 = vcvt.f32.s32 %v6674_v54  ;;  %v6688_v3 = vcvt.f32.s32 %v6685_v40 }
 0x78b   :  { %v6677_v46 = vshll.u32 %v6676_v61, 16 }
 0x78d   :  { %v6678_v36 = vadd.s32 %v6677_v46, %v6675_v47 }
 0x78e   :  { %v6927_v22 = vld [vmem:[#allocation4] sm:$0xff]  ;;  %v6687_v39 = vpop.xlane.xlu2 %6686 }
 0x78f   :  { %6943 = vst.msk [vmem:[%s10348_s5] sm:$0xff] %vm11044_vm1, %v6927_v22  ;;  %v6689_v58 = vcvt.f32.s32 %v6687_v39  ;;  %vm11059_vm1 = vmmov %vm11058_vm0 }
 0x790   :  { %6879 = vst.msk [vmem:[#allocation4 + $0x8] sm:$0xff] %vm6861_vm5, %v6678_v36 }
 0x791   :  { %v6690_v9 = vshll.u32 %v6689_v58, 16 }
 0x793   :  { %v6691_v28 = vadd.s32 %v6690_v9, %v6688_v3  ;;  %v6700_v51 = vpop.xlane.xlu1 %6699  ;;  %v6698_v25 = vpop.xlane.xlu0 %6697 }
 0x794   :  { %v6702_v41 = vcvt.f32.s32 %v6700_v51  ;;  %v6701_v62 = vcvt.f32.s32 %v6698_v25 }
 0x795   :  { %6880 = vst.msk [vmem:[#allocation4 + $0x10] sm:$0xff] %vm6861_vm5, %v6691_v28 }
 0x796   :  { %v6703_v19 = vshll.u32 %v6702_v41, 16 }
 0x797   :  { %v6928_v26 = vld [vmem:[#allocation4 + $0x8] sm:$0xff] }
 0x798   :  { %6944 = vst.msk [vmem:[%s10348_s5 + $0x8] sm:$0xff] %vm11045_vm4, %v6928_v26  ;;  %v6704_v8 = vadd.s32 %v6703_v19, %v6701_v62 }
 0x79a   :  { %6881 = vst.msk [vmem:[#allocation4 + $0x18] sm:$0xff] %vm6861_vm5, %v6704_v8 }
 0x79c   :  { %v6929_v2 = vld [vmem:[#allocation4 + $0x10] sm:$0xff] }
 0x79d   :  { %6945 = vst.msk [vmem:[%s10348_s5 + $0x10] sm:$0xff] %vm11046_vm14, %v6929_v2 }
 0x79e   :  { %v6713_v45 = vpop.xlane.xlu0 %6712  ;;  %v6711_v49 = vpop.xlane.xlu2 %6710 }
 0x79f   :  { %v6715_v10 = vcvt.f32.s32 %v6713_v45  ;;  %v6714_v57 = vcvt.f32.s32 %v6711_v49  ;;  %v6724_v24 = vpop.xlane.xlu1 %6723 }
 0x7a0   :  { %v6727_v27 = vcvt.f32.s32 %v6724_v24 }
 0x7a1   :  { %v6930_v0 = vld [vmem:[#allocation4 + $0x18] sm:$0xff]  ;;  %v6716_v21 = vshll.u32 %v6715_v10, 16 }
 0x7a2   :  { %6946 = vst.msk [vmem:[%s10348_s5 + $0x18] sm:$0xff] %vm11047_vm7, %v6930_v0 }
 0x7a3   :  { %v6717_v1 = vadd.s32 %v6716_v21, %v6714_v57 }
 0x7a5   :  { %6882 = vst.msk [vmem:[#allocation4 + $0x20] sm:$0xff] %vm6861_vm5, %v6717_v1 }
 0x7a6   :  { %v6726_v43 = vpop.xlane.xlu2 %6725 }
 0x7a7   :  { %v6728_v7 = vcvt.f32.s32 %v6726_v43 }
 0x7a9   :  { %v6729_v29 = vshll.u32 %v6728_v7, 16 }
 0x7ab   :  { %v6730_v59 = vadd.s32 %v6729_v29, %v6727_v27 }
 0x7ac   :  { %v6931_v56 = vld [vmem:[#allocation4 + $0x20] sm:$0xff] }
 0x7ad   :  { %6947 = vst.msk [vmem:[%s10348_s5 + $0x20] sm:$0xff] %vm11048_vm10, %v6931_v56  ;;  %v10283_v13 = vpop.xlane.xlu0 %6842 }
 0x7ae   :  { %6883 = vst.msk [vmem:[#allocation4 + $0x28] sm:$0xff] %vm6861_vm5, %v6730_v59  ;;  %v6845_v2 = vcvt.f32.s32 %v10283_v13 }
 0x7b0   :  { %v6846_v24 = vshll.u32 %v6845_v2, 16 }
 0x7b3   :  { %v10285_v30 = vpop.xlane.xlu1 %6855 }
 0x7b4   :  { %v6858_v43 = vcvt.f32.s32 %v10285_v30 }
 0x7b5   :  { %v6932_v4 = vld [vmem:[#allocation4 + $0x28] sm:$0xff] }
 0x7b6   :  { %6948 = vst.msk [vmem:[%s10348_s5 + $0x28] sm:$0xff] %vm11049_vm8, %v6932_v4  ;;  %v6859_v13 = vshll.u32 %v6858_v43, 16 }
 0x7bb   :  { %v6739_v32 = vpop.xlane.xlu1 %6738  ;;  %v6737_v42 = vpop.xlane.xlu0 %6736 }
 0x7bc   :  { %v6741_v31 = vcvt.f32.s32 %v6739_v32  ;;  %v6740_v18 = vcvt.f32.s32 %v6737_v42 }
 0x7be   :  { %v6742_v34 = vshll.u32 %v6741_v31, 16  ;;  %v6752_v11 = vpop.xlane.xlu2 %6751 }
 0x7bf   :  { %v6754_v20 = vcvt.f32.s32 %v6752_v11 }
 0x7c0   :  { %v6743_v52 = vadd.s32 %v6742_v34, %v6740_v18 }
 0x7c1   :  { %v6755_v55 = vshll.u32 %v6754_v20, 16 }
 0x7c2   :  { %6884 = vst.msk [vmem:[#allocation4 + $0x30] sm:$0xff] %vm6861_vm5, %v6743_v52 }
 0x7c6   :  { %v6750_v12 = vpop.xlane.xlu2 %6749 }
 0x7c7   :  { %v6753_v37 = vcvt.f32.s32 %v6750_v12 }
 0x7c9   :  { %v6933_v50 = vld [vmem:[#allocation4 + $0x30] sm:$0xff]  ;;  %v6756_v53 = vadd.s32 %v6755_v55, %v6753_v37 }
 0x7ca   :  { %6949 = vst.msk [vmem:[%s10348_s5 + $0x30] sm:$0xff] %vm11050_vm12, %v6933_v50 }
 0x7cb   :  { %6885 = vst.msk [vmem:[#allocation4 + $0x38] sm:$0xff] %vm6861_vm5, %v6756_v53 }
 0x7cd   :  { %v6765_v44 = vpop.xlane.xlu0 %6764 }
 0x7ce   :  { %v6767_v17 = vcvt.f32.s32 %v6765_v44 }
 0x7d0   :  { %v6768_v48 = vshll.u32 %v6767_v17, 16 }
 0x7d2   :  { %v6934_v14 = vld [vmem:[#allocation4 + $0x38] sm:$0xff] }
 0x7d3   :  { %6950 = vst.msk [vmem:[%s10348_s5 + $0x38] sm:$0xff] %vm11051_vm3, %v6934_v14  ;;  %v6778_v60 = vpop.xlane.xlu1 %6777 }
 0x7d4   :  { %v6780_v35 = vcvt.f32.s32 %v6778_v60 }
 0x7d5   :  { %v6763_v15 = vpop.xlane.xlu0 %6762 }
 0x7d6   :  { %v6791_v6 = vpop.xlane.xlu2 %6790  ;;  %v6766_v33 = vcvt.f32.s32 %v6763_v15  ;;  %v6781_v23 = vshll.u32 %v6780_v35, 16 }
 0x7d7   :  { %v6793_v38 = vcvt.f32.s32 %v6791_v6 }
 0x7d8   :  { %v6769_v16 = vadd.s32 %v6768_v48, %v6766_v33 }
 0x7d9   :  { %v6794_v61 = vshll.u32 %v6793_v38, 16 }
 0x7da   :  { %6886 = vst.msk [vmem:[#allocation4 + $0x40] sm:$0xff] %vm6861_vm5, %v6769_v16 }
 0x7db   :  { %v6776_v63 = vpop.xlane.xlu1 %6775 }
 0x7dc   :  { %v6779_v5 = vcvt.f32.s32 %v6776_v63 }
 0x7de   :  { %v6782_v40 = vadd.s32 %v6781_v23, %v6779_v5  ;;  %v6789_v54 = vpop.xlane.xlu2 %6788 }
 0x7df   :  { %v6792_v47 = vcvt.f32.s32 %v6789_v54 }
 0x7e0   :  { %6887 = vst.msk [vmem:[#allocation4 + $0x48] sm:$0xff] %vm6861_vm5, %v6782_v40 }
 0x7e1   :  { %v6795_v46 = vadd.s32 %v6794_v61, %v6792_v47  ;;  %v6935_v22 = vld [vmem:[#allocation4 + $0x40] sm:$0xff] }
 0x7e2   :  { %6951 = vst.msk [vmem:[%s10348_s5 + $0x40] sm:$0xff] %vm11052_vm15, %v6935_v22 }
 0x7e3   :  { %6888 = vst.msk [vmem:[#allocation4 + $0x50] sm:$0xff] %vm6861_vm5, %v6795_v46 }
 0x7e5   :  { %v6804_v39 = vpop.xlane.xlu0 %6803 }
 0x7e6   :  { %v6806_v9 = vcvt.f32.s32 %v6804_v39 }
 0x7e7   :  { %v6936_v36 = vld [vmem:[#allocation4 + $0x48] sm:$0xff] }
 0x7e8   :  { %6952 = vst.msk [vmem:[%s10348_s5 + $0x48] sm:$0xff] %vm11053_vm9, %v6936_v36  ;;  %v6807_v25 = vshll.u32 %v6806_v9, 16 }
 0x7ea   :  { %v6937_v58 = vld [vmem:[#allocation4 + $0x50] sm:$0xff] }
 0x7eb   :  { %6953 = vst.msk [vmem:[%s10348_s5 + $0x50] sm:$0xff] %vm11054_vm11, %v6937_v58  ;;  %v6817_v3 = vpop.xlane.xlu1 %6816 }
 0x7ec   :  { %v6819_v41 = vcvt.f32.s32 %v6817_v3 }
 0x7ed   :  { %v6802_v51 = vpop.xlane.xlu0 %6801 }
 0x7ee   :  { %v6830_v28 = vpop.xlane.xlu2 %6829  ;;  %v6805_v19 = vcvt.f32.s32 %v6802_v51  ;;  %v6820_v45 = vshll.u32 %v6819_v41, 16 }
 0x7ef   :  { %v6832_v26 = vcvt.f32.s32 %v6830_v28 }
 0x7f0   :  { %v6808_v62 = vadd.s32 %v6807_v25, %v6805_v19 }
 0x7f1   :  { %v6833_v21 = vshll.u32 %v6832_v26, 16 }
 0x7f2   :  { %6889 = vst.msk [vmem:[#allocation4 + $0x58] sm:$0xff] %vm6861_vm5, %v6808_v62 }
 0x7f3   :  { %v6815_v8 = vpop.xlane.xlu1 %6814 }
 0x7f4   :  { %v6818_v49 = vcvt.f32.s32 %v6815_v8 }
 0x7f5   :  { %v6841_v57 = vpop.xlane.xlu0 %6840 }
 0x7f6   :  { %v6821_v10 = vadd.s32 %v6820_v45, %v6818_v49  ;;  %v6828_v0 = vpop.xlane.xlu2 %6827  ;;  %v6844_v7 = vcvt.f32.s32 %v6841_v57 }
 0x7f7   :  { %v6831_v1 = vcvt.f32.s32 %v6828_v0 }
 0x7f8   :  { %6890 = vst.msk [vmem:[#allocation4 + $0x60] sm:$0xff] %vm6861_vm5, %v6821_v10  ;;  %v6847_v29 = vadd.s32 %v6846_v24, %v6844_v7 }
 0x7f9   :  { %v6834_v27 = vadd.s32 %v6833_v21, %v6831_v1  ;;  %v6938_v59 = vld [vmem:[#allocation4 + $0x58] sm:$0xff] }
 0x7fa   :  { %6954 = vst.msk [vmem:[%s10348_s5 + $0x58] sm:$0xff] %vm11055_vm6, %v6938_v59 }
 0x7fb   :  { %6891 = vst.msk [vmem:[#allocation4 + $0x68] sm:$0xff] %vm6861_vm5, %v6834_v27  ;;  %v6854_v56 = vpop.xlane.xlu1 %6853 }
 0x7fc   :  { %v6857_v4 = vcvt.f32.s32 %v6854_v56  ;;  %6892 = vst.msk [vmem:[#allocation4 + $0x70] sm:$0xff] %vm6861_vm5, %v6847_v29 }
 0x7fe   :  { %v6860_v32 = vadd.s32 %v6859_v13, %v6857_v4 }
 0x7ff   :  { %v6939_v30 = vld [vmem:[#allocation4 + $0x60] sm:$0xff] }
 0x800   :  { %6955 = vst.msk [vmem:[%s10348_s5 + $0x60] sm:$0xff] %vm11056_vm13, %v6939_v30 }
 0x801   :  { %6893 = vst.msk [vmem:[#allocation4 + $0x78] sm:$0xff] %vm6861_vm5, %v6860_v32 }
 0x802   :  { %v6940_v42 = vld [vmem:[#allocation4 + $0x68] sm:$0xff] }
 0x803   :  { %6956 = vst.msk [vmem:[%s10348_s5 + $0x68] sm:$0xff] %vm11057_vm2, %v6940_v42  ;;  %v6941_v31 = vld [vmem:[#allocation4 + $0x70] sm:$0xff] }
 0x804   :  { %6957 = vst.msk [vmem:[%s10348_s5 + $0x70] sm:$0xff] %vm11058_vm0, %v6941_v31 }
 0x808   :  { %v6942_v34 = vld [vmem:[#allocation4 + $0x78] sm:$0xff] }
 0x809   :  { %6958 = vst.msk [vmem:[%s10348_s5 + $0x78] sm:$0xff] %vm11059_vm1, %v6942_v34 }

</bundles_post_ra>
